<compile_context>
chip_gen: v7x
topology: tpu7x:2x2x1
jax: 0.10.0
libtpu: 0.0.40
codegen_flags: <defaults>
</compile_context>

<pallas_src>
import functools

import jax
import jax.numpy as jnp
from jax.experimental import pallas as pl
from jax.experimental.pallas import tpu as pltpu

LANE = 128


def _round_up(x, m):
    return (x + m - 1) // m * m


# ----------------------------- Pallas kernel ------------------------------- #

def _basic_block_kernel(x_ref, w1_ref, w2_ref, bn_ref, o_ref, mid_ref, *, H, W, TH):
    """Fused BasicBlock over one (batch, row-tile) grid step.

    x_ref  : (1, H+4, W+2, Cp)  zero-padded input image (full height) in VMEM
    w1_ref : (9, Cp, Pp)        conv1 taps, tap k = dy*3 + dx
    w2_ref : (9, Pp, Pp)        conv2 taps
    bn_ref : (4, Pp) f32        [scale1; bias1; scale2; bias2] (BN folded)
    o_ref  : (1, TH, W, Pp)     output row tile (lane-dense Pp)
    mid_ref: (TH+2, W+2, Pp) f32 scratch: conv1 output + conv2 halo/zero pad
    """
    t = pl.program_id(1)
    cp = x_ref.shape[-1]
    pp = o_ref.shape[-1]
    mxu_dtype = w1_ref.dtype            # bf16 or f32 MXU operands
    xv = x_ref.at[0]                    # (H+4, W+2, cp) ref view (no copy)

    row0 = t * TH                       # top of this tile's halo window in x
    if TH % 8 == 0:
        row0 = pl.multiple_of(row0, 8)

    s1 = bn_ref[0:1, :]
    b1 = bn_ref[1:2, :]
    s2 = bn_ref[2:3, :]
    b2 = bn_ref[3:4, :]

    # ---- conv1 + bn1 + relu over TH+2 rows (includes conv2's row halo) ----
    m1 = (TH + 2) * W
    acc1 = jnp.zeros((m1, pp), jnp.float32)
    for dy in range(3):
        # aligned full-width load of the shifted row slab, upcast once
        slab = xv[pl.ds(row0 + dy, TH + 2), :, :].astype(jnp.float32)
        for dx in range(3):
            xw = slab[:, dx:dx + W, :].reshape(m1, cp).astype(mxu_dtype)
            acc1 = acc1 + jnp.dot(xw, w1_ref[dy * 3 + dx],
                                  preferred_element_type=jnp.float32)
    mid = jnp.maximum(acc1 * s1 + b1, 0.0).reshape(TH + 2, W, pp)

    # rows outside the image are conv2's zero padding (NOT conv1 of padded x)
    r = t * TH - 1 + jax.lax.broadcasted_iota(jnp.int32, (TH + 2, 1, 1), 0)
    mid = jnp.where((r >= 0) & (r < H), mid, 0.0)

    # materialize mid with explicit zero column padding for conv2 (stays in VMEM)
    mid_ref[...] = jnp.zeros_like(mid_ref)
    mid_ref[:, 1:W + 1, :] = mid

    # ---- conv2 + bn2 + residual + relu ----
    m2 = TH * W
    acc2 = jnp.zeros((m2, pp), jnp.float32)
    for dy in range(3):
        for dx in range(3):
            mw = mid_ref[dy:dy + TH, dx:dx + W, :].reshape(m2, pp).astype(mxu_dtype)
            acc2 = acc2 + jnp.dot(mw, w2_ref[dy * 3 + dx],
                                  preferred_element_type=jnp.float32)

    # residual = original x tile, already resident in the VMEM input block
    res = xv[pl.ds(row0 + 2, TH), :, :].astype(jnp.float32)[:, 1:W + 1, :]
    out = jnp.maximum(acc2 * s2 + b2 + res.reshape(m2, cp), 0.0)
    o_ref[0] = out.reshape(TH, W, pp).astype(o_ref.dtype)


# ------------------------------- JAX glue ---------------------------------- #

def _prep_conv_weight(w_oihw, cin_p, cout_p, dtype):
    """PyTorch (Cout, Cin, 3, 3) -> (9, cin_p, cout_p), tap k = dy*3 + dx."""
    cout, cin = w_oihw.shape[0], w_oihw.shape[1]
    w = jnp.transpose(w_oihw, (2, 3, 1, 0)).reshape(9, cin, cout)
    w = jnp.pad(w, ((0, 0), (0, cin_p - cin), (0, cout_p - cout)))
    return w.astype(dtype)


def _fold_bn(gamma, beta, mean, var, eps):
    scale = gamma / jnp.sqrt(var + eps)
    return scale, beta - mean * scale


def _pack_bn(params, pp, eps):
    s1, b1 = _fold_bn(params["g1"], params["be1"], params["m1"], params["v1"], eps)
    s2, b2 = _fold_bn(params["g2"], params["be2"], params["m2"], params["v2"], eps)
    packed = jnp.stack([s1, b1, s2, b2]).astype(jnp.float32)       # (4, P)
    return jnp.pad(packed, ((0, 0), (0, pp - packed.shape[1])))


def _pick_tile_h(H, W):
    # prefer >= 2 row tiles per image (pipelining / megacore) with modest tiles
    for th in range(H, 0, -1):
        if H % th == 0 and th * W <= 1024 and H // th >= 2:
            return th
    return H


def basic_block_forward(x_nchw, params, *, compute_dtype=jnp.bfloat16,
                        out_dtype=jnp.float32, tile_h=None, eps=1e-5):
    """Pallas implementation of BasicBlock.forward (stride=1, no downsample)."""
    N, C, H, W = x_nchw.shape
    P = params["w1"].shape[0]
    assert params["w1"].shape == (P, C, 3, 3)
    assert params["w2"].shape == (P, P, 3, 3)
    assert C == P, "identity residual requires inplanes == planes (downsample is None)"

    cp = _round_up(C, LANE)          # lane-dense padded channel counts
    pp = _round_up(P, LANE)
    TH = tile_h if tile_h is not None else _pick_tile_h(H, W)
    assert H % TH == 0
    n_tiles = H // TH

    # NHWC; zero-pad 2 rows top/bottom (conv1+conv2 halo), 1 col left/right
    # (conv1 halo), and channels up to a multiple of 128 (lane-dense).
    x_nhwc = jnp.transpose(x_nchw, (0, 2, 3, 1))
    x_pad = jnp.pad(x_nhwc, ((0, 0), (2, 2), (1, 1), (0, cp - C))).astype(compute_dtype)

    w1 = _prep_conv_weight(params["w1"], cp, pp, compute_dtype)
    w2 = _prep_conv_weight(params["w2"], pp, pp, compute_dtype)
    bn = _pack_bn(params, pp, eps)

    kernel = functools.partial(_basic_block_kernel, H=H, W=W, TH=TH)

    flops = 2 * 9 * (N * n_tiles * (TH + 2) * W * cp * pp    # conv1 (incl. halo rows)
                     + N * H * W * pp * pp)                  # conv2
    bytes_acc = (x_pad.size * x_pad.dtype.itemsize
                 + w1.size * w1.dtype.itemsize
                 + w2.size * w2.dtype.itemsize
                 + bn.size * 4
                 + N * H * W * pp * jnp.dtype(out_dtype).itemsize)

    out = pl.pallas_call(
        kernel,
        out_shape=jax.ShapeDtypeStruct((N, H, W, pp), out_dtype),
        grid_spec=pltpu.PrefetchScalarGridSpec(
            num_scalar_prefetch=0,
            grid=(N, n_tiles),
            in_specs=[
                # full padded image per batch element; re-used across row tiles
                pl.BlockSpec((1, H + 4, W + 2, cp), lambda n, t: (n, 0, 0, 0)),
                pl.BlockSpec((9, cp, pp), lambda n, t: (0, 0, 0)),
                pl.BlockSpec((9, pp, pp), lambda n, t: (0, 0, 0)),
                pl.BlockSpec((4, pp), lambda n, t: (0, 0)),
            ],
            out_specs=pl.BlockSpec((1, TH, W, pp), lambda n, t: (n, t, 0, 0)),
            scratch_shapes=[pltpu.VMEM((TH + 2, W + 2, pp), jnp.float32)],
        ),
        compiler_params=pltpu.CompilerParams(
            dimension_semantics=("parallel", "parallel"),
            vmem_limit_bytes=32 * 1024 * 1024,
        ),
        cost_estimate=pl.CostEstimate(flops=flops, transcendentals=0,
                                      bytes_accessed=bytes_acc),
    )(x_pad, w1, w2, bn)

    # drop channel padding; back to NCHW to match the PyTorch module interface
    return jnp.transpose(out[..., :P], (0, 3, 1, 2))


# ------------------------------- Reference --------------------------------- #

def _reference(x, params, eps=1e-5):
    def conv(z, w):
        return jax.lax.conv_general_dilated(
            z, w, window_strides=(1, 1), padding=((1, 1), (1, 1)),
            dimension_numbers=("NCHW", "OIHW", "NCHW"))

    def bn(z, g, b, m, v):
        g, b = g.reshape(1, -1, 1, 1), b.reshape(1, -1, 1, 1)
        m, v = m.reshape(1, -1, 1, 1), v.reshape(1, -1, 1, 1)
        return (z - m) / jnp.sqrt(v + eps) * g + b

    out = jnp.maximum(bn(conv(x, params["w1"]), params["g1"], params["be1"],
                         params["m1"], params["v1"]), 0.0)
    out = bn(conv(out, params["w2"]), params["g2"], params["be2"],
             params["m2"], params["v2"])
    return jnp.maximum(out + x, 0.0)


# --------------------------------- Main ------------------------------------ #

if __name__ == "__main__":
    N, C, H, W = 2, 8, 16, 16          # inplanes = planes = 8, stride = 1
    key = jax.random.PRNGKey(0)
    ks = jax.random.split(key, 11)

    x = jax.random.normal(ks[0], (N, C, H, W), dtype=jnp.float32)

    params = {
        "w1":  0.1 * jax.random.normal(ks[1], (C, C, 3, 3), dtype=jnp.float32),
        "g1":  1.0 + 0.1 * jax.random.normal(ks[2], (C,), dtype=jnp.float32),
        "be1": 0.1 * jax.random.normal(ks[3], (C,), dtype=jnp.float32),
        "m1":  0.1 * jax.random.normal(ks[4], (C,), dtype=jnp.float32),
        "v1":  1.0 + 0.1 * jax.nn.softplus(jax.random.normal(ks[5], (C,), dtype=jnp.float32)),
        "w2":  0.1 * jax.random.normal(ks[6], (C, C, 3, 3), dtype=jnp.float32),
        "g2":  1.0 + 0.1 * jax.random.normal(ks[7], (C,), dtype=jnp.float32),
        "be2": 0.1 * jax.random.normal(ks[8], (C,), dtype=jnp.float32),
        "m2":  0.1 * jax.random.normal(ks[9], (C,), dtype=jnp.float32),
        "v2":  1.0 + 0.1 * jax.nn.softplus(jax.random.normal(ks[10], (C,), dtype=jnp.float32)),
    }

    ref = jax.block_until_ready(_reference(x, params))

    # f32 MXU operands: tight check against the f32 reference
    out_f32 = jax.block_until_ready(
        basic_block_forward(x, params, compute_dtype=jnp.float32))
    assert out_f32.shape == (N, C, H, W)
    err_f32 = float(jnp.max(jnp.abs(out_f32 - ref)))
    assert err_f32 < 1e-3, f"f32 max abs diff = {err_f32}"

    # bf16 MXU operands + f32 accumulation/epilogue: the fast path
    out_bf16 = jax.block_until_ready(
        basic_block_forward(x, params, compute_dtype=jnp.bfloat16))
    err_bf16 = float(jnp.max(jnp.abs(out_bf16 - ref)))
    assert err_bf16 < 5e-2, f"bf16 max abs diff = {err_bf16}"

    print("KERNEL_OK")
</pallas_src>

<mosaic_0001>
module attributes {stable_mosaic.version = 11 : i64} {
  func.func @_basic_block_kernel(%arg0: i32, %arg1: i32, %arg2: memref<1x20x18x128xf32, #tpu.memory_space<vmem>>, %arg3: memref<9x128x128xf32, #tpu.memory_space<vmem>>, %arg4: memref<9x128x128xf32, #tpu.memory_space<vmem>>, %arg5: memref<4x128xf32, #tpu.memory_space<vmem>>, %arg6: memref<1x8x16x128xf32, #tpu.memory_space<vmem>>, %arg7: memref<10x18x128xf32, #tpu.memory_space<vmem>>) attributes {dimension_semantics = [#tpu.dimension_semantics<parallel>, #tpu.dimension_semantics<parallel>], iteration_bounds = array<i64: 2, 2>, scalar_prefetch = 0 : i64, scratch_operands = 1 : i64, tpu.core_type = #tpu.core_type<tc>, window_params = [{transform_indices = @transform_0, window_bounds = array<i64: 1, 20, 18, 128>}, {pipeline_mode = #tpu.pipeline_mode<synchronous>, transform_indices = @transform_1, window_bounds = array<i64: 9, 128, 128>}, {pipeline_mode = #tpu.pipeline_mode<synchronous>, transform_indices = @transform_2, window_bounds = array<i64: 9, 128, 128>}, {pipeline_mode = #tpu.pipeline_mode<synchronous>, transform_indices = @transform_3, window_bounds = array<i64: 4, 128>}, {transform_indices = @transform_4, window_bounds = array<i64: 1, 8, 16, 128>}]} {
    %c8_i32 = arith.constant 8 : i32
    %0 = arith.muli %arg1, %c8_i32 : i32
    %1 = tpu.assume_multiple %0, 8 : i32
    %c0 = arith.constant 0 : index
    %c0_0 = arith.constant 0 : index
    %2 = vector.load %arg5[%c0, %c0_0] : memref<4x128xf32, #tpu.memory_space<vmem>>, vector<1x128xf32>
    %c1 = arith.constant 1 : index
    %c0_1 = arith.constant 0 : index
    %3 = vector.load %arg5[%c1, %c0_1] : memref<4x128xf32, #tpu.memory_space<vmem>>, vector<1x128xf32>
    %c2 = arith.constant 2 : index
    %c0_2 = arith.constant 0 : index
    %4 = vector.load %arg5[%c2, %c0_2] : memref<4x128xf32, #tpu.memory_space<vmem>>, vector<1x128xf32>
    %c3 = arith.constant 3 : index
    %c0_3 = arith.constant 0 : index
    %5 = vector.load %arg5[%c3, %c0_3] : memref<4x128xf32, #tpu.memory_space<vmem>>, vector<1x128xf32>
    %cst = arith.constant 0.000000e+00 : f32
    %6 = vector.broadcast %cst : f32 to vector<160x128xf32>
    %c0_i32 = arith.constant 0 : i32
    %7 = arith.addi %1, %c0_i32 : i32
    %c0_i32_4 = arith.constant 0 : i32
    %c0_i32_5 = arith.constant 0 : i32
    %c0_i32_6 = arith.constant 0 : i32
    %c0_i32_7 = arith.constant 0 : i32
    %8 = tpu.memref_slice %arg2[%c0_i32_4, %c0_i32_5, %c0_i32_6, %c0_i32_7] : memref<1x20x18x128xf32, #tpu.memory_space<vmem>> -> memref<1x20x18x128xf32, #tpu.memory_space<vmem>>
    %9 = tpu.memref_squeeze %8 : memref<1x20x18x128xf32, #tpu.memory_space<vmem>> -> memref<20x18x128xf32, #tpu.memory_space<vmem>>
    %10 = arith.index_cast %7 : i32 to index
    %c0_8 = arith.constant 0 : index
    %c0_9 = arith.constant 0 : index
    %11 = vector.load %9[%10, %c0_8, %c0_9] : memref<20x18x128xf32, #tpu.memory_space<vmem>>, vector<10x18x128xf32>
    %12 = vector.extract_strided_slice %11 {offsets = [0, 0, 0], sizes = [10, 16, 128], strides = [1, 1, 1]} : vector<10x18x128xf32> to vector<10x16x128xf32>
    %13 = vector.shape_cast %12 : vector<10x16x128xf32> to vector<160x128xf32>
    %c0_10 = arith.constant 0 : index
    %c0_11 = arith.constant 0 : index
    %c0_12 = arith.constant 0 : index
    %14 = vector.load %arg3[%c0_10, %c0_11, %c0_12] : memref<9x128x128xf32, #tpu.memory_space<vmem>>, vector<1x128x128xf32>
    %15 = vector.shape_cast %14 : vector<1x128x128xf32> to vector<128x128xf32>
    %cst_13 = arith.constant dense<0.000000e+00> : vector<160x128xf32>
    %16 = tpu.matmul %13, %15, %cst_13 {dimension_numbers = #tpu.dot_dimension_numbers<[1], [0], [0], [1], [0, 0, 1, 1], [], []>} : vector<160x128xf32>, vector<128x128xf32>, vector<160x128xf32> -> vector<160x128xf32>
    %17 = arith.addf %6, %16 : vector<160x128xf32>
    %18 = vector.extract_strided_slice %11 {offsets = [0, 1, 0], sizes = [10, 16, 128], strides = [1, 1, 1]} : vector<10x18x128xf32> to vector<10x16x128xf32>
    %19 = vector.shape_cast %18 : vector<10x16x128xf32> to vector<160x128xf32>
    %c1_14 = arith.constant 1 : index
    %c0_15 = arith.constant 0 : index
    %c0_16 = arith.constant 0 : index
    %20 = vector.load %arg3[%c1_14, %c0_15, %c0_16] : memref<9x128x128xf32, #tpu.memory_space<vmem>>, vector<1x128x128xf32>
    %21 = vector.shape_cast %20 : vector<1x128x128xf32> to vector<128x128xf32>
    %cst_17 = arith.constant dense<0.000000e+00> : vector<160x128xf32>
    %22 = tpu.matmul %19, %21, %cst_17 {dimension_numbers = #tpu.dot_dimension_numbers<[1], [0], [0], [1], [0, 0, 1, 1], [], []>} : vector<160x128xf32>, vector<128x128xf32>, vector<160x128xf32> -> vector<160x128xf32>
    %23 = arith.addf %17, %22 : vector<160x128xf32>
    %24 = vector.extract_strided_slice %11 {offsets = [0, 2, 0], sizes = [10, 16, 128], strides = [1, 1, 1]} : vector<10x18x128xf32> to vector<10x16x128xf32>
    %25 = vector.shape_cast %24 : vector<10x16x128xf32> to vector<160x128xf32>
    %c2_18 = arith.constant 2 : index
    %c0_19 = arith.constant 0 : index
    %c0_20 = arith.constant 0 : index
    %26 = vector.load %arg3[%c2_18, %c0_19, %c0_20] : memref<9x128x128xf32, #tpu.memory_space<vmem>>, vector<1x128x128xf32>
    %27 = vector.shape_cast %26 : vector<1x128x128xf32> to vector<128x128xf32>
    %cst_21 = arith.constant dense<0.000000e+00> : vector<160x128xf32>
    %28 = tpu.matmul %25, %27, %cst_21 {dimension_numbers = #tpu.dot_dimension_numbers<[1], [0], [0], [1], [0, 0, 1, 1], [], []>} : vector<160x128xf32>, vector<128x128xf32>, vector<160x128xf32> -> vector<160x128xf32>
    %29 = arith.addf %23, %28 : vector<160x128xf32>
    %c1_i32 = arith.constant 1 : i32
    %30 = arith.addi %1, %c1_i32 : i32
    %c0_i32_22 = arith.constant 0 : i32
    %c0_i32_23 = arith.constant 0 : i32
    %c0_i32_24 = arith.constant 0 : i32
    %c0_i32_25 = arith.constant 0 : i32
    %31 = tpu.memref_slice %arg2[%c0_i32_22, %c0_i32_23, %c0_i32_24, %c0_i32_25] : memref<1x20x18x128xf32, #tpu.memory_space<vmem>> -> memref<1x20x18x128xf32, #tpu.memory_space<vmem>>
    %32 = tpu.memref_squeeze %31 : memref<1x20x18x128xf32, #tpu.memory_space<vmem>> -> memref<20x18x128xf32, #tpu.memory_space<vmem>>
    %33 = arith.index_cast %30 : i32 to index
    %c0_26 = arith.constant 0 : index
    %c0_27 = arith.constant 0 : index
    %34 = vector.load %32[%33, %c0_26, %c0_27] : memref<20x18x128xf32, #tpu.memory_space<vmem>>, vector<10x18x128xf32>
    %35 = vector.extract_strided_slice %34 {offsets = [0, 0, 0], sizes = [10, 16, 128], strides = [1, 1, 1]} : vector<10x18x128xf32> to vector<10x16x128xf32>
    %36 = vector.shape_cast %35 : vector<10x16x128xf32> to vector<160x128xf32>
    %c3_28 = arith.constant 3 : index
    %c0_29 = arith.constant 0 : index
    %c0_30 = arith.constant 0 : index
    %37 = vector.load %arg3[%c3_28, %c0_29, %c0_30] : memref<9x128x128xf32, #tpu.memory_space<vmem>>, vector<1x128x128xf32>
    %38 = vector.shape_cast %37 : vector<1x128x128xf32> to vector<128x128xf32>
    %cst_31 = arith.constant dense<0.000000e+00> : vector<160x128xf32>
    %39 = tpu.matmul %36, %38, %cst_31 {dimension_numbers = #tpu.dot_dimension_numbers<[1], [0], [0], [1], [0, 0, 1, 1], [], []>} : vector<160x128xf32>, vector<128x128xf32>, vector<160x128xf32> -> vector<160x128xf32>
    %40 = arith.addf %29, %39 : vector<160x128xf32>
    %41 = vector.extract_strided_slice %34 {offsets = [0, 1, 0], sizes = [10, 16, 128], strides = [1, 1, 1]} : vector<10x18x128xf32> to vector<10x16x128xf32>
    %42 = vector.shape_cast %41 : vector<10x16x128xf32> to vector<160x128xf32>
    %c4 = arith.constant 4 : index
    %c0_32 = arith.constant 0 : index
    %c0_33 = arith.constant 0 : index
    %43 = vector.load %arg3[%c4, %c0_32, %c0_33] : memref<9x128x128xf32, #tpu.memory_space<vmem>>, vector<1x128x128xf32>
    %44 = vector.shape_cast %43 : vector<1x128x128xf32> to vector<128x128xf32>
    %cst_34 = arith.constant dense<0.000000e+00> : vector<160x128xf32>
    %45 = tpu.matmul %42, %44, %cst_34 {dimension_numbers = #tpu.dot_dimension_numbers<[1], [0], [0], [1], [0, 0, 1, 1], [], []>} : vector<160x128xf32>, vector<128x128xf32>, vector<160x128xf32> -> vector<160x128xf32>
    %46 = arith.addf %40, %45 : vector<160x128xf32>
    %47 = vector.extract_strided_slice %34 {offsets = [0, 2, 0], sizes = [10, 16, 128], strides = [1, 1, 1]} : vector<10x18x128xf32> to vector<10x16x128xf32>
    %48 = vector.shape_cast %47 : vector<10x16x128xf32> to vector<160x128xf32>
    %c5 = arith.constant 5 : index
    %c0_35 = arith.constant 0 : index
    %c0_36 = arith.constant 0 : index
    %49 = vector.load %arg3[%c5, %c0_35, %c0_36] : memref<9x128x128xf32, #tpu.memory_space<vmem>>, vector<1x128x128xf32>
    %50 = vector.shape_cast %49 : vector<1x128x128xf32> to vector<128x128xf32>
    %cst_37 = arith.constant dense<0.000000e+00> : vector<160x128xf32>
    %51 = tpu.matmul %48, %50, %cst_37 {dimension_numbers = #tpu.dot_dimension_numbers<[1], [0], [0], [1], [0, 0, 1, 1], [], []>} : vector<160x128xf32>, vector<128x128xf32>, vector<160x128xf32> -> vector<160x128xf32>
    %52 = arith.addf %46, %51 : vector<160x128xf32>
    %c2_i32 = arith.constant 2 : i32
    %53 = arith.addi %1, %c2_i32 : i32
    %c0_i32_38 = arith.constant 0 : i32
    %c0_i32_39 = arith.constant 0 : i32
    %c0_i32_40 = arith.constant 0 : i32
    %c0_i32_41 = arith.constant 0 : i32
    %54 = tpu.memref_slice %arg2[%c0_i32_38, %c0_i32_39, %c0_i32_40, %c0_i32_41] : memref<1x20x18x128xf32, #tpu.memory_space<vmem>> -> memref<1x20x18x128xf32, #tpu.memory_space<vmem>>
    %55 = tpu.memref_squeeze %54 : memref<1x20x18x128xf32, #tpu.memory_space<vmem>> -> memref<20x18x128xf32, #tpu.memory_space<vmem>>
    %56 = arith.index_cast %53 : i32 to index
    %c0_42 = arith.constant 0 : index
    %c0_43 = arith.constant 0 : index
    %57 = vector.load %55[%56, %c0_42, %c0_43] : memref<20x18x128xf32, #tpu.memory_space<vmem>>, vector<10x18x128xf32>
    %58 = vector.extract_strided_slice %57 {offsets = [0, 0, 0], sizes = [10, 16, 128], strides = [1, 1, 1]} : vector<10x18x128xf32> to vector<10x16x128xf32>
    %59 = vector.shape_cast %58 : vector<10x16x128xf32> to vector<160x128xf32>
    %c6 = arith.constant 6 : index
    %c0_44 = arith.constant 0 : index
    %c0_45 = arith.constant 0 : index
    %60 = vector.load %arg3[%c6, %c0_44, %c0_45] : memref<9x128x128xf32, #tpu.memory_space<vmem>>, vector<1x128x128xf32>
    %61 = vector.shape_cast %60 : vector<1x128x128xf32> to vector<128x128xf32>
    %cst_46 = arith.constant dense<0.000000e+00> : vector<160x128xf32>
    %62 = tpu.matmul %59, %61, %cst_46 {dimension_numbers = #tpu.dot_dimension_numbers<[1], [0], [0], [1], [0, 0, 1, 1], [], []>} : vector<160x128xf32>, vector<128x128xf32>, vector<160x128xf32> -> vector<160x128xf32>
    %63 = arith.addf %52, %62 : vector<160x128xf32>
    %64 = vector.extract_strided_slice %57 {offsets = [0, 1, 0], sizes = [10, 16, 128], strides = [1, 1, 1]} : vector<10x18x128xf32> to vector<10x16x128xf32>
    %65 = vector.shape_cast %64 : vector<10x16x128xf32> to vector<160x128xf32>
    %c7 = arith.constant 7 : index
    %c0_47 = arith.constant 0 : index
    %c0_48 = arith.constant 0 : index
    %66 = vector.load %arg3[%c7, %c0_47, %c0_48] : memref<9x128x128xf32, #tpu.memory_space<vmem>>, vector<1x128x128xf32>
    %67 = vector.shape_cast %66 : vector<1x128x128xf32> to vector<128x128xf32>
    %cst_49 = arith.constant dense<0.000000e+00> : vector<160x128xf32>
    %68 = tpu.matmul %65, %67, %cst_49 {dimension_numbers = #tpu.dot_dimension_numbers<[1], [0], [0], [1], [0, 0, 1, 1], [], []>} : vector<160x128xf32>, vector<128x128xf32>, vector<160x128xf32> -> vector<160x128xf32>
    %69 = arith.addf %63, %68 : vector<160x128xf32>
    %70 = vector.extract_strided_slice %57 {offsets = [0, 2, 0], sizes = [10, 16, 128], strides = [1, 1, 1]} : vector<10x18x128xf32> to vector<10x16x128xf32>
    %71 = vector.shape_cast %70 : vector<10x16x128xf32> to vector<160x128xf32>
    %c8 = arith.constant 8 : index
    %c0_50 = arith.constant 0 : index
    %c0_51 = arith.constant 0 : index
    %72 = vector.load %arg3[%c8, %c0_50, %c0_51] : memref<9x128x128xf32, #tpu.memory_space<vmem>>, vector<1x128x128xf32>
    %73 = vector.shape_cast %72 : vector<1x128x128xf32> to vector<128x128xf32>
    %cst_52 = arith.constant dense<0.000000e+00> : vector<160x128xf32>
    %74 = tpu.matmul %71, %73, %cst_52 {dimension_numbers = #tpu.dot_dimension_numbers<[1], [0], [0], [1], [0, 0, 1, 1], [], []>} : vector<160x128xf32>, vector<128x128xf32>, vector<160x128xf32> -> vector<160x128xf32>
    %75 = arith.addf %69, %74 : vector<160x128xf32>
    %76 = vector.broadcast %2 : vector<1x128xf32> to vector<160x128xf32>
    %77 = arith.mulf %75, %76 : vector<160x128xf32>
    %78 = vector.broadcast %3 : vector<1x128xf32> to vector<160x128xf32>
    %79 = arith.addf %77, %78 : vector<160x128xf32>
    %cst_53 = arith.constant 0.000000e+00 : f32
    %80 = vector.broadcast %cst_53 : f32 to vector<160x128xf32>
    %81 = arith.maximumf %79, %80 : vector<160x128xf32>
    %82 = vector.shape_cast %81 : vector<160x128xf32> to vector<10x16x128xf32>
    %c8_i32_54 = arith.constant 8 : i32
    %83 = arith.muli %arg1, %c8_i32_54 : i32
    %c1_i32_55 = arith.constant 1 : i32
    %84 = arith.subi %83, %c1_i32_55 : i32
    %85 = tpu.iota {dimensions = array<i32: 0>} : vector<10x1x1xi32>
    %86 = vector.broadcast %84 : i32 to vector<10x1x1xi32>
    %87 = arith.addi %86, %85 : vector<10x1x1xi32>
    %c0_i32_56 = arith.constant 0 : i32
    %88 = vector.broadcast %c0_i32_56 : i32 to vector<10x1x1xi32>
    %89 = arith.cmpi sge, %87, %88 : vector<10x1x1xi32>
    %c16_i32 = arith.constant 16 : i32
    %90 = vector.broadcast %c16_i32 : i32 to vector<10x1x1xi32>
    %91 = arith.cmpi slt, %87, %90 : vector<10x1x1xi32>
    %92 = arith.andi %89, %91 : vector<10x1x1xi1>
    %cst_57 = arith.constant 0.000000e+00 : f32
    %93 = vector.shape_cast %92 : vector<10x1x1xi1> to vector<10x1x1xi1>
    %94 = vector.broadcast %93 : vector<10x1x1xi1> to vector<10x16x128xi1>
    %95 = vector.broadcast %cst_57 : f32 to vector<10x16x128xf32>
    %96 = arith.select %94, %82, %95 : vector<10x16x128xi1>, vector<10x16x128xf32>
    %cst_58 = arith.constant 0.000000e+00 : f32
    %97 = vector.broadcast %cst_58 : f32 to vector<10x18x128xf32>
    %c0_59 = arith.constant 0 : index
    %c0_60 = arith.constant 0 : index
    %c0_61 = arith.constant 0 : index
    %98 = vector.load %arg7[%c0_59, %c0_60, %c0_61] : memref<10x18x128xf32, #tpu.memory_space<vmem>>, vector<10x18x128xf32>
    tpu.vector_store %arg7[%c0_59, %c0_60, %c0_61], %97 {strides = array<i32>} : memref<10x18x128xf32, #tpu.memory_space<vmem>>, vector<10x18x128xf32>,
    %c0_62 = arith.constant 0 : index
    %c1_63 = arith.constant 1 : index
    %c0_64 = arith.constant 0 : index
    %99 = vector.load %arg7[%c0_62, %c1_63, %c0_64] : memref<10x18x128xf32, #tpu.memory_space<vmem>>, vector<10x16x128xf32>
    tpu.vector_store %arg7[%c0_62, %c1_63, %c0_64], %96 {strides = array<i32>} : memref<10x18x128xf32, #tpu.memory_space<vmem>>, vector<10x16x128xf32>,
    %cst_65 = arith.constant 0.000000e+00 : f32
    %100 = vector.broadcast %cst_65 : f32 to vector<128x128xf32>
    %c0_66 = arith.constant 0 : index
    %c0_67 = arith.constant 0 : index
    %c0_68 = arith.constant 0 : index
    %101 = vector.load %arg7[%c0_66, %c0_67, %c0_68] : memref<10x18x128xf32, #tpu.memory_space<vmem>>, vector<8x16x128xf32>
    %102 = vector.shape_cast %101 : vector<8x16x128xf32> to vector<128x128xf32>
    %c0_69 = arith.constant 0 : index
    %c0_70 = arith.constant 0 : index
    %c0_71 = arith.constant 0 : index
    %103 = vector.load %arg4[%c0_69, %c0_70, %c0_71] : memref<9x128x128xf32, #tpu.memory_space<vmem>>, vector<1x128x128xf32>
    %104 = vector.shape_cast %103 : vector<1x128x128xf32> to vector<128x128xf32>
    %cst_72 = arith.constant dense<0.000000e+00> : vector<128x128xf32>
    %105 = tpu.matmul %102, %104, %cst_72 {dimension_numbers = #tpu.dot_dimension_numbers<[1], [0], [0], [1], [0, 0, 1, 1], [], []>} : vector<128x128xf32>, vector<128x128xf32>, vector<128x128xf32> -> vector<128x128xf32>
    %106 = arith.addf %100, %105 : vector<128x128xf32>
    %c0_73 = arith.constant 0 : index
    %c1_74 = arith.constant 1 : index
    %c0_75 = arith.constant 0 : index
    %107 = vector.load %arg7[%c0_73, %c1_74, %c0_75] : memref<10x18x128xf32, #tpu.memory_space<vmem>>, vector<8x16x128xf32>
    %108 = vector.shape_cast %107 : vector<8x16x128xf32> to vector<128x128xf32>
    %c1_76 = arith.constant 1 : index
    %c0_77 = arith.constant 0 : index
    %c0_78 = arith.constant 0 : index
    %109 = vector.load %arg4[%c1_76, %c0_77, %c0_78] : memref<9x128x128xf32, #tpu.memory_space<vmem>>, vector<1x128x128xf32>
    %110 = vector.shape_cast %109 : vector<1x128x128xf32> to vector<128x128xf32>
    %cst_79 = arith.constant dense<0.000000e+00> : vector<128x128xf32>
    %111 = tpu.matmul %108, %110, %cst_79 {dimension_numbers = #tpu.dot_dimension_numbers<[1], [0], [0], [1], [0, 0, 1, 1], [], []>} : vector<128x128xf32>, vector<128x128xf32>, vector<128x128xf32> -> vector<128x128xf32>
    %112 = arith.addf %106, %111 : vector<128x128xf32>
    %c0_80 = arith.constant 0 : index
    %c2_81 = arith.constant 2 : index
    %c0_82 = arith.constant 0 : index
    %113 = vector.load %arg7[%c0_80, %c2_81, %c0_82] : memref<10x18x128xf32, #tpu.memory_space<vmem>>, vector<8x16x128xf32>
    %114 = vector.shape_cast %113 : vector<8x16x128xf32> to vector<128x128xf32>
    %c2_83 = arith.constant 2 : index
    %c0_84 = arith.constant 0 : index
    %c0_85 = arith.constant 0 : index
    %115 = vector.load %arg4[%c2_83, %c0_84, %c0_85] : memref<9x128x128xf32, #tpu.memory_space<vmem>>, vector<1x128x128xf32>
    %116 = vector.shape_cast %115 : vector<1x128x128xf32> to vector<128x128xf32>
    %cst_86 = arith.constant dense<0.000000e+00> : vector<128x128xf32>
    %117 = tpu.matmul %114, %116, %cst_86 {dimension_numbers = #tpu.dot_dimension_numbers<[1], [0], [0], [1], [0, 0, 1, 1], [], []>} : vector<128x128xf32>, vector<128x128xf32>, vector<128x128xf32> -> vector<128x128xf32>
    %118 = arith.addf %112, %117 : vector<128x128xf32>
    %c1_87 = arith.constant 1 : index
    %c0_88 = arith.constant 0 : index
    %c0_89 = arith.constant 0 : index
    %119 = vector.load %arg7[%c1_87, %c0_88, %c0_89] : memref<10x18x128xf32, #tpu.memory_space<vmem>>, vector<8x16x128xf32>
    %120 = vector.shape_cast %119 : vector<8x16x128xf32> to vector<128x128xf32>
    %c3_90 = arith.constant 3 : index
    %c0_91 = arith.constant 0 : index
    %c0_92 = arith.constant 0 : index
    %121 = vector.load %arg4[%c3_90, %c0_91, %c0_92] : memref<9x128x128xf32, #tpu.memory_space<vmem>>, vector<1x128x128xf32>
    %122 = vector.shape_cast %121 : vector<1x128x128xf32> to vector<128x128xf32>
    %cst_93 = arith.constant dense<0.000000e+00> : vector<128x128xf32>
    %123 = tpu.matmul %120, %122, %cst_93 {dimension_numbers = #tpu.dot_dimension_numbers<[1], [0], [0], [1], [0, 0, 1, 1], [], []>} : vector<128x128xf32>, vector<128x128xf32>, vector<128x128xf32> -> vector<128x128xf32>
    %124 = arith.addf %118, %123 : vector<128x128xf32>
    %c1_94 = arith.constant 1 : index
    %c1_95 = arith.constant 1 : index
    %c0_96 = arith.constant 0 : index
    %125 = vector.load %arg7[%c1_94, %c1_95, %c0_96] : memref<10x18x128xf32, #tpu.memory_space<vmem>>, vector<8x16x128xf32>
    %126 = vector.shape_cast %125 : vector<8x16x128xf32> to vector<128x128xf32>
    %c4_97 = arith.constant 4 : index
    %c0_98 = arith.constant 0 : index
    %c0_99 = arith.constant 0 : index
    %127 = vector.load %arg4[%c4_97, %c0_98, %c0_99] : memref<9x128x128xf32, #tpu.memory_space<vmem>>, vector<1x128x128xf32>
    %128 = vector.shape_cast %127 : vector<1x128x128xf32> to vector<128x128xf32>
    %cst_100 = arith.constant dense<0.000000e+00> : vector<128x128xf32>
    %129 = tpu.matmul %126, %128, %cst_100 {dimension_numbers = #tpu.dot_dimension_numbers<[1], [0], [0], [1], [0, 0, 1, 1], [], []>} : vector<128x128xf32>, vector<128x128xf32>, vector<128x128xf32> -> vector<128x128xf32>
    %130 = arith.addf %124, %129 : vector<128x128xf32>
    %c1_101 = arith.constant 1 : index
    %c2_102 = arith.constant 2 : index
    %c0_103 = arith.constant 0 : index
    %131 = vector.load %arg7[%c1_101, %c2_102, %c0_103] : memref<10x18x128xf32, #tpu.memory_space<vmem>>, vector<8x16x128xf32>
    %132 = vector.shape_cast %131 : vector<8x16x128xf32> to vector<128x128xf32>
    %c5_104 = arith.constant 5 : index
    %c0_105 = arith.constant 0 : index
    %c0_106 = arith.constant 0 : index
    %133 = vector.load %arg4[%c5_104, %c0_105, %c0_106] : memref<9x128x128xf32, #tpu.memory_space<vmem>>, vector<1x128x128xf32>
    %134 = vector.shape_cast %133 : vector<1x128x128xf32> to vector<128x128xf32>
    %cst_107 = arith.constant dense<0.000000e+00> : vector<128x128xf32>
    %135 = tpu.matmul %132, %134, %cst_107 {dimension_numbers = #tpu.dot_dimension_numbers<[1], [0], [0], [1], [0, 0, 1, 1], [], []>} : vector<128x128xf32>, vector<128x128xf32>, vector<128x128xf32> -> vector<128x128xf32>
    %136 = arith.addf %130, %135 : vector<128x128xf32>
    %c2_108 = arith.constant 2 : index
    %c0_109 = arith.constant 0 : index
    %c0_110 = arith.constant 0 : index
    %137 = vector.load %arg7[%c2_108, %c0_109, %c0_110] : memref<10x18x128xf32, #tpu.memory_space<vmem>>, vector<8x16x128xf32>
    %138 = vector.shape_cast %137 : vector<8x16x128xf32> to vector<128x128xf32>
    %c6_111 = arith.constant 6 : index
    %c0_112 = arith.constant 0 : index
    %c0_113 = arith.constant 0 : index
    %139 = vector.load %arg4[%c6_111, %c0_112, %c0_113] : memref<9x128x128xf32, #tpu.memory_space<vmem>>, vector<1x128x128xf32>
    %140 = vector.shape_cast %139 : vector<1x128x128xf32> to vector<128x128xf32>
    %cst_114 = arith.constant dense<0.000000e+00> : vector<128x128xf32>
    %141 = tpu.matmul %138, %140, %cst_114 {dimension_numbers = #tpu.dot_dimension_numbers<[1], [0], [0], [1], [0, 0, 1, 1], [], []>} : vector<128x128xf32>, vector<128x128xf32>, vector<128x128xf32> -> vector<128x128xf32>
    %142 = arith.addf %136, %141 : vector<128x128xf32>
    %c2_115 = arith.constant 2 : index
    %c1_116 = arith.constant 1 : index
    %c0_117 = arith.constant 0 : index
    %143 = vector.load %arg7[%c2_115, %c1_116, %c0_117] : memref<10x18x128xf32, #tpu.memory_space<vmem>>, vector<8x16x128xf32>
    %144 = vector.shape_cast %143 : vector<8x16x128xf32> to vector<128x128xf32>
    %c7_118 = arith.constant 7 : index
    %c0_119 = arith.constant 0 : index
    %c0_120 = arith.constant 0 : index
    %145 = vector.load %arg4[%c7_118, %c0_119, %c0_120] : memref<9x128x128xf32, #tpu.memory_space<vmem>>, vector<1x128x128xf32>
    %146 = vector.shape_cast %145 : vector<1x128x128xf32> to vector<128x128xf32>
    %cst_121 = arith.constant dense<0.000000e+00> : vector<128x128xf32>
    %147 = tpu.matmul %144, %146, %cst_121 {dimension_numbers = #tpu.dot_dimension_numbers<[1], [0], [0], [1], [0, 0, 1, 1], [], []>} : vector<128x128xf32>, vector<128x128xf32>, vector<128x128xf32> -> vector<128x128xf32>
    %148 = arith.addf %142, %147 : vector<128x128xf32>
    %c2_122 = arith.constant 2 : index
    %c2_123 = arith.constant 2 : index
    %c0_124 = arith.constant 0 : index
    %149 = vector.load %arg7[%c2_122, %c2_123, %c0_124] : memref<10x18x128xf32, #tpu.memory_space<vmem>>, vector<8x16x128xf32>
    %150 = vector.shape_cast %149 : vector<8x16x128xf32> to vector<128x128xf32>
    %c8_125 = arith.constant 8 : index
    %c0_126 = arith.constant 0 : index
    %c0_127 = arith.constant 0 : index
    %151 = vector.load %arg4[%c8_125, %c0_126, %c0_127] : memref<9x128x128xf32, #tpu.memory_space<vmem>>, vector<1x128x128xf32>
    %152 = vector.shape_cast %151 : vector<1x128x128xf32> to vector<128x128xf32>
    %cst_128 = arith.constant dense<0.000000e+00> : vector<128x128xf32>
    %153 = tpu.matmul %150, %152, %cst_128 {dimension_numbers = #tpu.dot_dimension_numbers<[1], [0], [0], [1], [0, 0, 1, 1], [], []>} : vector<128x128xf32>, vector<128x128xf32>, vector<128x128xf32> -> vector<128x128xf32>
    %154 = arith.addf %148, %153 : vector<128x128xf32>
    %c2_i32_129 = arith.constant 2 : i32
    %155 = arith.addi %1, %c2_i32_129 : i32
    %c0_i32_130 = arith.constant 0 : i32
    %c0_i32_131 = arith.constant 0 : i32
    %c0_i32_132 = arith.constant 0 : i32
    %c0_i32_133 = arith.constant 0 : i32
    %156 = tpu.memref_slice %arg2[%c0_i32_130, %c0_i32_131, %c0_i32_132, %c0_i32_133] : memref<1x20x18x128xf32, #tpu.memory_space<vmem>> -> memref<1x20x18x128xf32, #tpu.memory_space<vmem>>
    %157 = tpu.memref_squeeze %156 : memref<1x20x18x128xf32, #tpu.memory_space<vmem>> -> memref<20x18x128xf32, #tpu.memory_space<vmem>>
    %158 = arith.index_cast %155 : i32 to index
    %c0_134 = arith.constant 0 : index
    %c0_135 = arith.constant 0 : index
    %159 = vector.load %157[%158, %c0_134, %c0_135] : memref<20x18x128xf32, #tpu.memory_space<vmem>>, vector<8x18x128xf32>
    %160 = vector.extract_strided_slice %159 {offsets = [0, 1, 0], sizes = [8, 16, 128], strides = [1, 1, 1]} : vector<8x18x128xf32> to vector<8x16x128xf32>
    %161 = vector.broadcast %4 : vector<1x128xf32> to vector<128x128xf32>
    %162 = arith.mulf %154, %161 : vector<128x128xf32>
    %163 = vector.broadcast %5 : vector<1x128xf32> to vector<128x128xf32>
    %164 = arith.addf %162, %163 : vector<128x128xf32>
    %165 = vector.shape_cast %160 : vector<8x16x128xf32> to vector<128x128xf32>
    %166 = arith.addf %164, %165 : vector<128x128xf32>
    %cst_136 = arith.constant 0.000000e+00 : f32
    %167 = vector.broadcast %cst_136 : f32 to vector<128x128xf32>
    %168 = arith.maximumf %166, %167 : vector<128x128xf32>
    %169 = vector.shape_cast %168 : vector<128x128xf32> to vector<8x16x128xf32>
    %c0_137 = arith.constant 0 : index
    %c0_138 = arith.constant 0 : index
    %c0_139 = arith.constant 0 : index
    %c0_140 = arith.constant 0 : index
    %170 = vector.load %arg6[%c0_137, %c0_138, %c0_139, %c0_140] : memref<1x8x16x128xf32, #tpu.memory_space<vmem>>, vector<1x8x16x128xf32>
    %171 = vector.shape_cast %170 : vector<1x8x16x128xf32> to vector<8x16x128xf32>
    %172 = vector.shape_cast %169 : vector<8x16x128xf32> to vector<1x8x16x128xf32>
    tpu.vector_store %arg6[%c0_137, %c0_138, %c0_139, %c0_140], %172 {strides = array<i32>} : memref<1x8x16x128xf32, #tpu.memory_space<vmem>>, vector<1x8x16x128xf32>,
    return
  }
  func.func @transform_0(%arg0: i32, %arg1: i32) -> (i32, i32, i32, i32) {
    %c0_i32 = arith.constant 0 : i32
    %c0_i32_0 = arith.constant 0 : i32
    %c0_i32_1 = arith.constant 0 : i32
    %c0_i32_2 = arith.constant 0 : i32
    return %arg0, %c0_i32, %c0_i32_0, %c0_i32_1 : i32, i32, i32, i32
  }
  func.func @transform_1(%arg0: i32, %arg1: i32) -> (i32, i32, i32) {
    %c0_i32 = arith.constant 0 : i32
    %c0_i32_0 = arith.constant 0 : i32
    %c0_i32_1 = arith.constant 0 : i32
    %c0_i32_2 = arith.constant 0 : i32
    return %c0_i32, %c0_i32_0, %c0_i32_1 : i32, i32, i32
  }
  func.func @transform_2(%arg0: i32, %arg1: i32) -> (i32, i32, i32) {
    %c0_i32 = arith.constant 0 : i32
    %c0_i32_0 = arith.constant 0 : i32
    %c0_i32_1 = arith.constant 0 : i32
    %c0_i32_2 = arith.constant 0 : i32
    return %c0_i32, %c0_i32_0, %c0_i32_1 : i32, i32, i32
  }
  func.func @transform_3(%arg0: i32, %arg1: i32) -> (i32, i32) {
    %c0_i32 = arith.constant 0 : i32
    %c0_i32_0 = arith.constant 0 : i32
    %c0_i32_1 = arith.constant 0 : i32
    return %c0_i32, %c0_i32_0 : i32, i32
  }
  func.func @transform_4(%arg0: i32, %arg1: i32) -> (i32, i32, i32, i32) {
    %c0_i32 = arith.constant 0 : i32
    %c0_i32_0 = arith.constant 0 : i32
    %c0_i32_1 = arith.constant 0 : i32
    return %arg0, %arg1, %c0_i32, %c0_i32_0 : i32, i32, i32, i32
  }
}

</mosaic_0001>

<bundles_post_ra>
// kernel: tpu_custom_call.1
= control target key start
LH: loop header
LB: loop body
LE: loop exit
PB: predicated region body
PF: predicated region fallthrough
CT: control target
= control target key end

     0   :  { %9 = vsyncpa [#allocation4], 0  ;;  %s9866_s0 = inlined_call_operand.vmem [shape: f32[2,20,18,128], index: 0, kind: input, shape index: {}]   ;;  %s9867_s1 = inlined_call_operand.vmem [shape: f32[9,128,128], index: 1, kind: input, shape index: {}]   ;;  %s9868_s2 = inlined_call_operand.hbm [shape: f32[9,128,128], index: 2, kind: input, shape index: {}]   ;;  %s9869_s3 = inlined_call_operand.vmem [shape: f32[4,128], index: 3, kind: input, shape index: {}]   ;;  %s9870_s4 = inlined_call_operand.hbm [shape: f32[2,16,16,128], index: 4, kind: output, shape index: {}]  }
   0x1   :  { %10 = vsyncpa [#allocation5], 0 }
   0x2   :  { %12 = vsyncpa [#allocation5 + $0x1], 0  ;;  %s7912_s15 = smov 0   ;;  %s7914_s16 = smov 0  }
   0x3   :  { %s7916_s17 = smov 0   ;;  %s7918_s18 = smov 0  }
   0x4   :  { %s7920_s19 = smov 0   ;;  %s7922_s20 = smov 0  }
   0x5   :  { %s7924_s21 = smov 0   ;;  %s7926_s22 = smov 0  }
   0x6 LB: > { %s4839_s23 = sadd.s32 4294967295, %s7878_s22   ;;  %s4840_s24 = sadd.s32 4294967294, %s7878_s22   ;;  %s7878_s22 = sphi %s7926_s22, %s18_s22   ;;  %s7874_s21 = sphi %s7924_s21, %s9978_s21   ;;  %s7870_s20 = sphi %s7922_s20, %s9977_s20   ;;  %s7866_s19 = sphi %s7920_s19, %s9976_s19   ;;  %s7862_s18 = sphi %s7918_s18, %s9975_s18   ;;  %s7858_s17 = sphi %s7916_s17, %s9974_s17   ;;  %s7854_s16 = sphi %s7914_s16, %s9973_s16   ;;  %s7850_s15 = sphi %s7912_s15, %s9972_s15  }
   0x7   : > { %s27_s25 = sadd.s32 1, %s7870_s20  ;;  %s30_s26 = sadd.s32 1, %s7874_s21 }
   0x8   : > { %p28_p0 = scmp.ge.s32.totalorder %s27_s25, 2  ;;  %s128_s27 = sadd.s32 1, %s7858_s17 }
   0x9   : > { %p138_p1 = scmp.ne.s32.totalorder %s7858_s17, %s7854_s16  ;;  %p139_p2 = scmp.eq.s32.totalorder %s4839_s23, 3 }
   0xa   : > { %s9980_s25 = smov (%p28_p0, %s27_s25), 0  ;;  %s9982_s26 = smov (!%p28_p0, %s30_s26), %s7874_s21 }
   0xb   : > { %s124_s28 = ssub.s32 %s7870_s20, %s9980_s25  ;;  %p7964_p3 = por %p139_p2, %p138_p1 }
   0xc   : > { %p32_p4 = scmp.ge.s32.totalorder %s9982_s26, 2  ;;  %p144_p5 = scmp.ne.s32.totalorder %s7854_s16, %s7850_s15 }
   0xd   : > { %s9905_s29 = scalar_select %p7964_p3, 1, 0 }
   0xe   : > { %p145_p6 = scmp.eq.s32.totalorder %s4840_s24, 3  ;;  %p4841_p7 = scmp.ge.s32.totalorder %s7878_s22, 1 }
   0xf   : > { %s9984_s26 = smov (%p32_p4, %s9982_s26), 0  ;;  %p152_p9 = scmp.lt.s32.totalorder %s7878_s22, 5 }
  0x10   : > { %p7973_p8 = por %p145_p6, %p144_p5  ;;  %s123_s5 = ssub.s32 %s7874_s21, %s9984_s26 }
  0x11   : > { %s125_s6 = sor.u32 %s124_s28, %s123_s5  ;;  %p7980_p10 = pnand %p4841_p7, %p152_p9 }
  0x12   : > { %s9906_s30 = scalar_select %p7973_p8, 1, 0 }
  0x13   : > { %s9907_s7 = scalar_select %p7980_p10, 1, 0 }
  0x14   : > { %p126_p11 = scmp.eq.s32.totalorder %s125_s6, 0  ;;  %p7984_p12 = scmp.eq.s32.totalorder %s4839_s23, 0 }
  0x15   : > { %p7640_p13 = pneg %p7980_p10  ;;  %s7880_s10 = smov [#allocation3]  }
  0x16   : > { %s9908_s8 = scalar_select %p7984_p12, 1, 0 }
  0x17   : > { %s7991_s9 = scalar_select %p126_p11, %s7858_s17, %s128_s27  }
  0x18   : > { %s167_s11 = sshll.u32 %s7880_s10, 4  ;;  %p7995_p0 = pnand %p7984_p12, %p7640_p13  ;;  %s168_s11 = int_to_ptr.vmem [resolvable:$true] %s167_s11 }
  0x19   : > { %s7752_s23 = scalar_lea.hbm %s9868_s2, 18432 }
  0x1a   : > { %p7753_p1 = scmp.ne.s32.totalorder %s9868_s2, %s7752_s23  ;;  %p7754_p2 = pneg %p7995_p0 }
  0x1b   : > { %p7759_p6 = scmp.lt.u32.totalorder %s7752_s23, %s9868_s2 }
  0x1c   : > { %p7755_p4 = pnand %p7754_p2, %p7753_p1 }
  0x1e   : > { %p7756_p5 = pneg %p7755_p4 }
  0x20   : > { %p7761_p7 = pnand %p7759_p6, %p7756_p5 }
  0x22   : > { %7764 = shalt.err (!%p7761_p7)
}
  0x23   : > { %s7765_s6 = scalar_lea.vmem %s168_s11, 18432  ;;  %p7773_p8 = scmp.lt.s32.totalorder %s168_s11, %s168_s11 }
  0x24   : > { %p7766_p9 = scmp.ne.s32.totalorder %s168_s11, %s7765_s6  ;;  %p7774_p3 = scmp.lt.s32.totalorder %s7765_s6, %s7765_s6 }
  0x26   : > { %p7768_p11 = pnand %p7766_p9, %p7754_p2  ;;  %p7775_p12 = por %p7774_p3, %p7773_p8 }
  0x28   : > { %p7769_p13 = pneg %p7768_p11 }
  0x2a   : > { %p7776_p10 = pnand %p7775_p12, %p7769_p13 }
  0x2c   : > { %7779 = shalt.err (!%p7776_p10)
}
  0x2d   : > { %s7881_s10 = smov 128   ;;  %s7882_s13 = smov 8  }
  0x2e   : > { %7643 = dma.hbm_to_vmem [thread:$0]  (!%p7995_p0), %s9868_s2, 18432, %s168_s11, [#allocation4], %s7881_s10, %s7881_s10, %s7882_s13  }
  0x2f   : > { %p9910_p1 = scmp.ne.s32.totalorder %s9907_s7, 0 }
  0x31   : > { %194 = sbr.rel (%p9910_p1) target bundleno = 1154 (0x482), region = 36 }
  0x38   : > { %p9911_p4 = scmp.ne.s32.totalorder %s9908_s8, 0 }
  0x3a   : > { %7841 = dma.done.wait (%p9911_p4), [#allocation4], 18432  }
  0x3b   : > { %7843 = vsyncadd (%p9911_p4), [#allocation4], 4294948864  ;;  %p220_p3 = scmp.lt.s32.totalorder %s7866_s19, 1  ;;  %s4849_s12 = smul.u32 192, %s7862_s18  ;;  %v4850_v0 = vld [vmem:[%s9867_s1 + $0x80] sm:$0xff]  ;;  %v4851_v1 = vld [vmem:[%s9867_s1 + $0x88] sm:$0xff] }
  0x3c   : > { %v4852_v2 = vld [vmem:[%s9867_s1 + $0x90] sm:$0xff]  ;;  %v6753_v3 = vpack.c.bf16 %v4851_v1, %v4850_v0  ;;  %v4853_v4 = vld [vmem:[%s9867_s1 + $0x98] sm:$0xff]  ;;  %v4854_v6 = vld [vmem:[%s9867_s1 + $0xa0] sm:$0xff]  ;;  %vm309_vm0 = vcmask 1046528   ;;  %vm727_vm1 = vcmask 1045504   ;;  %s4848_s10 = sshll.u32 %s7862_s18, 3 }
  0x3d   : > { %s221_s23 = scalar_select %p220_p3, %s7866_s19, 1  ;;  %v6757_v5 = vpack.c.bf16 %v4853_v4, %v4852_v2  ;;  %v4855_v7 = vld [vmem:[%s9867_s1 + $0xa8] sm:$0xff]  ;;  %v4856_v11 = vld [vmem:[%s9867_s1 + $0xb0] sm:$0xff]  ;;  %v4857_v12 = vld [vmem:[%s9867_s1 + $0xb8] sm:$0xff] }
  0x3e   : > { %6754 = vmatprep.subr.bf16.mxu0 %v6753_v3  ;;  %v6761_v8 = vpack.c.bf16 %v4855_v7, %v4854_v6  ;;  %v6765_v16 = vpack.c.bf16 %v4857_v12, %v4856_v11  ;;  %v4858_v17 = vld [vmem:[%s9867_s1 + $0xc0] sm:$0xff]  ;;  %v4859_v18 = vld [vmem:[%s9867_s1 + $0xc8] sm:$0xff]  ;;  %v4860_v20 = vld [vmem:[%s9867_s1 + $0xd0] sm:$0xff]  ;;  %s5044_s13 = sadd.s32 4294967295, %s4848_s10  ;;  %s217_s27 = sand.u32 1, %s7854_s16  }
  0x3f   : > { %s7633_s28 = smul.u32 480, %s221_s23  ;;  %6756 = vmatpush3.bf16.msra.mxu0 %v6753_v3  ;;  %v6769_v19 = vpack.c.bf16 %v4859_v18, %v4858_v17  ;;  %v4861_v21 = vld [vmem:[%s9867_s1 + $0xd8] sm:$0xff]  ;;  %v4862_v23 = vld [vmem:[%s9867_s1 + $0xe0] sm:$0xff]  ;;  %v4863_v24 = vld [vmem:[%s9867_s1 + $0xe8] sm:$0xff]  ;;  %s4846_s6 = sshll.u32 %s217_s27, 7 }
  0x40   : > { %6758 = vmatprep.subr.bf16.mxu0 %v6757_v5  ;;  %v6773_v22 = vpack.c.bf16 %v4861_v21, %v4860_v20  ;;  %v6777_v25 = vpack.c.bf16 %v4863_v24, %v4862_v23  ;;  %v4864_v26 = vld [vmem:[%s9867_s1 + $0xf0] sm:$0xff]  ;;  %v4865_v27 = vld [vmem:[%s9867_s1 + $0xf8] sm:$0xff]  ;;  %v263_v30 = vld [vmem:[%s9867_s1] sm:$0xff]  ;;  %s9736_s10 = scalar_lea.vmem [#allocation6], %s4846_s6  ;;  %s5074_s8 = sshll.u32 %s7866_s19, 5 }
  0x41   : > { %s224_s11 = scalar_lea.vmem %s9866_s0, %s7633_s28  ;;  %v6781_v28 = vpack.c.bf16 %v4865_v27, %v4864_v26  ;;  %v264_v31 = vld [vmem:[%s9867_s1 + $0x8] sm:$0xff]  ;;  %v265_v39 = vld [vmem:[%s9867_s1 + $0x10] sm:$0xff]  ;;  %v266_v40 = vld [vmem:[%s9867_s1 + $0x18] sm:$0xff]  ;;  %s9814_s24 = scalar_lea.sflag [#allocation5], %s217_s27 }
  0x42   : > { %s8045_s7 = scalar_lea.vmem %s224_s11, %s4849_s12  ;;  %v6785_v35 = vpack.c.bf16 %v264_v31, %v263_v30  ;;  %v6789_v46 = vpack.c.bf16 %v266_v40, %v265_v39  ;;  %v267_v50 = vld [vmem:[%s9867_s1 + $0x20] sm:$0xff]  ;;  %v268_v51 = vld [vmem:[%s9867_s1 + $0x28] sm:$0xff]  ;;  %v269_v63 = vld [vmem:[%s9867_s1 + $0x30] sm:$0xff]  ;;  %p9970_p10 = scmp.ne.s32.totalorder %s9905_s29, 0 }
  0x43   : > { %v8048_v9 = vld [vmem:[%s8045_s7] sm:$0xff]  ;;  %v8051_v10 = vld [vmem:[%s8045_s7 + $0x8] sm:$0xff]  ;;  %6760 = vmatpush3.bf16.msra.mxu0 %v6757_v5  ;;  %v8087_v29 = vld [vmem:[%s8045_s7 + $0x10] sm:$0x3]  ;;  %v6793_v57 = vpack.c.bf16 %v268_v51, %v267_v50  ;;  %s7884_s28 = smov [#allocation6]  }
  0x44   : > { %v310_v13 = vrot.slane %v8048_v9, 1  ;;  %v311_v14 = vrot.slane %v8051_v10, 1  ;;  %6762 = vmatprep.subr.bf16.mxu0 %v6761_v8  ;;  %v8096_v32 = vld [vmem:[%s8045_s7 + $0x18] sm:$0xff]  ;;  %v8099_v33 = vld [vmem:[%s8045_s7 + $0x20] sm:$0xff]  ;;  %v313_v34 = vrot.slane %v8087_v29, 1  ;;  %v8116_v41 = vld [vmem:[%s8045_s7 + $0x30] sm:$0xff] }
  0x45   : > { %v315_v36 = vrot.slane %v8096_v32, 1  ;;  %v8104_v37 = vrot.slane %v8099_v33, 1  ;;  %v8107_v38 = vld [vmem:[%s8045_s7 + $0x28] sm:$0x3]  ;;  %v8119_v42 = vld [vmem:[%s8045_s7 + $0x38] sm:$0xff]  ;;  %v320_v47 = vrot.slane %v8116_v41, 1 }
  0x46   : > { %v312_v15 = vsel %vm309_vm0, %v310_v13, %v311_v14  ;;  %v314_v43 = vsel %vm309_vm0, %v311_v14, %v313_v34  ;;  %v318_v44 = vrot.slane %v8107_v38, 1  ;;  %v8129_v48 = vrot.slane %v8119_v42, 1  ;;  %v8132_v49 = vld [vmem:[%s8045_s7 + $0x40] sm:$0x3]  ;;  %v8141_v52 = vld [vmem:[%s8045_s7 + $0x48] sm:$0xff]  ;;  %v8144_v53 = vld [vmem:[%s8045_s7 + $0x50] sm:$0xff] }
  0x47   : > { %5723 = vmatprep.mubr.f32.mxu0 %v312_v15  ;;  %6764 = vmatpush3.bf16.msra.mxu0 %v6761_v8  ;;  %v8125_v45 = vsel %vm309_vm0, %v315_v36, %v8104_v37  ;;  %v323_v55 = vrot.slane %v8132_v49, 1  ;;  %v325_v58 = vrot.slane %v8141_v52, 1  ;;  %v8156_v59 = vrot.slane %v8144_v53, 1  ;;  %v8159_v60 = vld [vmem:[%s8045_s7 + $0x58] sm:$0x3]  ;;  %v8162_v61 = vld [vmem:[%s8045_s7 + $0x60] sm:$0xff] }
  0x48   : > { %6766 = vmatprep.subr.bf16.mxu0 %v6765_v16  ;;  %v319_v54 = vsel %vm309_vm0, %v8104_v37, %v318_v44  ;;  %v8152_v56 = vsel %vm309_vm0, %v320_v47, %v8129_v48  ;;  %v8165_v62 = vld [vmem:[%s8045_s7 + $0x68] sm:$0xff]  ;;  %v270_v0 = vld [vmem:[%s9867_s1 + $0x38] sm:$0xff]  ;;  %v328_v2 = vrot.slane %v8159_v60, 1  ;;  %v330_v4 = vrot.slane %v8162_v61, 1  ;;  %v8186_v7 = vld [vmem:[%s8045_s7 + $0x70] sm:$0x3] }
  0x49   : > { %v324_v1 = vsel %vm309_vm0, %v8129_v48, %v323_v55  ;;  %v8179_v3 = vsel %vm309_vm0, %v325_v58, %v8156_v59  ;;  %v8183_v5 = vrot.slane %v8165_v62, 1  ;;  %v6797_v6 = vpack.c.bf16 %v270_v0, %v269_v63  ;;  %v8189_v8 = vld [vmem:[%s8045_s7 + $0x78] sm:$0xff]  ;;  %v8192_v11 = vld [vmem:[%s8045_s7 + $0x80] sm:$0xff]  ;;  %v272_v13 = vld [vmem:[%s9867_s1 + $0x48] sm:$0xff]  ;;  %s7784_s5 = sshll.u32 %s7884_s28, 4  ;;  %s7785_s5 = int_to_ptr.vmem [resolvable:$false] %s7784_s5 }
  0x4a   : > { %v271_v12 = vld [vmem:[%s9867_s1 + $0x40] sm:$0xff]  ;;  %v329_v14 = vsel %vm309_vm0, %v8156_v59, %v328_v2  ;;  %v333_v15 = vrot.slane %v8186_v7, 1  ;;  %v335_v17 = vrot.slane %v8189_v8, 1  ;;  %v8210_v18 = vrot.slane %v8192_v11, 1  ;;  %v8216_v21 = vld [vmem:[%s8045_s7 + $0x90] sm:$0xff]  ;;  %v274_v24 = vld [vmem:[%s9867_s1 + $0x58] sm:$0xff] }
  0x4b   : > { %6768 = vmatpush3.bf16.msra.mxu0 %v6765_v16  ;;  %v8206_v16 = vsel %vm309_vm0, %v330_v4, %v8183_v5  ;;  %v6801_v20 = vpack.c.bf16 %v272_v13, %v271_v12  ;;  %v273_v23 = vld [vmem:[%s9867_s1 + $0x50] sm:$0xff]  ;;  %v8240_v31 = vld [vmem:[%s8045_s7 + $0xa0] sm:$0x3]  ;;  %v276_v40 = vld [vmem:[%s9867_s1 + $0x68] sm:$0xff]  ;;  %s7786_s6 = scalar_lea.vmem %s7785_s5, 4096 }
  0x4c   : > { %6770 = vmatprep.subr.bf16.mxu0 %v6769_v19  ;;  %v8233_v27 = vsel %vm309_vm0, %v335_v17, %v8210_v18  ;;  %v6805_v34 = vpack.c.bf16 %v274_v24, %v273_v23  ;;  %v8246_v36 = vld [vmem:[%s8045_s7 + $0xb0] sm:$0xff]  ;;  %v275_v39 = vld [vmem:[%s9867_s1 + $0x60] sm:$0xff]  ;;  %v343_v44 = vrot.slane %v8240_v31, 1  ;;  %v8267_v51 = vld [vmem:[%s8045_s7 + $0xb8] sm:$0x3] }
  0x4d   : > { %v8264_v50 = vrot.slane %v8246_v36, 1  ;;  %v8270_v55 = vld [vmem:[%s8045_s7 + $0xc0] sm:$0xff]  ;;  %v277_v58 = vld [vmem:[%s9867_s1 + $0x70] sm:$0xff]  ;;  %v278_v63 = vld [vmem:[%s9867_s1 + $0x78] sm:$0xff] }
  0x4e   : > { %v350_v4 = vrot.slane %v8270_v55, 1  ;;  %v8294_v12 = vld [vmem:[%s8045_s7 + $0xd0] sm:$0x3]  ;;  %v8297_v13 = vld [vmem:[%s8045_s7 + $0xd8] sm:$0xff]  ;;  %v4866_v17 = vld [vmem:[%s9867_s1 + $0x100] sm:$0xff] }
  0x4f   : > { %6772 = vmatpush3.bf16.msra.mxu0 %v6769_v19  ;;  %v8213_v19 = vld [vmem:[%s8045_s7 + $0x88] sm:$0x3]  ;;  %v353_v24 = vrot.slane %v8294_v12, 1 }
  0x50   : > { %6774 = vmatprep.subr.bf16.mxu0 %v6773_v22  ;;  %v338_v26 = vrot.slane %v8213_v19, 1 }
  0x53   : > { %6776 = vmatpush3.bf16.msra.mxu0 %v6773_v22  ;;  %v8219_v22 = vld [vmem:[%s8045_s7 + $0x98] sm:$0xff] }
  0x54   : > { %6778 = vmatprep.subr.bf16.mxu0 %v6777_v25  ;;  %v8237_v30 = vrot.slane %v8219_v22, 1 }
  0x56   : > { %v344_v0 = vsel %vm309_vm0, %v8237_v30, %v343_v44 }
  0x57   : > { %6780 = vmatpush3.bf16.msra.mxu0 %v6777_v25  ;;  %v334_v25 = vsel %vm309_vm0, %v8183_v5, %v333_v15  ;;  %v8300_v15 = vld [vmem:[%s8045_s7 + $0xe0] sm:$0xff] }
  0x58   : > { %6782 = vmatprep.subr.bf16.mxu0 %v6781_v28 }
  0x5b   : > { %6784 = vmatpush3.bf16.msra.mxu0 %v6781_v28  ;;  %v340_v28 = vrot.slane %v8216_v21, 1 }
  0x5c   : > { %6786 = vmatprep.subr.bf16.mxu0 %v6785_v35 }
  0x5e   : > { %5724 = vmatmul.mubr.f32.vlgmr.msra.gmra.mrb[0].mxu0 %v314_v43  ;;  %v339_v43 = vsel %vm309_vm0, %v8210_v18, %v338_v26  ;;  %v355_v26 = vrot.slane %v8297_v13, 1 }
  0x5f   : > { %6788 = vmatpush3.bf16.msra.mxu0 %v6785_v35  ;;  %5726 = vmatprep.mubr.f32.mxu0 %v8125_v45  ;;  %v8243_v35 = vld [vmem:[%s8045_s7 + $0xa8] sm:$0xff] }
  0x60   : > { %6790 = vmatprep.subr.bf16.mxu0 %v6789_v46  ;;  %v345_v47 = vrot.slane %v8243_v35, 1 }
  0x62   : > { %5727 = vmatmul.mubr.f32.gmra.mrb[2].mxu0 %v319_v54  ;;  %v6809_v54 = vpack.c.bf16 %v276_v40, %v275_v39  ;;  %v8287_v2 = vsel %vm309_vm0, %v345_v47, %v8264_v50 }
  0x63   : > { %6792 = vmatpush3.bf16.msra.mxu0 %v6789_v46  ;;  %5729 = vmatprep.mubr.f32.mxu0 %v8152_v56  ;;  %v8260_v46 = vsel %vm309_vm0, %v340_v28, %v8237_v30  ;;  %v8318_v28 = vrot.slane %v8300_v15, 1 }
  0x64   : > { %6794 = vmatprep.subr.bf16.mxu0 %v6793_v57 }
  0x65   : > { %v8329_v44 = vsel %vm309_vm0, %v355_v26, %v8318_v28 }
  0x66   : > { %5730 = vmatmul.mubr.f32.gmra.mrb[4].mxu0 %v324_v1  ;;  %v348_v1 = vrot.slane %v8267_v51, 1 }
  0x67   : > { %5732 = vmatprep.mubr.f32.mxu0 %v8179_v3  ;;  %6796 = vmatpush3.bf16.msra.mxu0 %v6793_v57  ;;  %v8273_v57 = vld [vmem:[%s8045_s7 + $0xc8] sm:$0xff] }
  0x68   : > { %6798 = vmatprep.subr.bf16.mxu0 %v6797_v6  ;;  %v349_v23 = vsel %vm309_vm0, %v8264_v50, %v348_v1  ;;  %v4871_v1 = vld [vmem:[%s9867_s1 + $0x128] sm:$0xff] }
  0x6a   : > { %5733 = vmatmul.mubr.f32.gmra.mrb[6].mxu0 %v329_v14  ;;  %v6813_v14 = vpack.c.bf16 %v278_v63, %v277_v58  ;;  %v4869_v58 = vld [vmem:[%s9867_s1 + $0x118] sm:$0xff] }
  0x6b   : > { %5735 = vmatprep.mubr.f32.mxu0 %v8206_v16  ;;  %6800 = vmatpush3.bf16.msra.mxu0 %v6797_v6  ;;  %v8291_v6 = vrot.slane %v8273_v57, 1 }
  0x6c   : > { %6802 = vmatprep.subr.bf16.mxu0 %v6801_v20 }
  0x6d   : > { %v354_v40 = vsel %vm309_vm0, %v8291_v6, %v353_v24  ;;  %v4875_v24 = vld [vmem:[%s9867_s1 + $0x148] sm:$0xff] }
  0x6e   : > { %5736 = vmatmul.mubr.f32.gmra.mrb[8].mxu0 %v334_v25  ;;  %v8314_v25 = vsel %vm309_vm0, %v350_v4, %v8291_v6 }
  0x6f   : > { %5738 = vmatprep.mubr.f32.mxu0 %v8233_v27  ;;  %6804 = vmatpush3.bf16.msra.mxu0 %v6801_v20  ;;  %v4867_v20 = vld [vmem:[%s9867_s1 + $0x108] sm:$0xff] }
  0x70   : > { %6806 = vmatprep.subr.bf16.mxu0 %v6805_v34  ;;  %v6817_v39 = vpack.c.bf16 %v4867_v20, %v4866_v17  ;;  %v4873_v17 = vld [vmem:[%s9867_s1 + $0x138] sm:$0xff] }
  0x72   : > { %5739 = vmatmul.mubr.f32.gmra.mrb[10].mxu0 %v339_v43 }
  0x73   : > { %5741 = vmatprep.mubr.f32.mxu0 %v8260_v46  ;;  %6808 = vmatpush3.bf16.msra.mxu0 %v6805_v34  ;;  %v8321_v34 = vld [vmem:[%s8045_s7 + $0xe8] sm:$0x3] }
  0x74   : > { %6810 = vmatprep.subr.bf16.mxu0 %v6809_v54  ;;  %v358_v43 = vrot.slane %v8321_v34, 1 }
  0x76   : > { %5742 = vmatmul.mubr.f32.gmra.mrb[12].mxu0 %v344_v0  ;;  %v359_v47 = vsel %vm309_vm0, %v8318_v28, %v358_v43  ;;  %v4870_v0 = vld [vmem:[%s9867_s1 + $0x120] sm:$0xff] }
  0x77   : > { %5744 = vmatprep.mubr.f32.mxu0 %v8287_v2  ;;  %6812 = vmatpush3.bf16.msra.mxu0 %v6809_v54  ;;  %v4868_v54 = vld [vmem:[%s9867_s1 + $0x110] sm:$0xff]  ;;  %v6825_v4 = vpack.c.bf16 %v4871_v1, %v4870_v0  ;;  %v4881_v0 = vld [vmem:[%s9867_s1 + $0x178] sm:$0xff] }
  0x78   : > { %6814 = vmatprep.subr.bf16.mxu0 %v6813_v14  ;;  %v6821_v63 = vpack.c.bf16 %v4869_v58, %v4868_v54  ;;  %v4879_v54 = vld [vmem:[%s9867_s1 + $0x168] sm:$0xff] }
  0x7a   : > { %5745 = vmatmul.mubr.f32.gmra.mrb[14].mxu0 %v349_v23  ;;  %v4874_v23 = vld [vmem:[%s9867_s1 + $0x140] sm:$0xff] }
  0x7b   : > { %5747 = vmatprep.mubr.f32.mxu0 %v8314_v25  ;;  %6816 = vmatpush3.bf16.msra.mxu0 %v6813_v14  ;;  %v4872_v14 = vld [vmem:[%s9867_s1 + $0x130] sm:$0xff]  ;;  %v6833_v26 = vpack.c.bf16 %v4875_v24, %v4874_v23  ;;  %v729_v23 = vrot.slane %v8051_v10, 2  ;;  %v731_v24 = vrot.slane %v8087_v29, 2 }
  0x7c   : > { %6818 = vmatprep.subr.bf16.mxu0 %v6817_v39  ;;  %v6829_v20 = vpack.c.bf16 %v4873_v17, %v4872_v14  ;;  %v4915_v14 = vld [vmem:[%s9867_s1 + $0x188] sm:$0xff] }
  0x7d   : > { %v732_v29 = vsel %vm727_vm1, %v729_v23, %v731_v24  ;;  %v8442_v24 = vrot.slane %v8144_v53, 2 }
  0x7e   : > { %5748 = vmatmul.mubr.f32.gmra.mrb[16].mxu0 %v354_v40  ;;  %v4877_v40 = vld [vmem:[%s9867_s1 + $0x158] sm:$0xff] }
  0x7f   : > { %5750 = vmatprep.mubr.f32.mxu0 %v8329_v44 }
  0x82   : > { %5751 = vmatmul.mubr.f32.gmra.mrb[18].mxu0 %v359_v47  ;;  %v4878_v47 = vld [vmem:[%s9867_s1 + $0x160] sm:$0xff] }
  0x83   : > { %5785 = vmatprep.mubr.f32.mxu0 %v8048_v9  ;;  %v6841_v58 = vpack.c.bf16 %v4879_v54, %v4878_v47 }
  0x86   : > { %5786 = vmatmul.mubr.f32.vlgmr.msra.gmra.mrb[0].mxu0 %v8051_v10  ;;  %v4917_v10 = vld [vmem:[%s9867_s1 + $0x198] sm:$0xff] }
  0x87   : > { %6820 = vmatpush3.bf16.msra.mxu0 %v6817_v39  ;;  %5788 = vmatprep.mubr.f32.mxu0 %v8096_v32  ;;  %v4876_v39 = vld [vmem:[%s9867_s1 + $0x150] sm:$0xff] }
  0x88   : > { %6822 = vmatprep.subr.bf16.mxu0 %v6821_v63  ;;  %v6837_v43 = vpack.c.bf16 %v4877_v40, %v4876_v39  ;;  %v733_v39 = vrot.slane %v8096_v32, 2  ;;  %v8407_v40 = vrot.slane %v8099_v33, 2 }
  0x8a   : > { %5789 = vmatmul.mubr.f32.gmra.mrb[2].mxu0 %v8099_v33  ;;  %v8420_v47 = vsel %vm727_vm1, %v733_v39, %v8407_v40  ;;  %v746_v39 = vrot.slane %v8159_v60, 2 }
  0x8b   : > { %6824 = vmatpush3.bf16.msra.mxu0 %v6821_v63  ;;  %5791 = vmatprep.mubr.f32.mxu0 %v8116_v41  ;;  %v4880_v63 = vld [vmem:[%s9867_s1 + $0x170] sm:$0xff] }
  0x8c   : > { %6826 = vmatprep.subr.bf16.mxu0 %v6825_v4  ;;  %v6845_v1 = vpack.c.bf16 %v4881_v0, %v4880_v63  ;;  %v8424_v63 = vrot.slane %v8119_v42, 2  ;;  %v4918_v0 = vld [vmem:[%s9867_s1 + $0x1a0] sm:$0xff]  ;;  %v747_v60 = vsel %vm727_vm1, %v8442_v24, %v746_v39  ;;  %v758_v39 = vrot.slane %v8216_v21, 2 }
  0x8e   : > { %5792 = vmatmul.mubr.f32.gmra.mrb[4].mxu0 %v8119_v42 }
  0x8f   : > { %5794 = vmatprep.mubr.f32.mxu0 %v8141_v52  ;;  %6828 = vmatpush3.bf16.msra.mxu0 %v6825_v4  ;;  %v4914_v4 = vld [vmem:[%s9867_s1 + $0x180] sm:$0xff] }
  0x90   : > { %6830 = vmatprep.subr.bf16.mxu0 %v6829_v20  ;;  %v6849_v17 = vpack.c.bf16 %v4915_v14, %v4914_v4  ;;  %v741_v4 = vrot.slane %v8132_v49, 2 }
  0x92   : > { %5795 = vmatmul.mubr.f32.gmra.mrb[6].mxu0 %v8144_v53  ;;  %v742_v49 = vsel %vm727_vm1, %v8424_v63, %v741_v4  ;;  %v8478_v4 = vrot.slane %v8192_v11, 2 }
  0x93   : > { %5797 = vmatprep.mubr.f32.mxu0 %v8162_v61  ;;  %6832 = vmatpush3.bf16.msra.mxu0 %v6829_v20  ;;  %v728_v20 = vrot.slane %v8048_v9, 2  ;;  %v4916_v9 = vld [vmem:[%s9867_s1 + $0x190] sm:$0xff] }
  0x94   : > { %6834 = vmatprep.subr.bf16.mxu0 %v6833_v26  ;;  %v6853_v54 = vpack.c.bf16 %v4917_v10, %v4916_v9  ;;  %v748_v10 = vrot.slane %v8162_v61, 2  ;;  %9912 = vst [vmem:[#allocation9_spill] sm:$0xff] %v8478_v4 }
  0x96   : > { %5798 = vmatmul.mubr.f32.gmra.mrb[8].mxu0 %v8165_v62 }
  0x97   : > { %5800 = vmatprep.mubr.f32.mxu0 %v8189_v8  ;;  %6836 = vmatpush3.bf16.msra.mxu0 %v6833_v26  ;;  %v730_v26 = vsel %vm727_vm1, %v728_v20, %v729_v23  ;;  %v743_v23 = vrot.slane %v8141_v52, 2 }
  0x98   : > { %6838 = vmatprep.subr.bf16.mxu0 %v6837_v43 }
  0x99   : > { %v8456_v9 = vsel %vm727_vm1, %v743_v23, %v8442_v24 }
  0x9a   : > { %5801 = vmatmul.mubr.f32.gmra.mrb[10].mxu0 %v8192_v11 }
  0x9b   : > { %5803 = vmatprep.mubr.f32.mxu0 %v8216_v21  ;;  %6840 = vmatpush3.bf16.msra.mxu0 %v6837_v43  ;;  %v736_v43 = vrot.slane %v8107_v38, 2 }
  0x9c   : > { %6842 = vmatprep.subr.bf16.mxu0 %v6841_v58 }
  0x9d   : > { %v737_v38 = vsel %vm727_vm1, %v8407_v40, %v736_v43 }
  0x9e   : > { %5804 = vmatmul.mubr.f32.gmra.mrb[12].mxu0 %v8219_v22 }
  0x9f   : > { %5806 = vmatprep.mubr.f32.mxu0 %v8243_v35  ;;  %6844 = vmatpush3.bf16.msra.mxu0 %v6841_v58  ;;  %v738_v58 = vrot.slane %v8116_v41, 2 }
  0xa0   : > { %6846 = vmatprep.subr.bf16.mxu0 %v6845_v1 }
  0xa1   : > { %v8438_v14 = vsel %vm727_vm1, %v738_v58, %v8424_v63  ;;  %v4923_v58 = vld [vmem:[%s9867_s1 + $0x1c8] sm:$0xff] }
  0xa2   : > { %5807 = vmatmul.mubr.f32.gmra.mrb[14].mxu0 %v8246_v36 }
  0xa3   : > { %5809 = vmatprep.mubr.f32.mxu0 %v8270_v55  ;;  %6848 = vmatpush3.bf16.msra.mxu0 %v6845_v1  ;;  %v4919_v1 = vld [vmem:[%s9867_s1 + $0x1a8] sm:$0xff] }
  0xa4   : > { %6850 = vmatprep.subr.bf16.mxu0 %v6849_v17  ;;  %v6857_v20 = vpack.c.bf16 %v4919_v1, %v4918_v0  ;;  %v751_v0 = vrot.slane %v8186_v7, 2 }
  0xa6   : > { %5810 = vmatmul.mubr.f32.gmra.mrb[16].mxu0 %v8273_v57 }
  0xa7   : > { %5812 = vmatprep.mubr.f32.mxu0 %v8297_v13 }
  0xaa   : > { %5813 = vmatmul.mubr.f32.gmra.mrb[18].mxu0 %v8300_v15 }
  0xab   : > { %5847 = vmatprep.mubr.f32.mxu0 %v730_v26  ;;  %v4921_v26 = vld [vmem:[%s9867_s1 + $0x1b8] sm:$0xff] }
  0xae   : > { %5848 = vmatmul.mubr.f32.vlgmr.msra.gmra.mrb[0].mxu0 %v732_v29  ;;  %v8460_v29 = vrot.slane %v8165_v62, 2 }
  0xaf   : > { %6852 = vmatpush3.bf16.msra.mxu0 %v6849_v17  ;;  %5850 = vmatprep.mubr.f32.mxu0 %v8420_v47  ;;  %v4920_v17 = vld [vmem:[%s9867_s1 + $0x1b0] sm:$0xff] }
  0xb0   : > { %6854 = vmatprep.subr.bf16.mxu0 %v6853_v54  ;;  %v6861_v43 = vpack.c.bf16 %v4921_v26, %v4920_v17  ;;  %v8474_v1 = vsel %vm727_vm1, %v748_v10, %v8460_v29  ;;  %v4925_v17 = vld [vmem:[%s9867_s1 + $0x1d8] sm:$0xff]  ;;  %v752_v7 = vsel %vm727_vm1, %v8460_v29, %v751_v0  ;;  %v756_v26 = vrot.slane %v8213_v19, 2 }
  0xb1   : > { %v8496_v10 = vrot.slane %v8219_v22, 2 }
  0xb2   : > { %5851 = vmatmul.mubr.f32.gmra.mrb[2].mxu0 %v737_v38  ;;  %v753_v38 = vrot.slane %v8189_v8, 2  ;;  %v757_v19 = vsel %vm727_vm1, %v8478_v4, %v756_v26  ;;  %v766_v26 = vrot.slane %v8267_v51, 2 }
  0xb3   : > { %6856 = vmatpush3.bf16.msra.mxu0 %v6853_v54  ;;  %5853 = vmatprep.mubr.f32.mxu0 %v8438_v14  ;;  %v4922_v54 = vld [vmem:[%s9867_s1 + $0x1c0] sm:$0xff]  ;;  %9913 = vst [vmem:[#allocation10_spill] sm:$0xff] %v8496_v10  ;;  %v8510_v0 = vsel %vm727_vm1, %v758_v39, %v8496_v10 }
  0xb4   : > { %6858 = vmatprep.subr.bf16.mxu0 %v6857_v20  ;;  %v6865_v23 = vpack.c.bf16 %v4923_v58, %v4922_v54  ;;  %v4926_v58 = vld [vmem:[%s9867_s1 + $0x1e0] sm:$0xff] }
  0xb6   : > { %5854 = vmatmul.mubr.f32.gmra.mrb[4].mxu0 %v742_v49  ;;  %v8492_v49 = vsel %vm727_vm1, %v753_v38, %v8478_v4  ;;  %v763_v38 = vrot.slane %v8243_v35, 2 }
  0xb7   : > { %5856 = vmatprep.mubr.f32.mxu0 %v8456_v9  ;;  %6860 = vmatpush3.bf16.msra.mxu0 %v6857_v20  ;;  %v4924_v20 = vld [vmem:[%s9867_s1 + $0x1d0] sm:$0xff] }
  0xb8   : > { %6862 = vmatprep.subr.bf16.mxu0 %v6861_v43  ;;  %v6869_v54 = vpack.c.bf16 %v4925_v17, %v4924_v20  ;;  %v8514_v20 = vrot.slane %v8246_v36, 2 }
  0xba   : > { %5857 = vmatmul.mubr.f32.gmra.mrb[6].mxu0 %v747_v60  ;;  %v761_v60 = vrot.slane %v8240_v31, 2  ;;  %v8528_v39 = vsel %vm727_vm1, %v763_v38, %v8514_v20  ;;  %v767_v51 = vsel %vm727_vm1, %v8514_v20, %v766_v26 }
  0xbb   : > { %5859 = vmatprep.mubr.f32.mxu0 %v8474_v1  ;;  %6864 = vmatpush3.bf16.msra.mxu0 %v6861_v43  ;;  %v4927_v43 = vld [vmem:[%s9867_s1 + $0x1e8] sm:$0xff] }
  0xbc   : > { %6866 = vmatprep.subr.bf16.mxu0 %v6865_v23  ;;  %v6873_v17 = vpack.c.bf16 %v4927_v43, %v4926_v58  ;;  %v762_v31 = vsel %vm727_vm1, %v8496_v10, %v761_v60  ;;  %v768_v58 = vrot.slane %v8270_v55, 2  ;;  %v8532_v43 = vrot.slane %v8273_v57, 2 }
  0xbd   : > { %v771_v60 = vrot.slane %v8294_v12, 2 }
  0xbe   : > { %5860 = vmatmul.mubr.f32.gmra.mrb[8].mxu0 %v752_v7  ;;  %v4928_v7 = vld [vmem:[%s9867_s1 + $0x1f0] sm:$0xff]  ;;  %v8546_v38 = vsel %vm727_vm1, %v768_v58, %v8532_v43 }
  0xbf   : > { %5862 = vmatprep.mubr.f32.mxu0 %v8492_v49  ;;  %6868 = vmatpush3.bf16.msra.mxu0 %v6865_v23  ;;  %v4929_v23 = vld [vmem:[%s9867_s1 + $0x1f8] sm:$0xff]  ;;  %v4932_v58 = vld [vmem:[%s9867_s1 + $0x210] sm:$0xff] }
  0xc0   : > { %6870 = vmatprep.subr.bf16.mxu0 %v6869_v54  ;;  %v6877_v4 = vpack.c.bf16 %v4929_v23, %v4928_v7  ;;  %v773_v7 = vrot.slane %v8297_v13, 2  ;;  %v8550_v23 = vrot.slane %v8300_v15, 2 }
  0xc2   : > { %5863 = vmatmul.mubr.f32.gmra.mrb[10].mxu0 %v757_v19  ;;  %v4930_v19 = vld [vmem:[%s9867_s1 + $0x200] sm:$0xff]  ;;  %v8558_v12 = vsel %vm727_vm1, %v773_v7, %v8550_v23 }
  0xc3   : > { %5865 = vmatprep.mubr.f32.mxu0 %v8510_v0  ;;  %6872 = vmatpush3.bf16.msra.mxu0 %v6869_v54  ;;  %v4931_v54 = vld [vmem:[%s9867_s1 + $0x208] sm:$0xff] }
  0xc4   : > { %6874 = vmatprep.subr.bf16.mxu0 %v6873_v17  ;;  %v6881_v10 = vpack.c.bf16 %v4931_v54, %v4930_v19  ;;  %v4934_v19 = vld [vmem:[%s9867_s1 + $0x220] sm:$0xff]  ;;  %v4935_v54 = vld [vmem:[%s9867_s1 + $0x228] sm:$0xff] }
  0xc6   : > { %5866 = vmatmul.mubr.f32.gmra.mrb[12].mxu0 %v762_v31  ;;  %v772_v31 = vsel %vm727_vm1, %v8532_v43, %v771_v60  ;;  %v6889_v60 = vpack.c.bf16 %v4935_v54, %v4934_v19  ;;  %v5032_v54 = vld [vmem:[%s9867_s1 + $0x430] sm:$0xff] }
  0xc7   : > { %5868 = vmatprep.mubr.f32.mxu0 %v8528_v39  ;;  %6876 = vmatpush3.bf16.msra.mxu0 %v6873_v17  ;;  %v776_v17 = vrot.slane %v8321_v34, 2  ;;  %v4933_v34 = vld [vmem:[%s9867_s1 + $0x218] sm:$0xff] }
  0xc8   : > { %6878 = vmatprep.subr.bf16.mxu0 %v6877_v4 }
  0xc9   : > { %v777_v26 = vsel %vm727_vm1, %v8550_v23, %v776_v17  ;;  %v5029_v17 = vld [vmem:[%s9867_s1 + $0x418] sm:$0xff] }
  0xca   : > { %5869 = vmatmul.mubr.f32.gmra.mrb[14].mxu0 %v767_v51  ;;  %v5026_v51 = vld [vmem:[%s9867_s1 + $0x400] sm:$0xff] }
  0xcb   : > { %5871 = vmatprep.mubr.f32.mxu0 %v8546_v38  ;;  %6880 = vmatpush3.bf16.msra.mxu0 %v6877_v4  ;;  %v6885_v4 = vpack.c.bf16 %v4933_v34, %v4932_v58  ;;  %v5030_v58 = vld [vmem:[%s9867_s1 + $0x420] sm:$0xff]  ;;  %v5031_v34 = vld [vmem:[%s9867_s1 + $0x428] sm:$0xff] }
  0xcc   : > { %6882 = vmatprep.subr.bf16.mxu0 %v6881_v10  ;;  %v8619_v19 = vpack.c.bf16 %v5031_v34, %v5030_v58 }
  0xce   : > { %5872 = vmatmul.mubr.f32.gmra.mrb[16].mxu0 %v772_v31  ;;  %v4936_v31 = vld [vmem:[%s9867_s1 + $0x230] sm:$0xff]  ;;  %9916 = vst [vmem:[#allocation13_spill] sm:$0xff] %v8619_v19 }
  0xcf   : > { %5874 = vmatprep.mubr.f32.mxu0 %v8558_v12 }
  0xd2   : > { %5875 = vmatmul.mubr.f32.gmra.mrb[18].mxu0 %v777_v26 }
  0xd3   : > { %5909 = vmatprep.mubr.f32.mxu0 %v8096_v32  ;;  %v5027_v32 = vld [vmem:[%s9867_s1 + $0x408] sm:$0xff] }
  0xd4   : > { %v8584_v7 = vpack.c.bf16 %v5027_v32, %v5026_v51  ;;  %v5033_v51 = vld [vmem:[%s9867_s1 + $0x438] sm:$0xff] }
  0xd6   : > { %5910 = vmatmul.mubr.f32.vlgmr.msra.gmra.mrb[0].mxu0 %v8099_v33  ;;  %9914 = vst [vmem:[#allocation11_spill] sm:$0xff] %v8584_v7  ;;  %v4937_v33 = vld [vmem:[%s9867_s1 + $0x238] sm:$0xff]  ;;  %7329 = vmatprep.subr.bf16.mxu1 %v8584_v7 }
  0xd7   : > { %6884 = vmatpush3.bf16.msra.mxu0 %v6881_v10  ;;  %5912 = vmatprep.mubr.f32.mxu0 %v8116_v41  ;;  %v6893_v41 = vpack.c.bf16 %v4937_v33, %v4936_v31  ;;  %v5028_v10 = vld [vmem:[%s9867_s1 + $0x410] sm:$0xff]  ;;  %v5034_v31 = vld [vmem:[%s9867_s1 + $0x440] sm:$0xff]  ;;  %v5035_v33 = vld [vmem:[%s9867_s1 + $0x448] sm:$0xff] }
  0xd8   : > { %6886 = vmatprep.subr.bf16.mxu0 %v6885_v4  ;;  %7337 = vmatpush3.bf16.msra.mxu1 %v8584_v7  ;;  %v8608_v26 = vpack.c.bf16 %v5029_v17, %v5028_v10  ;;  %v8655_v10 = vpack.c.bf16 %v5035_v33, %v5034_v31  ;;  %v5036_v17 = vld [vmem:[%s9867_s1 + $0x450] sm:$0xff]  ;;  %v8723_v33 = vld [vmem:[%s8045_s7 + $0x60] sm:$0xff]  ;;  %v8864_v7 = vld [vmem:[%s8045_s7 + $0xd8] sm:$0xff] }
  0xda   : > { %5913 = vmatmul.mubr.f32.gmra.mrb[2].mxu0 %v8119_v42  ;;  %v4938_v42 = vld [vmem:[%s9867_s1 + $0x240] sm:$0xff]  ;;  %9915 = vst [vmem:[#allocation12_spill] sm:$0xff] %v8608_v26  ;;  %7330 = vmatprep.subr.bf16.mxu1 %v8608_v26  ;;  %9918 = vst [vmem:[#allocation15_spill] sm:$0xff] %v8655_v10 }
  0xdb   : > { %6888 = vmatpush3.bf16.msra.mxu0 %v6885_v4  ;;  %5915 = vmatprep.mubr.f32.mxu0 %v8141_v52  ;;  %v4939_v52 = vld [vmem:[%s9867_s1 + $0x248] sm:$0xff] }
  0xdc   : > { %6890 = vmatprep.subr.bf16.mxu0 %v6889_v60  ;;  %v6897_v4 = vpack.c.bf16 %v4939_v52, %v4938_v42  ;;  %7338 = vmatpush3.bf16.msra.mxu1 %v8608_v26  ;;  %v5037_v42 = vld [vmem:[%s9867_s1 + $0x458] sm:$0xff]  ;;  %v8783_v26 = vld [vmem:[%s8045_s7 + $0x90] sm:$0xff] }
  0xdd   : > { %7331 = vmatprep.subr.bf16.mxu1 %v8619_v19  ;;  %v8673_v58 = vpack.c.bf16 %v5037_v42, %v5036_v17  ;;  %v8737_v17 = vld [vmem:[%s8045_s7 + $0x40] sm:$0x3] }
  0xde   : > { %5916 = vmatmul.mubr.f32.gmra.mrb[4].mxu0 %v8144_v53  ;;  %v4940_v53 = vld [vmem:[%s9867_s1 + $0x250] sm:$0xff] }
  0xdf   : > { %5918 = vmatprep.mubr.f32.mxu0 %v8162_v61  ;;  %6892 = vmatpush3.bf16.msra.mxu0 %v6889_v60  ;;  %v4941_v61 = vld [vmem:[%s9867_s1 + $0x258] sm:$0xff]  ;;  %v8637_v60 = vpack.c.bf16 %v5033_v51, %v5032_v54  ;;  %9919 = vst [vmem:[#allocation16_spill] sm:$0xff] %v8673_v58  ;;  %v8703_v54 = vld [vmem:[%s8045_s7 + $0x28] sm:$0x3] }
  0xe0   : > { %6894 = vmatprep.subr.bf16.mxu0 %v6893_v41  ;;  %v6901_v32 = vpack.c.bf16 %v4941_v61, %v4940_v53  ;;  %7339 = vmatpush3.bf16.msra.mxu1 %v8619_v19  ;;  %v5039_v53 = vld [vmem:[%s9867_s1 + $0x468] sm:$0xff]  ;;  %v1268_v31 = vrot.slane %v8703_v54, 1 }
  0xe1   : > { %9917 = vst [vmem:[#allocation14_spill] sm:$0xff] %v8637_v60  ;;  %7332 = vmatprep.subr.bf16.mxu1 %v8637_v60 }
  0xe2   : > { %5919 = vmatmul.mubr.f32.gmra.mrb[6].mxu0 %v8165_v62  ;;  %v4942_v62 = vld [vmem:[%s9867_s1 + $0x260] sm:$0xff] }
  0xe3   : > { %5921 = vmatprep.mubr.f32.mxu0 %v8189_v8  ;;  %6896 = vmatpush3.bf16.msra.mxu0 %v6893_v41  ;;  %v4943_v8 = vld [vmem:[%s9867_s1 + $0x268] sm:$0xff] }
  0xe4   : > { %6898 = vmatprep.subr.bf16.mxu0 %v6897_v4  ;;  %v6905_v41 = vpack.c.bf16 %v4943_v8, %v4942_v62  ;;  %7340 = vmatpush3.bf16.msra.mxu1 %v8637_v60  ;;  %v5041_v62 = vld [vmem:[%s9867_s1 + $0x478] sm:$0xff]  ;;  %v8714_v8 = vld [vmem:[%s8045_s7 + $0xf0] sm:$0xff] }
  0xe5   : > { %7333 = vmatprep.subr.bf16.mxu1 %v8655_v10 }
  0xe6   : > { %5922 = vmatmul.mubr.f32.gmra.mrb[8].mxu0 %v8192_v11  ;;  %v4944_v11 = vld [vmem:[%s9867_s1 + $0x270] sm:$0xff] }
  0xe7   : > { %5924 = vmatprep.mubr.f32.mxu0 %v8216_v21  ;;  %6900 = vmatpush3.bf16.msra.mxu0 %v6897_v4  ;;  %v4945_v21 = vld [vmem:[%s9867_s1 + $0x278] sm:$0xff]  ;;  %v5038_v4 = vld [vmem:[%s9867_s1 + $0x460] sm:$0xff] }
  0xe8   : > { %6902 = vmatprep.subr.bf16.mxu0 %v6901_v32  ;;  %v6909_v52 = vpack.c.bf16 %v4945_v21, %v4944_v11  ;;  %7341 = vmatpush3.bf16.msra.mxu1 %v8655_v10  ;;  %v8692_v61 = vpack.c.bf16 %v5039_v53, %v5038_v4  ;;  %v8730_v11 = vld [vmem:[%s8045_s7 + $0x58] sm:$0x3]  ;;  %v4950_v10 = vld [vmem:[%s9867_s1 + $0x2a0] sm:$0xff] }
  0xe9   : > { %7334 = vmatprep.subr.bf16.mxu1 %v8673_v58  ;;  %9922 = vst [vmem:[#allocation19_spill] sm:$0xff] %v8730_v11  ;;  %v8734_v21 = vld [vmem:[%s8045_s7 + $0xf8] sm:$0xff] }
  0xea   : > { %5925 = vmatmul.mubr.f32.gmra.mrb[10].mxu0 %v8219_v22  ;;  %v4946_v22 = vld [vmem:[%s9867_s1 + $0x280] sm:$0xff]  ;;  %9920 = vst [vmem:[#allocation17_spill] sm:$0xff] %v8692_v61  ;;  %v4949_v4 = vld [vmem:[%s9867_s1 + $0x298] sm:$0xff] }
  0xeb   : > { %5927 = vmatprep.mubr.f32.mxu0 %v8243_v35  ;;  %6904 = vmatpush3.bf16.msra.mxu0 %v6901_v32  ;;  %v4947_v35 = vld [vmem:[%s9867_s1 + $0x288] sm:$0xff] }
  0xec   : > { %6906 = vmatprep.subr.bf16.mxu0 %v6905_v41  ;;  %v6913_v34 = vpack.c.bf16 %v4947_v35, %v4946_v22  ;;  %7342 = vmatpush3.bf16.msra.mxu1 %v8673_v58  ;;  %v2354_v22 = vrot.slane %v8730_v11, 2  ;;  %v4948_v35 = vld [vmem:[%s9867_s1 + $0x290] sm:$0xff]  ;;  %v8837_v11 = vld [vmem:[%s8045_s7 + $0xc0] sm:$0xff] }
  0xed   : > { %7335 = vmatprep.subr.bf16.mxu1 %v8692_v61  ;;  %v6917_v58 = vpack.c.bf16 %v4949_v4, %v4948_v35  ;;  %v8786_v35 = vld [vmem:[%s8045_s7 + $0x98] sm:$0xff]  ;;  %v8789_v4 = vld [vmem:[%s8045_s7 + $0x88] sm:$0x3] }
  0xee   : > { %5928 = vmatmul.mubr.f32.gmra.mrb[12].mxu0 %v8246_v36  ;;  %v8696_v36 = vld [vmem:[%s8045_s7 + $0x48] sm:$0xff]  ;;  %9924 = vst [vmem:[#allocation21_spill] sm:$0xff] %v8789_v4 }
  0xef   : > { %5930 = vmatprep.mubr.f32.mxu0 %v8270_v55  ;;  %6908 = vmatpush3.bf16.msra.mxu0 %v6905_v41  ;;  %v8699_v55 = vld [vmem:[%s8045_s7 + $0x50] sm:$0xff]  ;;  %v2351_v51 = vrot.slane %v8696_v36, 2  ;;  %v8726_v41 = vld [vmem:[%s8045_s7 + $0x68] sm:$0xff] }
  0xf0   : > { %6910 = vmatprep.subr.bf16.mxu0 %v6909_v52  ;;  %v2352_v32 = vrot.slane %v8699_v55, 2  ;;  %7343 = vmatpush3.bf16.msra.mxu1 %v8692_v61  ;;  %v2357_v42 = vrot.slane %v8726_v41, 2  ;;  %v8762_v61 = vld [vmem:[%s8045_s7 + $0x70] sm:$0x3] }
  0xf1   : > { %9923 = vst [vmem:[#allocation20_spill] sm:$0xff] %v8762_v61 }
  0xf2   : > { %5931 = vmatmul.mubr.f32.gmra.mrb[14].mxu0 %v8273_v57  ;;  %v5040_v57 = vld [vmem:[%s9867_s1 + $0x470] sm:$0xff]  ;;  %v2355_v53 = vsel %vm727_vm1, %v2352_v32, %v2354_v22 }
  0xf3   : > { %5933 = vmatprep.mubr.f32.mxu0 %v8297_v13  ;;  %6912 = vmatpush3.bf16.msra.mxu0 %v6909_v52  ;;  %v8717_v13 = vpack.c.bf16 %v5041_v62, %v5040_v57  ;;  %v2353_v52 = vsel %vm727_vm1, %v2351_v51, %v2352_v32  ;;  %v1269_v51 = vsel %vm309_vm0, %v8104_v37, %v1268_v31  ;;  %v1273_v57 = vrot.slane %v8737_v17, 1  ;;  %v8756_v62 = vld [vmem:[%s8045_s7 + $0x78] sm:$0xff] }
  0xf4   : > { %6914 = vmatprep.subr.bf16.mxu0 %v6913_v34  ;;  %6222 = vmatprep.mubr.f32.mxu1 %v2353_v52  ;;  %v8759_v52 = vld [vmem:[%s8045_s7 + $0x80] sm:$0xff]  ;;  %v2361_v32 = vrot.slane %v8756_v62, 2  ;;  %v2359_v31 = vrot.slane %v8762_v61, 2  ;;  %v8810_v61 = vld [vmem:[%s8045_s7 + $0xa8] sm:$0xff] }
  0xf5   : > { %9921 = vst [vmem:[#allocation18_spill] sm:$0xff] %v8717_v13  ;;  %7336 = vmatprep.subr.bf16.mxu1 %v8717_v13  ;;  %v2362_v22 = vrot.slane %v8759_v52, 2 }
  0xf6   : > { %5934 = vmatmul.mubr.f32.gmra.mrb[16].mxu0 %v8300_v15  ;;  %v2356_v15 = vrot.slane %v8723_v33, 2  ;;  %7344 = vmatpush3.bf16.msra.mxu1 %v8717_v13  ;;  %v8766_v13 = vld [vmem:[%s8045_s7 + $0x58] sm:$0x3]  ;;  %v2360_v60 = vsel %vm727_vm1, %v2357_v42, %v2359_v31 }
  0xf7   : > { %5936 = vmatprep.mubr.f32.mxu0 %v8714_v8  ;;  %v1278_v19 = vrot.slane %v8766_v13, 1 }
  0xf8   : > { %v2358_v37 = vsel %vm727_vm1, %v2356_v15, %v2357_v42  ;;  %v1274_v15 = vsel %vm309_vm0, %v8129_v48, %v1273_v57  ;;  %v2366_v42 = vrot.slane %v8783_v26, 2  ;;  %v2367_v48 = vrot.slane %v8786_v35, 2 }
  0xf9   : > { %6223 = vmatmul.mubr.f32.vlgmr.msra.gmra.mrb[0].mxu1 %v2355_v53  ;;  %v8793_v53 = vld [vmem:[%s8045_s7 + $0x70] sm:$0x3]  ;;  %v2364_v57 = vrot.slane %v8789_v4, 2 }
  0xfa   : > { %5937 = vmatmul.mubr.f32.gmra.mrb[18].mxu0 %v8734_v21  ;;  %6225 = vmatprep.mubr.f32.mxu1 %v2358_v37  ;;  %v1283_v4 = vrot.slane %v8793_v53, 1 }
  0xfb   : > { %5971 = vmatprep.mubr.f32.mxu0 %v8125_v45  ;;  %v4951_v45 = vld [vmem:[%s9867_s1 + $0x2a8] sm:$0xff]  ;;  %v2365_v31 = vsel %vm727_vm1, %v2362_v22, %v2364_v57 }
  0xfc   : > { %v6921_v37 = vpack.c.bf16 %v4951_v45, %v4950_v10  ;;  %v8816_v10 = vld [vmem:[%s8045_s7 + $0xa0] sm:$0x3]  ;;  %v8820_v45 = vld [vmem:[%s8045_s7 + $0x88] sm:$0x3] }
  0xfd   : > { %6226 = vmatmul.mubr.f32.gmra.mrb[2].mxu1 %v2360_v60  ;;  %v8813_v60 = vld [vmem:[%s8045_s7 + $0xb0] sm:$0xff]  ;;  %9925 = vst [vmem:[#allocation22_spill] sm:$0xff] %v8816_v10 }
  0xfe   : > { %5972 = vmatmul.mubr.f32.vlgmr.msra.gmra.mrb[0].mxu0 %v1269_v51  ;;  %v2363_v51 = vsel %vm727_vm1, %v2361_v32, %v2362_v22  ;;  %v1279_v32 = vsel %vm309_vm0, %v8156_v59, %v1278_v19  ;;  %v2371_v22 = vrot.slane %v8810_v61, 2  ;;  %v2372_v59 = vrot.slane %v8813_v60, 2 }
  0xff   : > { %6916 = vmatpush3.bf16.msra.mxu0 %v6913_v34  ;;  %5974 = vmatprep.mubr.f32.mxu0 %v8152_v56  ;;  %v4952_v56 = vld [vmem:[%s9867_s1 + $0x2b0] sm:$0xff]  ;;  %v4953_v34 = vld [vmem:[%s9867_s1 + $0x2b8] sm:$0xff]  ;;  %v2368_v19 = vsel %vm727_vm1, %v2366_v42, %v2367_v48  ;;  %v1284_v42 = vsel %vm309_vm0, %v8183_v5, %v1283_v4 }
 0x100   : > { %6918 = vmatprep.subr.bf16.mxu0 %v6917_v58  ;;  %6228 = vmatprep.mubr.f32.mxu1 %v2363_v51  ;;  %v6925_v51 = vpack.c.bf16 %v4953_v34, %v4952_v56  ;;  %v8840_v56 = vld [vmem:[%s8045_s7 + $0xc8] sm:$0xff]  ;;  %v8843_v34 = vld [vmem:[%s8045_s7 + $0xb8] sm:$0x3]  ;;  %v2373_v4 = vsel %vm727_vm1, %v2371_v22, %v2372_v59 }
 0x101   : > { %6229 = vmatmul.mubr.f32.gmra.mrb[4].mxu1 %v2365_v31  ;;  %9926 = vst [vmem:[#allocation23_spill] sm:$0xff] %v8843_v34  ;;  %v8847_v31 = vld [vmem:[%s8045_s7 + $0xa0] sm:$0x3]  ;;  %v2377_v5 = vrot.slane %v8840_v56, 2 }
 0x102   : > { %5975 = vmatmul.mubr.f32.gmra.mrb[2].mxu0 %v1274_v15  ;;  %v2369_v15 = vrot.slane %v8816_v10, 2  ;;  %6231 = vmatprep.mubr.f32.mxu1 %v2368_v19  ;;  %v1288_v10 = vrot.slane %v8820_v45, 1 }
 0x103   : > { %6920 = vmatpush3.bf16.msra.mxu0 %v6917_v58  ;;  %5977 = vmatprep.mubr.f32.mxu0 %v8179_v3  ;;  %v4954_v3 = vld [vmem:[%s9867_s1 + $0x2c0] sm:$0xff]  ;;  %v4955_v58 = vld [vmem:[%s9867_s1 + $0x2c8] sm:$0xff] }
 0x104   : > { %6922 = vmatprep.subr.bf16.mxu0 %v6921_v37  ;;  %v2370_v57 = vsel %vm727_vm1, %v2367_v48, %v2369_v15  ;;  %v2376_v48 = vrot.slane %v8837_v11, 2  ;;  %v6929_v19 = vpack.c.bf16 %v4955_v58, %v4954_v3  ;;  %v1289_v22 = vsel %vm309_vm0, %v8210_v18, %v1288_v10  ;;  %v8867_v3 = vld [vmem:[%s8045_s7 + $0xe0] sm:$0xff]  ;;  %v8870_v58 = vld [vmem:[%s8045_s7 + $0xd0] sm:$0x3] }
 0x105   : > { %6232 = vmatmul.mubr.f32.gmra.mrb[6].mxu1 %v2370_v57  ;;  %9927 = vst [vmem:[#allocation24_spill] sm:$0xff] %v8867_v3  ;;  %9928 = vst [vmem:[#allocation25_spill] sm:$0xff] %v8870_v58  ;;  %v8874_v57 = vld [vmem:[%s8045_s7 + $0xb8] sm:$0x3]  ;;  %v2379_v10 = vrot.slane %v8870_v58, 2  ;;  %v1310_v58 = vrot.slane %v8714_v8, 1 }
 0x106   : > { %5978 = vmatmul.mubr.f32.gmra.mrb[4].mxu0 %v1279_v32  ;;  %v2374_v32 = vrot.slane %v8843_v34, 2  ;;  %6234 = vmatprep.mubr.f32.mxu1 %v2373_v4  ;;  %v1293_v34 = vrot.slane %v8847_v31, 1  ;;  %v2378_v18 = vsel %vm727_vm1, %v2376_v48, %v2377_v5  ;;  %v1298_v48 = vrot.slane %v8874_v57, 1 }
 0x107   : > { %5980 = vmatprep.mubr.f32.mxu0 %v8206_v16  ;;  %6924 = vmatpush3.bf16.msra.mxu0 %v6921_v37  ;;  %v4956_v16 = vld [vmem:[%s9867_s1 + $0x2d0] sm:$0xff]  ;;  %v4957_v37 = vld [vmem:[%s9867_s1 + $0x2d8] sm:$0xff] }
 0x108   : > { %6926 = vmatprep.subr.bf16.mxu0 %v6925_v51  ;;  %v2375_v15 = vsel %vm727_vm1, %v2372_v59, %v2374_v32  ;;  %v2381_v59 = vrot.slane %v8864_v7, 2  ;;  %v6933_v4 = vpack.c.bf16 %v4957_v37, %v4956_v16  ;;  %v2380_v32 = vsel %vm727_vm1, %v2377_v5, %v2379_v10  ;;  %v8913_v10 = vld [vmem:[%s8045_s7 + $0x108] sm:$0xff] }
 0x109   : > { %6235 = vmatmul.mubr.f32.gmra.mrb[8].mxu1 %v2375_v15  ;;  %v1294_v16 = vsel %vm309_vm0, %v8237_v30, %v1293_v34  ;;  %v1582_v5 = vrot.slane %v8714_v8, 2  ;;  %v4960_v30 = vld [vmem:[%s9867_s1 + $0x2f0] sm:$0xff]  ;;  %v4961_v34 = vld [vmem:[%s9867_s1 + $0x2f8] sm:$0xff] }
 0x10a   : > { %5981 = vmatmul.mubr.f32.gmra.mrb[6].mxu0 %v1284_v42  ;;  %v2382_v42 = vrot.slane %v8867_v3, 2  ;;  %6237 = vmatprep.mubr.f32.mxu1 %v2378_v18  ;;  %v8889_v3 = vld [vmem:[%s8045_s7 + $0xe8] sm:$0x3]  ;;  %v8901_v18 = vld [vmem:[%s8045_s7 + $0xd0] sm:$0x3] }
 0x10b   : > { %5983 = vmatprep.mubr.f32.mxu0 %v8233_v27  ;;  %6928 = vmatpush3.bf16.msra.mxu0 %v6925_v51  ;;  %v4958_v27 = vld [vmem:[%s9867_s1 + $0x2e0] sm:$0xff]  ;;  %v4959_v51 = vld [vmem:[%s9867_s1 + $0x2e8] sm:$0xff]  ;;  %9929 = vst [vmem:[#allocation26_spill] sm:$0xff] %v8889_v3  ;;  %v2384_v15 = vrot.slane %v8889_v3, 2 }
 0x10c   : > { %6930 = vmatprep.subr.bf16.mxu0 %v6929_v19  ;;  %v2383_v37 = vsel %vm727_vm1, %v2381_v59, %v2382_v42  ;;  %v1299_v59 = vsel %vm309_vm0, %v8264_v50, %v1298_v48  ;;  %v8927_v50 = vld [vmem:[%s8045_s7 + $0xe8] sm:$0x3]  ;;  %v6941_v48 = vpack.c.bf16 %v4961_v34, %v4960_v30  ;;  %v8943_v30 = vld [vmem:[%s8045_s7 + $0x118] sm:$0x3] }
 0x10d   : > { %6238 = vmatmul.mubr.f32.gmra.mrb[10].mxu1 %v2380_v32  ;;  %v1303_v32 = vrot.slane %v8901_v18, 1  ;;  %v1308_v34 = vrot.slane %v8927_v50, 1  ;;  %v2394_v3 = vrot.slane %v8943_v30, 2 }
 0x10e   : > { %5984 = vmatmul.mubr.f32.gmra.mrb[8].mxu0 %v1289_v22  ;;  %v8898_v22 = vrot.slane %v8734_v21, 2  ;;  %6240 = vmatprep.mubr.f32.mxu1 %v2383_v37  ;;  %v2391_v37 = vrot.slane %v8913_v10, 2 }
 0x10f   : > { %5986 = vmatprep.mubr.f32.mxu0 %v8260_v46  ;;  %6932 = vmatpush3.bf16.msra.mxu0 %v6929_v19  ;;  %v6937_v46 = vpack.c.bf16 %v4959_v51, %v4958_v27  ;;  %v2385_v19 = vsel %vm727_vm1, %v2382_v42, %v2384_v15  ;;  %v8916_v27 = vld [vmem:[%s8045_s7 + $0x110] sm:$0xff]  ;;  %v8919_v51 = vld [vmem:[%s8045_s7 + $0x100] sm:$0x3] }
 0x110   : > { %6934 = vmatprep.subr.bf16.mxu0 %v6933_v4  ;;  %9930 = vst [vmem:[#allocation27_spill] sm:$0xff] %v8916_v27  ;;  %9931 = vst [vmem:[#allocation28_spill] sm:$0xff] %v8919_v51  ;;  %v2392_v42 = vrot.slane %v8916_v27, 2  ;;  %v8931_v15 = vsel %vm727_vm1, %v1582_v5, %v8898_v22  ;;  %v1304_v5 = vsel %vm309_vm0, %v8291_v6, %v1303_v32  ;;  %v8953_v27 = vrot.slane %v8734_v21, 1 }
 0x111   : > { %6241 = vmatmul.mubr.f32.gmra.mrb[12].mxu1 %v2385_v19 }
 0x112   : > { %5987 = vmatmul.mubr.f32.gmra.mrb[10].mxu0 %v1294_v16  ;;  %v2389_v16 = vrot.slane %v8919_v51, 2  ;;  %6243 = vmatprep.mubr.f32.mxu1 %v8931_v15  ;;  %v2393_v19 = vsel %vm727_vm1, %v2391_v37, %v2392_v42  ;;  %v2395_v6 = vsel %vm727_vm1, %v2392_v42, %v2394_v3  ;;  %v8965_v32 = vsel %vm309_vm0, %v1310_v58, %v8953_v27 }
 0x113   : > { %5989 = vmatprep.mubr.f32.mxu0 %v8287_v2  ;;  %6936 = vmatpush3.bf16.msra.mxu0 %v6933_v4  ;;  %v4994_v2 = vld [vmem:[%s9867_s1 + $0x300] sm:$0xff]  ;;  %v4995_v4 = vld [vmem:[%s9867_s1 + $0x308] sm:$0xff]  ;;  %v1545_v37 = vrot.slane %v8737_v17, 2 }
 0x114   : > { %6938 = vmatprep.subr.bf16.mxu0 %v6937_v46  ;;  %v2390_v51 = vsel %vm727_vm1, %v8898_v22, %v2389_v16  ;;  %v6945_v16 = vpack.c.bf16 %v4995_v4, %v4994_v2  ;;  %v5000_v2 = vld [vmem:[%s9867_s1 + $0x330] sm:$0xff]  ;;  %v5001_v4 = vld [vmem:[%s9867_s1 + $0x338] sm:$0xff] }
 0x115   : > { %6244 = vmatmul.mubr.f32.gmra.mrb[14].mxu1 %v2390_v51  ;;  %v4997_v51 = vld [vmem:[%s9867_s1 + $0x318] sm:$0xff] }
 0x116   : > { %5990 = vmatmul.mubr.f32.gmra.mrb[12].mxu0 %v1299_v59  ;;  %v8956_v59 = vld [vmem:[%s8045_s7 + $0x100] sm:$0x3]  ;;  %6246 = vmatprep.mubr.f32.mxu1 %v2393_v19  ;;  %v5004_v19 = vld [vmem:[%s9867_s1 + $0x350] sm:$0xff] }
 0x117   : > { %5992 = vmatprep.mubr.f32.mxu0 %v8314_v25  ;;  %6940 = vmatpush3.bf16.msra.mxu0 %v6937_v46  ;;  %v1309_v25 = vsel %vm309_vm0, %v8318_v28, %v1308_v34  ;;  %v1313_v46 = vrot.slane %v8956_v59, 1  ;;  %v4996_v28 = vld [vmem:[%s9867_s1 + $0x310] sm:$0xff]  ;;  %v5003_v34 = vld [vmem:[%s9867_s1 + $0x348] sm:$0xff] }
 0x118   : > { %6942 = vmatprep.subr.bf16.mxu0 %v6941_v48  ;;  %v6949_v42 = vpack.c.bf16 %v4997_v51, %v4996_v28  ;;  %v5008_v28 = vld [vmem:[%s9867_s1 + $0x370] sm:$0xff]  ;;  %v5009_v51 = vld [vmem:[%s9867_s1 + $0x378] sm:$0xff] }
 0x119   : > { %6247 = vmatmul.mubr.f32.gmra.mrb[16].mxu1 %v2395_v6  ;;  %v1314_v3 = vsel %vm309_vm0, %v8953_v27, %v1313_v46  ;;  %v5007_v46 = vld [vmem:[%s9867_s1 + $0x368] sm:$0xff] }
 0x11a   : > { %5993 = vmatmul.mubr.f32.gmra.mrb[14].mxu0 %v1304_v5  ;;  %v5002_v5 = vld [vmem:[%s9867_s1 + $0x340] sm:$0xff] }
 0x11b   : > { %5995 = vmatprep.mubr.f32.mxu0 %v8329_v44  ;;  %6944 = vmatpush3.bf16.msra.mxu0 %v6941_v48  ;;  %v1540_v44 = vrot.slane %v8703_v54, 2  ;;  %v4998_v54 = vld [vmem:[%s9867_s1 + $0x320] sm:$0xff]  ;;  %v4999_v48 = vld [vmem:[%s9867_s1 + $0x328] sm:$0xff] }
 0x11c   : > { %6946 = vmatprep.subr.bf16.mxu0 %v6945_v16  ;;  %v6953_v17 = vpack.c.bf16 %v4999_v48, %v4998_v54  ;;  %v1585_v48 = vrot.slane %v8956_v59, 2 }
 0x11d   : > { %v1541_v58 = vsel %vm727_vm1, %v8407_v40, %v1540_v44  ;;  %v1550_v40 = vrot.slane %v8766_v13, 2  ;;  %v6957_v13 = vpack.c.bf16 %v5001_v4, %v5000_v2  ;;  %v1570_v44 = vrot.slane %v8874_v57, 2  ;;  %v5018_v4 = vld [vmem:[%s9867_s1 + $0x3c0] sm:$0xff] }
 0x11e   : > { %5996 = vmatmul.mubr.f32.gmra.mrb[16].mxu0 %v1309_v25  ;;  %v5006_v25 = vld [vmem:[%s9867_s1 + $0x360] sm:$0xff]  ;;  %v6973_v57 = vpack.c.bf16 %v5009_v51, %v5008_v28 }
 0x11f   : > { %5998 = vmatprep.mubr.f32.mxu0 %v8965_v32  ;;  %v9937_v51 = vld [vmem:[#allocation19_spill] sm:$0xff] }
 0x122   : > { %5999 = vmatmul.mubr.f32.gmra.mrb[18].mxu0 %v1314_v3 }
 0x123   : > { %6033 = vmatprep.mubr.f32.mxu0 %v8420_v47  ;;  %v1546_v47 = vsel %vm727_vm1, %v8424_v63, %v1545_v37  ;;  %v1555_v63 = vrot.slane %v8793_v53, 2  ;;  %v6961_v53 = vpack.c.bf16 %v5003_v34, %v5002_v5  ;;  %v5010_v37 = vld [vmem:[%s9867_s1 + $0x380] sm:$0xff]  ;;  %v5021_v5 = vld [vmem:[%s9867_s1 + $0x3d8] sm:$0xff] }
 0x126   : > { %6034 = vmatmul.mubr.f32.vlgmr.msra.gmra.mrb[0].mxu0 %v1541_v58  ;;  %v1575_v58 = vrot.slane %v8901_v18, 2 }
 0x127   : > { %6948 = vmatpush3.bf16.msra.mxu0 %v6945_v16  ;;  %6036 = vmatprep.mubr.f32.mxu0 %v8438_v14  ;;  %v1551_v14 = vsel %vm727_vm1, %v8442_v24, %v1550_v40  ;;  %v1560_v24 = vrot.slane %v8820_v45, 2  ;;  %v5005_v16 = vld [vmem:[%s9867_s1 + $0x358] sm:$0xff]  ;;  %v5016_v40 = vld [vmem:[%s9867_s1 + $0x3b0] sm:$0xff] }
 0x128   : > { %6950 = vmatprep.subr.bf16.mxu0 %v6949_v42  ;;  %v6965_v45 = vpack.c.bf16 %v5005_v16, %v5004_v19  ;;  %v5024_v19 = vld [vmem:[%s9867_s1 + $0x3f0] sm:$0xff]  ;;  %v5025_v16 = vld [vmem:[%s9867_s1 + $0x3f8] sm:$0xff] }
 0x12a   : > { %6037 = vmatmul.mubr.f32.gmra.mrb[2].mxu0 %v1546_v47 }
 0x12b   : > { %6952 = vmatpush3.bf16.msra.mxu0 %v6949_v42  ;;  %6039 = vmatprep.mubr.f32.mxu0 %v8456_v9  ;;  %v1556_v9 = vsel %vm727_vm1, %v8460_v29, %v1555_v63  ;;  %v1565_v29 = vrot.slane %v8847_v31, 2  ;;  %v6969_v31 = vpack.c.bf16 %v5007_v46, %v5006_v25  ;;  %v5011_v42 = vld [vmem:[%s9867_s1 + $0x388] sm:$0xff]  ;;  %v9126_v25 = vld [vmem:[%s8045_s7 + $0x40] sm:$0x3] }
 0x12c   : > { %6954 = vmatprep.subr.bf16.mxu0 %v6953_v17  ;;  %v6977_v18 = vpack.c.bf16 %v5011_v42, %v5010_v37  ;;  %v9935_v46 = vld [vmem:[#allocation11_spill] sm:$0xff]  ;;  %v2089_v42 = vrot.slane %v8756_v62, 1 }
 0x12e   : > { %6040 = vmatmul.mubr.f32.gmra.mrb[4].mxu0 %v1551_v14  ;;  %v5019_v14 = vld [vmem:[%s9867_s1 + $0x3c8] sm:$0xff] }
 0x12f   : > { %6042 = vmatprep.mubr.f32.mxu0 %v8474_v1  ;;  %6956 = vmatpush3.bf16.msra.mxu0 %v6953_v17  ;;  %v9932_v1 = vld [vmem:[#allocation9_spill] sm:$0xff]  ;;  %v5017_v17 = vld [vmem:[%s9867_s1 + $0x3b8] sm:$0xff]  ;;  %v6993_v63 = vpack.c.bf16 %v5019_v14, %v5018_v4  ;;  %v2105_v4 = vrot.slane %v8840_v56, 1  ;;  %v9945_v14 = vld [vmem:[#allocation15_spill] sm:$0xff] }
 0x130   : > { %6958 = vmatprep.subr.bf16.mxu0 %v6957_v13  ;;  %v1561_v6 = vsel %vm727_vm1, %v9932_v1, %v1560_v24  ;;  %v6989_v2 = vpack.c.bf16 %v5017_v17, %v5016_v40  ;;  %v5023_v24 = vld [vmem:[%s9867_s1 + $0x3e8] sm:$0xff]  ;;  %v7005_v1 = vpack.c.bf16 %v5025_v16, %v5024_v19  ;;  %v9944_v40 = vld [vmem:[#allocation23_spill] sm:$0xff]  ;;  %v9949_v16 = vld [vmem:[#allocation17_spill] sm:$0xff] }
 0x131   : > { %v2102_v17 = vrot.slane %v9944_v40, 1 }
 0x132   : > { %6043 = vmatmul.mubr.f32.gmra.mrb[6].mxu0 %v1556_v9  ;;  %v5022_v9 = vld [vmem:[%s9867_s1 + $0x3e0] sm:$0xff] }
 0x133   : > { %6045 = vmatprep.mubr.f32.mxu0 %v8492_v49  ;;  %6960 = vmatpush3.bf16.msra.mxu0 %v6957_v13  ;;  %v9933_v49 = vld [vmem:[#allocation10_spill] sm:$0xff]  ;;  %v5020_v13 = vld [vmem:[%s9867_s1 + $0x3d0] sm:$0xff] }
 0x134   : > { %6962 = vmatprep.subr.bf16.mxu0 %v6961_v53  ;;  %v1566_v3 = vsel %vm727_vm1, %v9933_v49, %v1565_v29  ;;  %v6997_v34 = vpack.c.bf16 %v5021_v5, %v5020_v13  ;;  %v2077_v49 = vrot.slane %v9126_v25, 1  ;;  %v2109_v5 = vrot.slane %v8864_v7, 1 }
 0x136   : > { %6046 = vmatmul.mubr.f32.gmra.mrb[8].mxu0 %v1561_v6  ;;  %v9934_v6 = vld [vmem:[#allocation24_spill] sm:$0xff] }
 0x137   : > { %6048 = vmatprep.mubr.f32.mxu0 %v8510_v0  ;;  %6964 = vmatpush3.bf16.msra.mxu0 %v6961_v53  ;;  %v1571_v0 = vsel %vm727_vm1, %v8514_v20, %v1570_v44  ;;  %v1576_v20 = vsel %vm727_vm1, %v8532_v43, %v1575_v58  ;;  %v1586_v43 = vsel %vm727_vm1, %v8898_v22, %v1585_v48  ;;  %v5014_v22 = vld [vmem:[%s9867_s1 + $0x3a0] sm:$0xff]  ;;  %v2080_v44 = vrot.slane %v8699_v55, 1 }
 0x138   : > { %6966 = vmatprep.subr.bf16.mxu0 %v6965_v45  ;;  %v7001_v53 = vpack.c.bf16 %v5023_v24, %v5022_v9  ;;  %v2084_v58 = vrot.slane %v8723_v33, 1  ;;  %v2094_v48 = vrot.slane %v8783_v26, 1  ;;  %v9947_v9 = vld [vmem:[#allocation16_spill] sm:$0xff]  ;;  %v9948_v24 = vld [vmem:[#allocation26_spill] sm:$0xff] }
 0x13a   : > { %6049 = vmatmul.mubr.f32.gmra.mrb[10].mxu0 %v1566_v3  ;;  %v2079_v3 = vrot.slane %v8696_v36, 1 }
 0x13b   : > { %6051 = vmatprep.mubr.f32.mxu0 %v8528_v39  ;;  %6968 = vmatpush3.bf16.msra.mxu0 %v6965_v45  ;;  %v1580_v39 = vrot.slane %v8927_v50, 2  ;;  %v5012_v50 = vld [vmem:[%s9867_s1 + $0x390] sm:$0xff] }
 0x13c   : > { %6970 = vmatprep.subr.bf16.mxu0 %v6969_v31 }
 0x13d   : > { %v1581_v54 = vsel %vm727_vm1, %v8550_v23, %v1580_v39  ;;  %v5013_v23 = vld [vmem:[%s9867_s1 + $0x398] sm:$0xff]  ;;  %v9939_v39 = vld [vmem:[#allocation12_spill] sm:$0xff] }
 0x13e   : > { %6052 = vmatmul.mubr.f32.gmra.mrb[12].mxu0 %v1571_v0  ;;  %v6981_v59 = vpack.c.bf16 %v5013_v23, %v5012_v50  ;;  %v2082_v0 = vrot.slane %v9937_v51, 1  ;;  %v9941_v50 = vld [vmem:[#allocation13_spill] sm:$0xff]  ;;  %v9942_v23 = vld [vmem:[#allocation22_spill] sm:$0xff] }
 0x13f   : > { %6054 = vmatprep.mubr.f32.mxu0 %v8546_v38  ;;  %6972 = vmatpush3.bf16.msra.mxu0 %v6969_v31  ;;  %v9059_v38 = vld [vmem:[%s8045_s7 + $0x30] sm:$0xff]  ;;  %v9936_v31 = vld [vmem:[#allocation27_spill] sm:$0xff] }
 0x140   : > { %6974 = vmatprep.subr.bf16.mxu0 %v6973_v57  ;;  %v2074_v29 = vrot.slane %v9059_v38, 1 }
 0x142   : > { %6055 = vmatmul.mubr.f32.gmra.mrb[14].mxu0 %v1576_v20  ;;  %v2090_v20 = vrot.slane %v8759_v52, 1 }
 0x143   : > { %6057 = vmatprep.mubr.f32.mxu0 %v8558_v12  ;;  %6976 = vmatpush3.bf16.msra.mxu0 %v6973_v57  ;;  %v9069_v12 = vld [vmem:[%s8045_s7 + $0x38] sm:$0xff]  ;;  %v2081_v57 = vsel %vm309_vm0, %v2079_v3, %v2080_v44  ;;  %v2122_v3 = vrot.slane %v8943_v30, 1 }
 0x144   : > { %6978 = vmatprep.subr.bf16.mxu0 %v6977_v18  ;;  %v2075_v45 = vrot.slane %v9069_v12, 1 }
 0x146   : > { %6058 = vmatmul.mubr.f32.gmra.mrb[16].mxu0 %v1581_v54  ;;  %v2078_v28 = vsel %vm309_vm0, %v2075_v45, %v2077_v49 }
 0x147   : > { %6060 = vmatprep.mubr.f32.mxu0 %v8931_v15  ;;  %v5015_v15 = vld [vmem:[%s9867_s1 + $0x3a8] sm:$0xff] }
 0x148   : > { %v6985_v47 = vpack.c.bf16 %v5015_v15, %v5014_v22  ;;  %v2099_v22 = vrot.slane %v8810_v61, 1  ;;  %v2100_v15 = vrot.slane %v8813_v60, 1 }
 0x14a   : > { %6061 = vmatmul.mubr.f32.gmra.mrb[18].mxu0 %v1586_v43  ;;  %v2095_v43 = vrot.slane %v8786_v35, 1 }
 0x14b   : > { %6095 = vmatprep.mubr.f32.mxu0 %v9059_v38 }
 0x14e   : > { %6096 = vmatmul.mubr.f32.vlgmr.msra.gmra.mrb[0].mxu0 %v9069_v12 }
 0x14f   : > { %6980 = vmatpush3.bf16.msra.mxu0 %v6977_v18  ;;  %6098 = vmatprep.mubr.f32.mxu0 %v8696_v36  ;;  %v2083_v36 = vsel %vm309_vm0, %v2080_v44, %v2082_v0  ;;  %v9940_v18 = vld [vmem:[#allocation21_spill] sm:$0xff]  ;;  %v2346_v44 = vrot.slane %v9059_v38, 2  ;;  %v7883_v0 = vmov 0.0  }
 0x150   : > { %6982 = vmatprep.subr.bf16.mxu0 %v6981_v59  ;;  %v2092_v54 = vrot.slane %v9940_v18, 1  ;;  %2771 = vst [vmem:[#allocation2 + $0x20] sm:$0xff] %v7883_v0  ;;  %2772 = vst [vmem:[#allocation2 + $0x28] sm:$0x3] %v7883_v0  ;;  %v2870_v18 = vld [vmem:[#allocation3 + $0xa0] sm:$0xff] }
 0x151   : > { %2767 = vst [vmem:[#allocation2] sm:$0xff] %v7883_v0  ;;  %2768 = vst [vmem:[#allocation2 + $0x8] sm:$0xff] %v7883_v0 }
 0x152   : > { %6099 = vmatmul.mubr.f32.gmra.mrb[2].mxu0 %v8699_v55  ;;  %v9938_v55 = vld [vmem:[#allocation20_spill] sm:$0xff]  ;;  %2769 = vst [vmem:[#allocation2 + $0x10] sm:$0x3] %v7883_v0  ;;  %2770 = vst [vmem:[#allocation2 + $0x18] sm:$0xff] %v7883_v0 }
 0x153   : > { %6984 = vmatpush3.bf16.msra.mxu0 %v6981_v59  ;;  %6101 = vmatprep.mubr.f32.mxu0 %v8723_v33  ;;  %v2087_v37 = vrot.slane %v9938_v55, 1  ;;  %v2097_v59 = vrot.slane %v9942_v23, 1  ;;  %2773 = vst [vmem:[#allocation2 + $0x30] sm:$0xff] %v7883_v0  ;;  %2774 = vst [vmem:[#allocation2 + $0x38] sm:$0xff] %v7883_v0 }
 0x154   : > { %6986 = vmatprep.subr.bf16.mxu0 %v6985_v47  ;;  %2775 = vst [vmem:[#allocation2 + $0x40] sm:$0x3] %v7883_v0  ;;  %2776 = vst [vmem:[#allocation2 + $0x48] sm:$0xff] %v7883_v0 }
 0x155   : > { %2777 = vst [vmem:[#allocation2 + $0x50] sm:$0xff] %v7883_v0  ;;  %2778 = vst [vmem:[#allocation2 + $0x58] sm:$0x3] %v7883_v0 }
 0x156   : > { %6102 = vmatmul.mubr.f32.gmra.mrb[4].mxu0 %v8726_v41  ;;  %2779 = vst [vmem:[#allocation2 + $0x60] sm:$0xff] %v7883_v0  ;;  %2780 = vst [vmem:[#allocation2 + $0x68] sm:$0xff] %v7883_v0 }
 0x157   : > { %6104 = vmatprep.mubr.f32.mxu0 %v8756_v62  ;;  %6988 = vmatpush3.bf16.msra.mxu0 %v6985_v47  ;;  %v2091_v62 = vsel %vm309_vm0, %v2089_v42, %v2090_v20  ;;  %v9943_v47 = vld [vmem:[#allocation14_spill] sm:$0xff]  ;;  %2781 = vst [vmem:[#allocation2 + $0x70] sm:$0x3] %v7883_v0  ;;  %2782 = vst [vmem:[#allocation2 + $0x78] sm:$0xff] %v7883_v0  ;;  %v2868_v42 = vld [vmem:[#allocation3 + $0x90] sm:$0xff] }
 0x158   : > { %6990 = vmatprep.subr.bf16.mxu0 %v6989_v2  ;;  %2783 = vst [vmem:[#allocation2 + $0x80] sm:$0xff] %v7883_v0  ;;  %2784 = vst [vmem:[#allocation2 + $0x88] sm:$0x3] %v7883_v0 }
 0x159   : > { %2785 = vst [vmem:[#allocation2 + $0x90] sm:$0xff] %v7883_v0  ;;  %2786 = vst [vmem:[#allocation2 + $0x98] sm:$0xff] %v7883_v0 }
 0x15a   : > { %6105 = vmatmul.mubr.f32.gmra.mrb[6].mxu0 %v8759_v52  ;;  %v2093_v52 = vsel %vm309_vm0, %v2090_v20, %v2092_v54  ;;  %2787 = vst [vmem:[#allocation2 + $0xa0] sm:$0x3] %v7883_v0  ;;  %2788 = vst [vmem:[#allocation2 + $0xa8] sm:$0xff] %v7883_v0  ;;  %v2869_v20 = vld [vmem:[#allocation3 + $0x98] sm:$0xff]  ;;  %v2871_v54 = vld [vmem:[#allocation3 + $0xa8] sm:$0xff] }
 0x15b   : > { %6107 = vmatprep.mubr.f32.mxu0 %v8783_v26  ;;  %6992 = vmatpush3.bf16.msra.mxu0 %v6989_v2  ;;  %v2096_v26 = vsel %vm309_vm0, %v2094_v48, %v2095_v43  ;;  %v2104_v2 = vrot.slane %v8837_v11, 1  ;;  %2789 = vst [vmem:[#allocation2 + $0xb0] sm:$0xff] %v7883_v0  ;;  %2790 = vst [vmem:[#allocation2 + $0xb8] sm:$0x3] %v7883_v0  ;;  %v7049_v48 = vpack.c.bf16 %v2871_v54, %v2870_v18 }
 0x15c   : > { %6994 = vmatprep.subr.bf16.mxu0 %v6993_v63  ;;  %2791 = vst [vmem:[#allocation2 + $0xc0] sm:$0xff] %v7883_v0  ;;  %2792 = vst [vmem:[#allocation2 + $0xc8] sm:$0xff] %v7883_v0 }
 0x15d   : > { %2793 = vst [vmem:[#allocation2 + $0xd0] sm:$0x3] %v7883_v0  ;;  %2794 = vst [vmem:[#allocation2 + $0xd8] sm:$0xff] %v7883_v0 }
 0x15e   : > { %6108 = vmatmul.mubr.f32.gmra.mrb[8].mxu0 %v8786_v35  ;;  %v2098_v35 = vsel %vm309_vm0, %v2095_v43, %v2097_v59  ;;  %2795 = vst [vmem:[#allocation2 + $0xe0] sm:$0xff] %v7883_v0  ;;  %2796 = vst [vmem:[#allocation2 + $0xe8] sm:$0x3] %v7883_v0 }
 0x15f   : > { %6110 = vmatprep.mubr.f32.mxu0 %v8810_v61  ;;  %6996 = vmatpush3.bf16.msra.mxu0 %v6993_v63  ;;  %v2101_v61 = vsel %vm309_vm0, %v2099_v22, %v2100_v15  ;;  %v9946_v63 = vld [vmem:[#allocation25_spill] sm:$0xff] }
 0x160   : > { %6998 = vmatprep.subr.bf16.mxu0 %v6997_v34  ;;  %v2107_v13 = vrot.slane %v9946_v63, 1  ;;  %v2879_v63 = vld [vmem:[#allocation3 + $0xe8] sm:$0xff] }
 0x162   : > { %6111 = vmatmul.mubr.f32.gmra.mrb[10].mxu0 %v8813_v60  ;;  %v2103_v60 = vsel %vm309_vm0, %v2100_v15, %v2102_v17  ;;  %v2874_v15 = vld [vmem:[#allocation3 + $0xc0] sm:$0xff]  ;;  %v2876_v17 = vld [vmem:[#allocation3 + $0xd0] sm:$0xff] }
 0x163   : > { %6113 = vmatprep.mubr.f32.mxu0 %v8837_v11  ;;  %7000 = vmatpush3.bf16.msra.mxu0 %v6997_v34  ;;  %v2110_v34 = vrot.slane %v9934_v6, 1  ;;  %v2106_v11 = vsel %vm309_vm0, %v2104_v2, %v2105_v4  ;;  %v2877_v2 = vld [vmem:[#allocation3 + $0xd8] sm:$0xff] }
 0x164   : > { %7002 = vmatprep.subr.bf16.mxu0 %v7001_v53 }
 0x165   : > { %v2111_v19 = vsel %vm309_vm0, %v2109_v5, %v2110_v34  ;;  %v2880_v5 = vld [vmem:[#allocation3 + $0xf0] sm:$0xff] }
 0x166   : > { %6114 = vmatmul.mubr.f32.gmra.mrb[12].mxu0 %v8840_v56  ;;  %v2108_v56 = vsel %vm309_vm0, %v2105_v4, %v2107_v13  ;;  %v7061_v4 = vpack.c.bf16 %v2877_v2, %v2876_v17 }
 0x167   : > { %6116 = vmatprep.mubr.f32.mxu0 %v8864_v7  ;;  %7004 = vmatpush3.bf16.msra.mxu0 %v7001_v53  ;;  %v2112_v53 = vrot.slane %v9948_v24, 1 }
 0x168   : > { %7006 = vmatprep.subr.bf16.mxu0 %v7005_v1 }
 0x169   : > { %v2113_v7 = vsel %vm309_vm0, %v2110_v34, %v2112_v53  ;;  %v2881_v34 = vld [vmem:[#allocation3 + $0xf8] sm:$0xff]  ;;  %v9239_v53 = vstv %s5044_s13  ;;  %s5078_s13 = sshll.u32 %s7862_s18, 4 }
 0x16a   : > { %6117 = vmatmul.mubr.f32.gmra.mrb[14].mxu0 %v9934_v6  ;;  %v2690_v0 = vadd.s32 3, %v9239_v53  ;;  %s4738_s18 = sadd.s32 %s5078_s13, %s5074_s8 }
 0x16b   : > { %6119 = vmatprep.mubr.f32.mxu0 %v8714_v8  ;;  %7008 = vmatpush3.bf16.msra.mxu0 %v7005_v1  ;;  %v2076_v8 = vsel %vm309_vm0, %v2074_v29, %v2075_v45  ;;  %v9950_v1 = vld [vmem:[#allocation28_spill] sm:$0xff]  ;;  %v2119_v29 = vrot.slane %v8913_v10, 1  ;;  %v2120_v45 = vrot.slane %v9936_v31, 1  ;;  %s5075_s19 = sshll.u32 %s4738_s18, 7 }
 0x16c   : > { %7010 = vmatprep.subr.bf16.mxu0 %v9935_v46  ;;  %v2117_v6 = vrot.slane %v9950_v1, 1  ;;  %vm2700_vm8 = vcmp.ge.s32.totalorder %v2690_v0, 0  ;;  %vm2710_vm9 = vcmp.lt.s32.totalorder %v2690_v0, 16  ;;  %s9806_s11 = scalar_lea.hbm %s9870_s4, %s5075_s19 }
 0x16d   : > { %vm9304_vm10 = vmand %vm2700_vm8, %vm2710_vm9 }
 0x16e   : > { %6120 = vmatmul.mubr.f32.gmra.mrb[16].mxu0 %v8734_v21  ;;  %v2085_v21 = vrot.slane %v8726_v41, 1  ;;  %v2118_v49 = vsel %vm309_vm0, %v8953_v27, %v2117_v6 }
 0x16f   : > { %6122 = vmatprep.mubr.f32.mxu0 %v8913_v10  ;;  %v2347_v10 = vrot.slane %v9069_v12, 2 }
 0x170   : > { %v2086_v33 = vsel %vm309_vm0, %v2084_v58, %v2085_v21  ;;  %v2088_v41 = vsel %vm309_vm0, %v2085_v21, %v2087_v37  ;;  %v2866_v21 = vld [vmem:[#allocation3 + $0x80] sm:$0xff] }
 0x172   : > { %6123 = vmatmul.mubr.f32.gmra.mrb[18].mxu0 %v9936_v31  ;;  %v2123_v31 = vsel %vm309_vm0, %v2120_v45, %v2122_v3 }
 0x173   : > { %6157 = vmatprep.mubr.f32.mxu0 %v2076_v8  ;;  %v2121_v8 = vsel %vm309_vm0, %v2119_v29, %v2120_v45  ;;  %v9251_v29 = vld [vmem:[%s9869_s3 + $0x1] ss:$0 sm:$0xff] }
 0x176   : > { %6158 = vmatmul.mubr.f32.vlgmr.msra.gmra.mrb[0].mxu0 %v2078_v28  ;;  %v2349_v28 = vrot.slane %v9126_v25, 2 }
 0x177   : > { %7012 = vmatpush3.bf16.msra.mxu0 %v9935_v46  ;;  %6160 = vmatprep.mubr.f32.mxu0 %v2081_v57  ;;  %v9951_v46 = vld [vmem:[#allocation18_spill] sm:$0xff] }
 0x178   : > { %7014 = vmatprep.subr.bf16.mxu0 %v9939_v39  ;;  %v2350_v27 = vsel %vm727_vm1, %v2347_v10, %v2349_v28  ;;  %v2867_v57 = vld [vmem:[#allocation3 + $0x88] sm:$0xff] }
 0x17a   : > { %6161 = vmatmul.mubr.f32.gmra.mrb[2].mxu0 %v2083_v36  ;;  %v7041_v36 = vpack.c.bf16 %v2867_v57, %v2866_v21 }
 0x17b   : > { %7016 = vmatpush3.bf16.msra.mxu0 %v9939_v39  ;;  %6163 = vmatprep.mubr.f32.mxu0 %v2086_v33  ;;  %v7045_v39 = vpack.c.bf16 %v2869_v20, %v2868_v42 }
 0x17c   : > { %7018 = vmatprep.subr.bf16.mxu0 %v9941_v50  ;;  %7042 = vmatprep.subr.bf16.mxu1 %v7041_v36 }
 0x17d   : > { %7044 = vmatpush3.bf16.msra.mxu1 %v7041_v36 }
 0x17e   : > { %6164 = vmatmul.mubr.f32.gmra.mrb[4].mxu0 %v2088_v41  ;;  %7046 = vmatprep.subr.bf16.mxu1 %v7045_v39 }
 0x17f   : > { %6166 = vmatprep.mubr.f32.mxu0 %v2091_v62  ;;  %7020 = vmatpush3.bf16.msra.mxu0 %v9941_v50  ;;  %v2872_v62 = vld [vmem:[#allocation3 + $0xb0] sm:$0xff] }
 0x180   : > { %7022 = vmatprep.subr.bf16.mxu0 %v9943_v47 }
 0x181   : > { %7048 = vmatpush3.bf16.msra.mxu1 %v7045_v39 }
 0x182   : > { %6167 = vmatmul.mubr.f32.gmra.mrb[6].mxu0 %v2093_v52  ;;  %7050 = vmatprep.subr.bf16.mxu1 %v7049_v48  ;;  %v2873_v52 = vld [vmem:[#allocation3 + $0xb8] sm:$0xff] }
 0x183   : > { %6169 = vmatprep.mubr.f32.mxu0 %v2096_v26  ;;  %7024 = vmatpush3.bf16.msra.mxu0 %v9943_v47  ;;  %v7053_v23 = vpack.c.bf16 %v2873_v52, %v2872_v62  ;;  %v2875_v26 = vld [vmem:[#allocation3 + $0xc8] sm:$0xff]  ;;  %v2691_v62 = vadd.s32 4, %v9239_v53 }
 0x184   : > { %7026 = vmatprep.subr.bf16.mxu0 %v9945_v14  ;;  %v7057_v47 = vpack.c.bf16 %v2875_v26, %v2874_v15 }
 0x185   : > { %7052 = vmatpush3.bf16.msra.mxu1 %v7049_v48  ;;  %vm2701_vm11 = vcmp.ge.s32.totalorder %v2691_v62, 0  ;;  %vm2711_vm12 = vcmp.lt.s32.totalorder %v2691_v62, 16 }
 0x186   : > { %6170 = vmatmul.mubr.f32.gmra.mrb[8].mxu0 %v2098_v35  ;;  %7054 = vmatprep.subr.bf16.mxu1 %v7053_v23  ;;  %vm9326_vm13 = vmand %vm2701_vm11, %vm2711_vm12 }
 0x187   : > { %6172 = vmatprep.mubr.f32.mxu0 %v2101_v61  ;;  %7028 = vmatpush3.bf16.msra.mxu0 %v9945_v14 }
 0x188   : > { %7030 = vmatprep.subr.bf16.mxu0 %v9947_v9 }
 0x189   : > { %7056 = vmatpush3.bf16.msra.mxu1 %v7053_v23 }
 0x18a   : > { %6173 = vmatmul.mubr.f32.gmra.mrb[10].mxu0 %v2103_v60  ;;  %7058 = vmatprep.subr.bf16.mxu1 %v7057_v47  ;;  %v2878_v60 = vld [vmem:[#allocation3 + $0xe0] sm:$0xff] }
 0x18b   : > { %6175 = vmatprep.mubr.f32.mxu0 %v2106_v11  ;;  %7032 = vmatpush3.bf16.msra.mxu0 %v9947_v9  ;;  %v7065_v13 = vpack.c.bf16 %v2879_v63, %v2878_v60  ;;  %v7069_v11 = vpack.c.bf16 %v2881_v34, %v2880_v5  ;;  %v2833_v9 = vld [vmem:[#allocation3] sm:$0xff]  ;;  %v2692_v34 = vadd.s32 5, %v9239_v53 }
 0x18c   : > { %7034 = vmatprep.subr.bf16.mxu0 %v9949_v16 }
 0x18d   : > { %7060 = vmatpush3.bf16.msra.mxu1 %v7057_v47  ;;  %vm2702_vm14 = vcmp.ge.s32.totalorder %v2692_v34, 0  ;;  %vm2712_vm15 = vcmp.lt.s32.totalorder %v2692_v34, 16 }
 0x18e   : > { %6176 = vmatmul.mubr.f32.gmra.mrb[12].mxu0 %v2108_v56  ;;  %7062 = vmatprep.subr.bf16.mxu1 %v7061_v4  ;;  %v2834_v56 = vld [vmem:[#allocation3 + $0x8] sm:$0xff] }
 0x18f   : > { %6178 = vmatprep.mubr.f32.mxu0 %v2111_v19  ;;  %7036 = vmatpush3.bf16.msra.mxu0 %v9949_v16  ;;  %v9235_v24 = vpack.c.bf16 %v2834_v56, %v2833_v9  ;;  %v2688_v19 = vadd.s32 1, %v9239_v53 }
 0x190   : > { %7038 = vmatprep.subr.bf16.mxu0 %v9951_v46 }
 0x191   : > { %7064 = vmatpush3.bf16.msra.mxu1 %v7061_v4  ;;  %vm2698_vm2 = vcmp.ge.s32.totalorder %v2688_v19, 0  ;;  %vm2708_vm3 = vcmp.lt.s32.totalorder %v2688_v19, 16 }
 0x192   : > { %6179 = vmatmul.mubr.f32.gmra.mrb[14].mxu0 %v2113_v7  ;;  %7066 = vmatprep.subr.bf16.mxu1 %v7065_v13  ;;  %v9245_v7 = vld [vmem:[%s9869_s3] ss:$0 sm:$0xff]  ;;  %vm9261_vm4 = vmand %vm2698_vm2, %vm2708_vm3 }
 0x193   : > { %6181 = vmatprep.mubr.f32.mxu0 %v8965_v32  ;;  %7040 = vmatpush3.bf16.msra.mxu0 %v9951_v46  ;;  %v2348_v32 = vsel %vm727_vm1, %v2346_v44, %v2347_v10  ;;  %v2689_v46 = vadd.s32 2, %v9239_v53  ;;  %vm9347_vm1 = vmand %vm2702_vm14, %vm2712_vm15 }
 0x195   : > { %7068 = vmatpush3.bf16.msra.mxu1 %v7065_v13  ;;  %vm2699_vm5 = vcmp.ge.s32.totalorder %v2689_v46, 0  ;;  %vm2709_vm6 = vcmp.lt.s32.totalorder %v2689_v46, 16 }
 0x196   : > { %6182 = vmatmul.mubr.f32.gmra.mrb[16].mxu0 %v2118_v49  ;;  %7070 = vmatprep.subr.bf16.mxu1 %v7069_v11  ;;  %vm9283_vm7 = vmand %vm2699_vm5, %vm2709_vm6 }
 0x197   : > { %6184 = vmatprep.mubr.f32.mxu0 %v2121_v8 }
 0x199   : > { %7072 = vmatpush3.bf16.msra.mxu1 %v7069_v11 }
 0x19a   : > { %6185 = vmatmul.mubr.f32.gmra.mrb[18].mxu0 %v2123_v31  ;;  %7074 = vmatprep.subr.bf16.mxu1 %v9235_v24 }
 0x19b   : > { %6219 = vmatprep.mubr.f32.mxu0 %v2348_v32 }
 0x19e   : > { %6220 = vmatmul.mubr.f32.vlgmr.msra.gmra.mrb[0].mxu0 %v2350_v27 }
 0x1cc   : > { %v9199_v30 = vpop.f32.mrb[0].mxu1 }
 0x1cd   : > { %v9201_v38 = vpop.f32.mrb[1].mxu1 }
 0x1d0   : > { %v9203_v51 = vpop.f32.mrb[2].mxu1 }
 0x1d1   : > { %v9205_v12 = vpop.f32.mrb[3].mxu1 }
 0x1d4   : > { %v9207_v25 = vpop.f32.mrb[4].mxu1 }
 0x1d5   : > { %v9209_v58 = vpop.f32.mrb[5].mxu1 }
 0x1d8   : > { %v9211_v55 = vpop.f32.mrb[6].mxu1 }
 0x1d9   : > { %v9213_v37 = vpop.f32.mrb[7].mxu1 }
 0x1dc   : > { %v9215_v33 = vpop.f32.mrb[8].mxu1 }
 0x1dd   : > { %v9217_v41 = vpop.f32.mrb[9].mxu1 }
 0x1e0   : > { %v9219_v43 = vpop.f32.mrb[10].mxu1 }
 0x1e1   : > { %v9221_v50 = vpop.f32.mrb[11].mxu1 }
 0x1e4   : > { %v9223_v59 = vpop.f32.mrb[12].mxu1 }
 0x1e5   : > { %v9225_v22 = vpop.f32.mrb[13].mxu1 }
 0x1e8   : > { %v9227_v35 = vpop.f32.mrb[14].mxu1 }
 0x1e9   : > { %v9229_v40 = vpop.f32.mrb[15].mxu1 }
 0x1ec   : > { %v9231_v61 = vpop.f32.mrb[16].mxu1 }
 0x1ed   : > { %v9233_v14 = vpop.f32.mrb[17].mxu1 }
 0x24d   : > { %v6162_v16 = vpop.f32.mrb[2].mxu0 }
 0x24e   : > { %v7345_v1 = vadd.f32 %v9199_v30, %v6162_v16  ;;  %v2237_v6 = vpop.f32.mrb[3].mxu0 }
 0x24f   : > { %v7346_v45 = vadd.f32 %v9201_v38, %v2237_v6 }
 0x250   : > { %v2625_v49 = vmul.f32 %v7345_v1, %v9245_v7 }
 0x251   : > { %v2624_v3 = vmul.f32 %v7346_v45, %v9245_v7  ;;  %v6165_v44 = vpop.f32.mrb[4].mxu0 }
 0x252   : > { %v9258_v8 = vadd.f32 %v9251_v29, %v2625_v49  ;;  %v7347_v10 = vadd.f32 %v9203_v51, %v6165_v44  ;;  %v2247_v31 = vpop.f32.mrb[5].mxu0 }
 0x253   : > { %v2648_v32 = vadd.f32 %v9251_v29, %v2624_v3  ;;  %v7348_v27 = vadd.f32 %v9205_v12, %v2247_v31  ;;  %v2693_v3 = vadd.s32 6, %v9239_v53 }
 0x254   : > { %v2669_v30 = vmax.f32 %v9258_v8, 0.0  ;;  %v2627_v38 = vmul.f32 %v7347_v10, %v9245_v7  ;;  %v2843_v8 = vld [vmem:[#allocation3 + $0x50] sm:$0xff] }
 0x255   : > { %v9270_v21 = vmax.f32 %v2648_v32, 0.0  ;;  %v2626_v51 = vmul.f32 %v7348_v27, %v9245_v7  ;;  %v6168_v57 = vpop.f32.mrb[6].mxu0  ;;  %vm2703_vm2 = vcmp.ge.s32.totalorder %v2693_v3, 0  ;;  %vm2713_vm3 = vcmp.lt.s32.totalorder %v2693_v3, 16 }
 0x256   : > { %v2750_v36 = vsel %vm9261_vm4, %v2669_v30, 0.0  ;;  %v2651_v42 = vadd.f32 %v9251_v29, %v2627_v38  ;;  %v7349_v12 = vadd.f32 %v9207_v25, %v6168_v57  ;;  %v2257_v20 = vpop.f32.mrb[7].mxu0  ;;  %vm9369_vm5 = vmand %vm2703_vm2, %vm2713_vm3  ;;  %vm2697_vm3 = vcmp.ge.s32.totalorder %v9239_v53, 0 }
 0x257   : > { %2800 = vst [vmem:[#allocation2 + $0x21] sm:$0xff] %v2750_v36  ;;  %v2749_v39 = vsel %vm9261_vm4, %v9270_v21, 0.0  ;;  %v2650_v54 = vadd.f32 %v9251_v29, %v2626_v51  ;;  %v7350_v48 = vadd.f32 %v9209_v58, %v2257_v20  ;;  %v2694_v20 = vadd.s32 7, %v9239_v53 }
 0x258   : > { %2799 = vst [vmem:[#allocation2 + $0x19] sm:$0xff] %v2749_v39  ;;  %v9290_v52 = vmax.f32 %v2651_v42, 0.0  ;;  %v2629_v25 = vmul.f32 %v7349_v12, %v9245_v7 }
 0x259   : > { %v9293_v23 = vmax.f32 %v2650_v54, 0.0  ;;  %v2628_v15 = vmul.f32 %v7350_v48, %v9245_v7  ;;  %v6171_v26 = vpop.f32.mrb[8].mxu0  ;;  %vm2704_vm6 = vcmp.ge.s32.totalorder %v2694_v20, 0  ;;  %vm2714_vm8 = vcmp.lt.s32.totalorder %v2694_v20, 16 }
 0x25a   : > { %v2752_v47 = vsel %vm9283_vm7, %v9290_v52, 0.0  ;;  %v2653_v58 = vadd.f32 %v9251_v29, %v2629_v25  ;;  %v7351_v17 = vadd.f32 %v9211_v55, %v6171_v26  ;;  %v2267_v2 = vpop.f32.mrb[9].mxu0  ;;  %vm9390_vm9 = vmand %vm2704_vm6, %vm2714_vm8  ;;  %vm2707_vm6 = vcmp.lt.s32.totalorder %v9239_v53, 16 }
 0x25b   : > { %2802 = vst [vmem:[#allocation2 + $0x39] sm:$0xff] %v2752_v47  ;;  %v2751_v4 = vsel %vm9283_vm7, %v9293_v23, 0.0  ;;  %v2652_v63 = vadd.f32 %v9251_v29, %v2628_v15  ;;  %v7352_v13 = vadd.f32 %v9213_v37, %v2267_v2  ;;  %v2695_v2 = vadd.s32 8, %v9239_v53 }
 0x25c   : > { %2801 = vst [vmem:[#allocation2 + $0x31] sm:$0xff] %v2751_v4  ;;  %v9310_v5 = vmax.f32 %v2653_v58, 0.0  ;;  %v2631_v55 = vmul.f32 %v7351_v17, %v9245_v7 }
 0x25d   : > { %v9314_v11 = vmax.f32 %v2652_v63, 0.0  ;;  %v2630_v9 = vmul.f32 %v7352_v13, %v9245_v7  ;;  %v6174_v56 = vpop.f32.mrb[10].mxu0  ;;  %vm2705_vm11 = vcmp.ge.s32.totalorder %v2695_v2, 0  ;;  %vm2715_vm12 = vcmp.lt.s32.totalorder %v2695_v2, 16 }
 0x25e   : > { %v2754_v19 = vsel %vm9304_vm10, %v9310_v5, 0.0  ;;  %v2655_v16 = vadd.f32 %v9251_v29, %v2631_v55  ;;  %v7353_v37 = vadd.f32 %v9215_v33, %v6174_v56  ;;  %v2277_v1 = vpop.f32.mrb[11].mxu0  ;;  %vm9414_vm14 = vmand %vm2705_vm11, %vm2715_vm12 }
 0x25f   : > { %2804 = vst [vmem:[#allocation2 + $0x51] sm:$0xff] %v2754_v19  ;;  %v2753_v6 = vsel %vm9304_vm10, %v9314_v11, 0.0  ;;  %v2654_v46 = vadd.f32 %v9251_v29, %v2630_v9  ;;  %v7354_v49 = vadd.f32 %v9217_v41, %v2277_v1  ;;  %vm9443_vm11 = vmand %vm2697_vm3, %vm2707_vm6  ;;  %v9500_v2 = vld [vmem:[#allocation2 + $0x18] sm:$0xff] }
 0x260   : > { %2803 = vst [vmem:[#allocation2 + $0x49] sm:$0xff] %v2753_v6  ;;  %v9333_v44 = vmax.f32 %v2655_v16, 0.0  ;;  %v2633_v33 = vmul.f32 %v7353_v37, %v9245_v7 }
 0x261   : > { %v9336_v10 = vmax.f32 %v2654_v46, 0.0  ;;  %v2632_v31 = vmul.f32 %v7354_v49, %v9245_v7  ;;  %v6177_v32 = vpop.f32.mrb[12].mxu0  ;;  %v2696_v46 = vadd.s32 9, %v9239_v53 }
 0x262   : > { %v2756_v27 = vsel %vm9326_vm13, %v9333_v44, 0.0  ;;  %v2657_v41 = vadd.f32 %v9251_v29, %v2633_v33  ;;  %v7355_v38 = vadd.f32 %v9219_v43, %v6177_v32  ;;  %v2287_v0 = vpop.f32.mrb[13].mxu0 }
 0x263   : > { %2806 = vst [vmem:[#allocation2 + $0x69] sm:$0xff] %v2756_v27  ;;  %v2755_v51 = vsel %vm9326_vm13, %v9336_v10, 0.0  ;;  %v2656_v36 = vadd.f32 %v9251_v29, %v2632_v31  ;;  %v7356_v42 = vadd.f32 %v9221_v50, %v2287_v0  ;;  %vm2706_vm15 = vcmp.ge.s32.totalorder %v2696_v46, 0 }
 0x264   : > { %2805 = vst [vmem:[#allocation2 + $0x61] sm:$0xff] %v2755_v51  ;;  %v9353_v12 = vmax.f32 %v2657_v41, 0.0  ;;  %v2635_v43 = vmul.f32 %v7355_v38, %v9245_v7  ;;  %vm2716_vm2 = vcmp.lt.s32.totalorder %v2696_v46, 16  ;;  %v2840_v46 = vld [vmem:[#allocation3 + $0x38] sm:$0xff]  ;;  %v3975_v38 = vld [vmem:[#allocation3 + $0x340] sm:$0xff] }
 0x265   : > { %v9357_v39 = vmax.f32 %v2656_v36, 0.0  ;;  %v2634_v54 = vmul.f32 %v7356_v42, %v9245_v7  ;;  %v6180_v48 = vpop.f32.mrb[14].mxu0  ;;  %vm2726_vm8 = vmand %vm2706_vm15, %vm2716_vm2 }
 0x266   : > { %v2758_v62 = vsel %vm9347_vm1, %v9353_v12, 0.0  ;;  %v2659_v25 = vadd.f32 %v9251_v29, %v2635_v43  ;;  %v7357_v50 = vadd.f32 %v9223_v59, %v6180_v48  ;;  %v2297_v15 = vpop.f32.mrb[15].mxu0 }
 0x267   : > { %2808 = vst [vmem:[#allocation2 + $0x81] sm:$0xff] %v2758_v62  ;;  %v2757_v26 = vsel %vm9347_vm1, %v9357_v39, 0.0  ;;  %v2658_v58 = vadd.f32 %v9251_v29, %v2634_v54  ;;  %v7358_v17 = vadd.f32 %v9225_v22, %v2297_v15 }
 0x268   : > { %2807 = vst [vmem:[#allocation2 + $0x79] sm:$0xff] %v2757_v26  ;;  %v9376_v4 = vmax.f32 %v2659_v25, 0.0  ;;  %v2637_v59 = vmul.f32 %v7357_v50, %v9245_v7 }
 0x269   : > { %v9379_v63 = vmax.f32 %v2658_v58, 0.0  ;;  %v2636_v13 = vmul.f32 %v7358_v17, %v9245_v7  ;;  %v6183_v55 = vpop.f32.mrb[16].mxu0 }
 0x26a   : > { %v2760_v34 = vsel %vm9369_vm5, %v9376_v4, 0.0  ;;  %v2661_v22 = vadd.f32 %v9251_v29, %v2637_v59  ;;  %v7359_v9 = vadd.f32 %v9227_v35, %v6183_v55  ;;  %v2307_v56 = vpop.f32.mrb[17].mxu0 }
 0x26b   : > { %2810 = vst [vmem:[#allocation2 + $0x99] sm:$0xff] %v2760_v34  ;;  %v2759_v19 = vsel %vm9369_vm5, %v9379_v63, 0.0  ;;  %v2660_v37 = vadd.f32 %v9251_v29, %v2636_v13  ;;  %v7360_v1 = vadd.f32 %v9229_v40, %v2307_v56  ;;  %v2835_v34 = vld [vmem:[#allocation3 + $0x10] sm:$0xff] }
 0x26c   : > { %2809 = vst [vmem:[#allocation2 + $0x91] sm:$0xff] %v2759_v19  ;;  %v9396_v6 = vmax.f32 %v2661_v22, 0.0  ;;  %v2639_v35 = vmul.f32 %v7359_v9, %v9245_v7  ;;  %v2836_v22 = vld [vmem:[#allocation3 + $0x18] sm:$0xff] }
 0x26d   : > { %v9400_v49 = vmax.f32 %v2660_v37, 0.0  ;;  %v2638_v3 = vmul.f32 %v7360_v1, %v9245_v7  ;;  %v6186_v33 = vpop.f32.mrb[18].mxu0  ;;  %v7077_v19 = vpack.c.bf16 %v2836_v22, %v2835_v34  ;;  %v2838_v37 = vld [vmem:[#allocation3 + $0x28] sm:$0xff]  ;;  %v3196_v34 = vld [vmem:[#allocation3 + $0x138] sm:$0xff]  ;;  %v9506_v22 = vld [vmem:[#allocation2 + $0x30] sm:$0xff] }
 0x26e   : > { %v2762_v31 = vsel %vm9390_vm9, %v9396_v6, 0.0  ;;  %v9407_v32 = vadd.f32 %v9251_v29, %v2639_v35  ;;  %v7361_v40 = vadd.f32 %v9231_v61, %v6186_v33  ;;  %v2317_v27 = vpop.f32.mrb[19].mxu0  ;;  %v2839_v35 = vld [vmem:[#allocation3 + $0x30] sm:$0xff]  ;;  %v2841_v33 = vld [vmem:[#allocation3 + $0x40] sm:$0xff] }
 0x26f   : > { %2812 = vst [vmem:[#allocation2 + $0xb1] sm:$0xff] %v2762_v31  ;;  %v2761_v41 = vsel %vm9390_vm9, %v9400_v49, 0.0  ;;  %v9419_v0 = vadd.f32 %v9251_v29, %v2638_v3  ;;  %v7362_v51 = vadd.f32 %v9233_v14, %v2317_v27  ;;  %v7085_v3 = vpack.c.bf16 %v2840_v46, %v2839_v35  ;;  %v2842_v31 = vld [vmem:[#allocation3 + $0x48] sm:$0xff]  ;;  %v2845_v27 = vld [vmem:[#allocation3 + $0x60] sm:$0xff]  ;;  %v3200_v35 = vld [vmem:[#allocation3 + $0x158] sm:$0xff] }
 0x270   : > { %2811 = vst [vmem:[#allocation2 + $0xa9] sm:$0xff] %v2761_v41  ;;  %v2683_v36 = vmax.f32 %v9407_v32, 0.0  ;;  %v2641_v61 = vmul.f32 %v7361_v40, %v9245_v7  ;;  %v2846_v41 = vld [vmem:[#allocation3 + $0x68] sm:$0xff]  ;;  %v9518_v46 = vld [vmem:[#allocation2 + $0x60] sm:$0xff] }
 0x271   : > { %v2682_v42 = vmax.f32 %v9419_v0, 0.0  ;;  %v2640_v43 = vmul.f32 %v7362_v51, %v9245_v7  ;;  %v6221_v20 = vpop.f32.mrb[0].mxu0  ;;  %v7097_v51 = vpack.c.bf16 %v2846_v41, %v2845_v27  ;;  %v3203_v27 = vld [vmem:[#allocation3 + $0x170] sm:$0xff]  ;;  %v3204_v41 = vld [vmem:[#allocation3 + $0x178] sm:$0xff] }
 0x272   : > { %v2764_v54 = vsel %vm9414_vm14, %v2683_v36, 0.0  ;;  %v2665_v14 = vadd.f32 %v9251_v29, %v2641_v61  ;;  %v2623_v48 = vmul.f32 %v6221_v20, %v9245_v7  ;;  %v2499_v62 = vpop.f32.mrb[1].mxu0  ;;  %v2847_v61 = vld [vmem:[#allocation3 + $0x70] sm:$0xff] }
 0x273   : > { %2814 = vst [vmem:[#allocation2 + $0xc9] sm:$0xff] %v2764_v54  ;;  %v2763_v25 = vsel %vm9414_vm14, %v2682_v42, 0.0  ;;  %v2664_v50 = vadd.f32 %v9251_v29, %v2640_v43  ;;  %v2622_v15 = vmul.f32 %v9245_v7, %v2499_v62  ;;  %v2848_v43 = vld [vmem:[#allocation3 + $0x78] sm:$0xff]  ;;  %v3189_v54 = vld [vmem:[#allocation3 + $0x100] sm:$0xff]  ;;  %v3191_v62 = vld [vmem:[#allocation3 + $0x110] sm:$0xff] }
 0x274   : > { %2813 = vst [vmem:[#allocation2 + $0xc1] sm:$0xff] %v2763_v25  ;;  %v2685_v26 = vmax.f32 %v2665_v14, 0.0  ;;  %v2647_v58 = vadd.f32 %v9251_v29, %v2623_v48  ;;  %v7101_v20 = vpack.c.bf16 %v2848_v43, %v2847_v61  ;;  %v3190_v14 = vld [vmem:[#allocation3 + $0x108] sm:$0xff]  ;;  %v3192_v25 = vld [vmem:[#allocation3 + $0x118] sm:$0xff]  ;;  %v7133_v61 = vpack.c.bf16 %v3204_v41, %v3203_v27  ;;  %v3394_v41 = vld [vmem:[#allocation3 + $0x1d0] sm:$0xff] }
 0x275   : > { %v2684_v17 = vmax.f32 %v2664_v50, 0.0  ;;  %v2646_v59 = vadd.f32 %v9251_v29, %v2622_v15  ;;  %v2837_v29 = vld [vmem:[#allocation3 + $0x20] sm:$0xff]  ;;  %v7105_v48 = vpack.c.bf16 %v3190_v14, %v3189_v54  ;;  %v7109_v15 = vpack.c.bf16 %v3192_v25, %v3191_v62  ;;  %v9533_v43 = vld [vmem:[#allocation2 + $0x98] sm:$0xff]  ;;  %v3386_v25 = vld [vmem:[#allocation3 + $0x190] sm:$0xff] }
 0x276   : > { %v2766_v13 = vsel %vm2726_vm8, %v2685_v26, 0.0  ;;  %v2667_v55 = vmax.f32 %v2647_v58, 0.0  ;;  %v7081_v1 = vpack.c.bf16 %v2838_v37, %v2837_v29  ;;  %v3193_v58 = vld [vmem:[#allocation3 + $0x120] sm:$0xff]  ;;  %v3385_v54 = vld [vmem:[#allocation3 + $0x188] sm:$0xff] }
 0x277   : > { %2816 = vst [vmem:[#allocation2 + $0xe1] sm:$0xff] %v2766_v13  ;;  %v2765_v9 = vsel %vm2726_vm8, %v2684_v17, 0.0  ;;  %v2666_v7 = vmax.f32 %v2646_v59, 0.0  ;;  %v3194_v17 = vld [vmem:[#allocation3 + $0x128] sm:$0xff]  ;;  %v9503_v13 = vld [vmem:[#allocation2 + $0x20] sm:$0xff]  ;;  %v9515_v37 = vld [vmem:[#allocation2 + $0x50] sm:$0xff] }
 0x278   : > { %2815 = vst [vmem:[#allocation2 + $0xd9] sm:$0xff] %v2765_v9  ;;  %v2748_v56 = vsel %vm9443_vm11, %v2667_v55, 0.0  ;;  %v7113_v59 = vpack.c.bf16 %v3194_v17, %v3193_v58  ;;  %v9536_v14 = vld [vmem:[#allocation2 + $0xa8] sm:$0xff]  ;;  %v9539_v62 = vld [vmem:[#allocation2 + $0xb0] sm:$0xff] }
 0x279   : > { %2798 = vst [vmem:[#allocation2 + $0x9] sm:$0xff] %v2748_v56  ;;  %v2747_v53 = vsel %vm9443_vm11, %v2666_v7, 0.0  ;;  %7721 = vmatprep.mubr.msk.f32.mxu1 %vm9443_vm11, %v2666_v7  ;;  %v9509_v7 = vld [vmem:[#allocation2 + $0x38] sm:$0xff]  ;;  %v3197_v56 = vld [vmem:[#allocation3 + $0x140] sm:$0xff] }
 0x27a   : > { %2797 = vst [vmem:[#allocation2 + $0x1] sm:$0xff] %v2747_v53  ;;  %7722 = vmatmul.mubr.msk.f32.vlgmr.msra.gmra.mrb[18].mxu1 %vm9443_vm11, %v2667_v55  ;;  %v3195_v55 = vld [vmem:[#allocation3 + $0x130] sm:$0xff]  ;;  %v3198_v53 = vld [vmem:[#allocation3 + $0x148] sm:$0xff]  ;;  %v3388_v17 = vld [vmem:[#allocation3 + $0x1a0] sm:$0xff] }
 0x27b   : > { %7723 = vmatprep.mubr.msk.f32.mxu1 %vm9261_vm4, %v9270_v21  ;;  %7076 = vmatpush3.bf16.msra.mxu1 %v9235_v24  ;;  %v7089_v24 = vpack.c.bf16 %v2842_v31, %v2841_v33  ;;  %v7117_v9 = vpack.c.bf16 %v3196_v34, %v3195_v55  ;;  %v7121_v29 = vpack.c.bf16 %v3198_v53, %v3197_v56  ;;  %v9521_v33 = vld [vmem:[#allocation2 + $0x68] sm:$0xff]  ;;  %v3201_v31 = vld [vmem:[#allocation3 + $0x160] sm:$0xff]  ;;  %v9542_v55 = vld [vmem:[#allocation2 + $0x1a] sm:$0xff] }
 0x27c   : > { %7078 = vmatprep.subr.bf16.mxu1 %v7077_v19  ;;  %v3390_v56 = vld [vmem:[#allocation3 + $0x1b0] sm:$0xff]  ;;  %v3391_v53 = vld [vmem:[#allocation3 + $0x1b8] sm:$0xff]  ;;  %v9557_v27 = vld [vmem:[#allocation2 + $0x52] sm:$0xff] }
 0x27e   : > { %7724 = vmatmul.mubr.msk.f32.gmra.mrb[20].mxu1 %vm9261_vm4, %v2669_v30  ;;  %v2844_v30 = vld [vmem:[#allocation3 + $0x58] sm:$0xff] }
 0x27f   : > { %7725 = vmatprep.mubr.msk.f32.mxu1 %vm9283_vm7, %v9293_v23  ;;  %7080 = vmatpush3.bf16.msra.mxu1 %v7077_v19  ;;  %v7093_v40 = vpack.c.bf16 %v2844_v30, %v2843_v8  ;;  %v9512_v19 = vld [vmem:[#allocation2 + $0x48] sm:$0xff]  ;;  %v9524_v8 = vld [vmem:[#allocation2 + $0x78] sm:$0xff] }
 0x280   : > { %7082 = vmatprep.subr.bf16.mxu1 %v7081_v1  ;;  %v3173_v58 = vld [vmem:[#allocation2 + $0xa] sm:$0xff] }
 0x281   : > { %v2817_v50 = vld [vmem:[#allocation2] sm:$0xff]  ;;  %v2818_v26 = vld [vmem:[#allocation2 + $0x8] sm:$0xff] }
 0x282   : > { %7726 = vmatmul.mubr.msk.f32.gmra.mrb[22].mxu1 %vm9283_vm7, %v9290_v52 }
 0x283   : > { %7727 = vmatprep.mubr.msk.f32.mxu1 %vm9304_vm10, %v9314_v11  ;;  %7084 = vmatpush3.bf16.msra.mxu1 %v7081_v1  ;;  %v3199_v1 = vld [vmem:[#allocation3 + $0x150] sm:$0xff] }
 0x284   : > { %7086 = vmatprep.subr.bf16.mxu1 %v7085_v3 }
 0x286   : > { %7728 = vmatmul.mubr.msk.f32.gmra.mrb[24].mxu1 %vm9304_vm10, %v9310_v5 }
 0x287   : > { %7729 = vmatprep.mubr.msk.f32.mxu1 %vm9326_vm13, %v9336_v10  ;;  %7088 = vmatpush3.bf16.msra.mxu1 %v7085_v3  ;;  %v7125_v3 = vpack.c.bf16 %v3200_v35, %v3199_v1  ;;  %v7149_v1 = vpack.c.bf16 %v3391_v53, %v3390_v56  ;;  %v9551_v35 = vld [vmem:[#allocation2 + $0x3a] sm:$0xff] }
 0x288   : > { %7090 = vmatprep.subr.bf16.mxu1 %v7089_v24  ;;  %v9575_v53 = vld [vmem:[#allocation2 + $0x9a] sm:$0xff] }
 0x28a   : > { %7730 = vmatmul.mubr.msk.f32.gmra.mrb[26].mxu1 %vm9326_vm13, %v9333_v44 }
 0x28b   : > { %7731 = vmatprep.mubr.msk.f32.mxu1 %vm9347_vm1, %v9357_v39  ;;  %7092 = vmatpush3.bf16.msra.mxu1 %v7089_v24  ;;  %v3202_v24 = vld [vmem:[#allocation3 + $0x168] sm:$0xff] }
 0x28c   : > { %7094 = vmatprep.subr.bf16.mxu1 %v7093_v40  ;;  %v7129_v30 = vpack.c.bf16 %v3202_v24, %v3201_v31  ;;  %v3393_v31 = vld [vmem:[#allocation3 + $0x1c8] sm:$0xff]  ;;  %v9554_v24 = vld [vmem:[#allocation2 + $0x4a] sm:$0xff] }
 0x28e   : > { %7732 = vmatmul.mubr.msk.f32.gmra.mrb[28].mxu1 %vm9347_vm1, %v9353_v12 }
 0x28f   : > { %7733 = vmatprep.mubr.msk.f32.mxu1 %vm9369_vm5, %v9379_v63  ;;  %7096 = vmatpush3.bf16.msra.mxu1 %v7093_v40  ;;  %v9527_v40 = vld [vmem:[#allocation2 + $0x80] sm:$0xff] }
 0x290   : > { %7098 = vmatprep.subr.bf16.mxu1 %v7097_v51 }
 0x292   : > { %7734 = vmatmul.mubr.msk.f32.gmra.mrb[30].mxu1 %vm9369_vm5, %v9376_v4 }
 0x293   : > { %7735 = vmatprep.mubr.msk.f32.mxu1 %vm9390_vm9, %v9400_v49  ;;  %7100 = vmatpush3.bf16.msra.mxu1 %v7097_v51  ;;  %v9530_v51 = vld [vmem:[#allocation2 + $0x90] sm:$0xff] }
 0x294   : > { %7102 = vmatprep.subr.bf16.mxu1 %v7101_v20 }
 0x296   : > { %7736 = vmatmul.mubr.msk.f32.gmra.mrb[32].mxu1 %vm9390_vm9, %v9396_v6 }
 0x297   : > { %7104 = vmatpush3.bf16.msra.mxu1 %v7101_v20  ;;  %6337 = vmatprep.mubr.f32.mxu1 %v2817_v50  ;;  %v3384_v20 = vld [vmem:[#allocation3 + $0x180] sm:$0xff]  ;;  %v3387_v50 = vld [vmem:[#allocation3 + $0x198] sm:$0xff] }
 0x298   : > { %7106 = vmatprep.subr.bf16.mxu1 %v7105_v48 }
 0x29a   : > { %6338 = vmatmul.mubr.f32.vlgmr.msra.gmra.mrb[18].mxu1 %v2818_v26  ;;  %v7141_v26 = vpack.c.bf16 %v3387_v50, %v3386_v25  ;;  %v3396_v25 = vld [vmem:[#allocation3 + $0x1e0] sm:$0xff]  ;;  %v3397_v50 = vld [vmem:[#allocation3 + $0x1e8] sm:$0xff] }
 0x29b   : > { %6340 = vmatprep.mubr.f32.mxu1 %v9500_v2  ;;  %7108 = vmatpush3.bf16.msra.mxu1 %v7105_v48  ;;  %v7137_v48 = vpack.c.bf16 %v3385_v54, %v3384_v20  ;;  %v9560_v20 = vld [vmem:[#allocation2 + $0x62] sm:$0xff] }
 0x29c   : > { %7110 = vmatprep.subr.bf16.mxu1 %v7109_v15 }
 0x29e   : > { %6341 = vmatmul.mubr.f32.gmra.mrb[20].mxu1 %v9503_v13 }
 0x29f   : > { %6343 = vmatprep.mubr.f32.mxu1 %v9506_v22  ;;  %7112 = vmatpush3.bf16.msra.mxu1 %v7109_v15  ;;  %v3172_v15 = vld [vmem:[#allocation2 + $0x2] sm:$0xff] }
 0x2a0   : > { %7114 = vmatprep.subr.bf16.mxu1 %v7113_v59 }
 0x2a2   : > { %6344 = vmatmul.mubr.f32.gmra.mrb[22].mxu1 %v9509_v7 }
 0x2a3   : > { %6346 = vmatprep.mubr.f32.mxu1 %v9512_v19  ;;  %7116 = vmatpush3.bf16.msra.mxu1 %v7113_v59  ;;  %v3389_v59 = vld [vmem:[#allocation3 + $0x1a8] sm:$0xff] }
 0x2a4   : > { %7118 = vmatprep.subr.bf16.mxu1 %v7117_v9  ;;  %v7145_v34 = vpack.c.bf16 %v3389_v59, %v3388_v17  ;;  %v3398_v17 = vld [vmem:[#allocation3 + $0x1f0] sm:$0xff]  ;;  %v3399_v59 = vld [vmem:[#allocation3 + $0x1f8] sm:$0xff] }
 0x2a5   : > { %v7165_v56 = vpack.c.bf16 %v3399_v59, %v3398_v17  ;;  %v3583_v17 = vld [vmem:[#allocation3 + $0x228] sm:$0xff]  ;;  %v3584_v59 = vld [vmem:[#allocation3 + $0x230] sm:$0xff] }
 0x2a6   : > { %6347 = vmatmul.mubr.f32.gmra.mrb[24].mxu1 %v9515_v37 }
 0x2a7   : > { %6349 = vmatprep.mubr.f32.mxu1 %v9518_v46  ;;  %7120 = vmatpush3.bf16.msra.mxu1 %v7117_v9  ;;  %v9545_v9 = vld [vmem:[#allocation2 + $0x22] sm:$0xff] }
 0x2a8   : > { %7122 = vmatprep.subr.bf16.mxu1 %v7121_v29 }
 0x2aa   : > { %6350 = vmatmul.mubr.f32.gmra.mrb[26].mxu1 %v9521_v33 }
 0x2ab   : > { %6352 = vmatprep.mubr.f32.mxu1 %v9524_v8  ;;  %7124 = vmatpush3.bf16.msra.mxu1 %v7121_v29  ;;  %v9548_v29 = vld [vmem:[#allocation2 + $0x32] sm:$0xff] }
 0x2ac   : > { %7126 = vmatprep.subr.bf16.mxu1 %v7125_v3 }
 0x2ae   : > { %6353 = vmatmul.mubr.f32.gmra.mrb[28].mxu1 %v9527_v40 }
 0x2af   : > { %6355 = vmatprep.mubr.f32.mxu1 %v9530_v51  ;;  %7128 = vmatpush3.bf16.msra.mxu1 %v7125_v3  ;;  %v3392_v3 = vld [vmem:[#allocation3 + $0x1c0] sm:$0xff] }
 0x2b0   : > { %7130 = vmatprep.subr.bf16.mxu1 %v7129_v30 }
 0x2b2   : > { %6356 = vmatmul.mubr.f32.gmra.mrb[30].mxu1 %v9533_v43 }
 0x2b3   : > { %6358 = vmatprep.mubr.f32.mxu1 %v9536_v14  ;;  %7132 = vmatpush3.bf16.msra.mxu1 %v7129_v30  ;;  %v7153_v30 = vpack.c.bf16 %v3393_v31, %v3392_v3  ;;  %v3579_v3 = vld [vmem:[#allocation3 + $0x208] sm:$0xff]  ;;  %v9578_v31 = vld [vmem:[#allocation2 + $0xaa] sm:$0xff] }
 0x2b4   : > { %7134 = vmatprep.subr.bf16.mxu1 %v7133_v61 }
 0x2b6   : > { %6359 = vmatmul.mubr.f32.gmra.mrb[32].mxu1 %v9539_v62 }
 0x2b7   : > { %7136 = vmatpush3.bf16.msra.mxu1 %v7133_v61  ;;  %6393 = vmatprep.mubr.f32.mxu1 %v3172_v15  ;;  %v3395_v61 = vld [vmem:[#allocation3 + $0x1d8] sm:$0xff]  ;;  %v9566_v15 = vld [vmem:[#allocation2 + $0x7a] sm:$0xff] }
 0x2b8   : > { %7138 = vmatprep.subr.bf16.mxu1 %v7137_v48  ;;  %v7157_v54 = vpack.c.bf16 %v3395_v61, %v3394_v41  ;;  %v9581_v41 = vld [vmem:[#allocation2 + $0xb2] sm:$0xff]  ;;  %v3580_v61 = vld [vmem:[#allocation3 + $0x210] sm:$0xff] }
 0x2ba   : > { %6394 = vmatmul.mubr.f32.vlgmr.msra.gmra.mrb[18].mxu1 %v3173_v58  ;;  %v9569_v58 = vld [vmem:[#allocation2 + $0x82] sm:$0xff] }
 0x2bb   : > { %6396 = vmatprep.mubr.f32.mxu1 %v9542_v55  ;;  %7140 = vmatpush3.bf16.msra.mxu1 %v7137_v48  ;;  %v9563_v48 = vld [vmem:[#allocation2 + $0x6a] sm:$0xff] }
 0x2bc   : > { %7142 = vmatprep.subr.bf16.mxu1 %v7141_v26 }
 0x2be   : > { %6397 = vmatmul.mubr.f32.gmra.mrb[20].mxu1 %v9545_v9 }
 0x2bf   : > { %6399 = vmatprep.mubr.f32.mxu1 %v9548_v29  ;;  %7144 = vmatpush3.bf16.msra.mxu1 %v7141_v26  ;;  %v7161_v26 = vpack.c.bf16 %v3397_v50, %v3396_v25  ;;  %v3581_v25 = vld [vmem:[#allocation3 + $0x218] sm:$0xff]  ;;  %v3582_v50 = vld [vmem:[#allocation3 + $0x220] sm:$0xff] }
 0x2c0   : > { %7146 = vmatprep.subr.bf16.mxu1 %v7145_v34 }
 0x2c2   : > { %6400 = vmatmul.mubr.f32.gmra.mrb[22].mxu1 %v9551_v35 }
 0x2c3   : > { %6402 = vmatprep.mubr.f32.mxu1 %v9554_v24  ;;  %7148 = vmatpush3.bf16.msra.mxu1 %v7145_v34  ;;  %v9572_v34 = vld [vmem:[#allocation2 + $0x92] sm:$0xff] }
 0x2c4   : > { %7150 = vmatprep.subr.bf16.mxu1 %v7149_v1 }
 0x2c6   : > { %6403 = vmatmul.mubr.f32.gmra.mrb[24].mxu1 %v9557_v27 }
 0x2c7   : > { %6405 = vmatprep.mubr.f32.mxu1 %v9560_v20  ;;  %7152 = vmatpush3.bf16.msra.mxu1 %v7149_v1  ;;  %v3578_v1 = vld [vmem:[#allocation3 + $0x200] sm:$0xff] }
 0x2c8   : > { %7154 = vmatprep.subr.bf16.mxu1 %v7153_v30 }
 0x2ca   : > { %6406 = vmatmul.mubr.f32.gmra.mrb[26].mxu1 %v9563_v48 }
 0x2cb   : > { %6408 = vmatprep.mubr.f32.mxu1 %v9566_v15  ;;  %7156 = vmatpush3.bf16.msra.mxu1 %v7153_v30  ;;  %v7169_v30 = vpack.c.bf16 %v3579_v3, %v3578_v1  ;;  %v3585_v1 = vld [vmem:[#allocation3 + $0x238] sm:$0xff]  ;;  %v3587_v3 = vld [vmem:[#allocation3 + $0x248] sm:$0xff] }
 0x2cc   : > { %7158 = vmatprep.subr.bf16.mxu1 %v7157_v54 }
 0x2ce   : > { %6409 = vmatmul.mubr.f32.gmra.mrb[28].mxu1 %v9569_v58 }
 0x2cf   : > { %6411 = vmatprep.mubr.f32.mxu1 %v9572_v34  ;;  %7160 = vmatpush3.bf16.msra.mxu1 %v7157_v54  ;;  %v7173_v54 = vpack.c.bf16 %v3581_v25, %v3580_v61  ;;  %v3589_v61 = vld [vmem:[#allocation3 + $0x258] sm:$0xff] }
 0x2d0   : > { %7162 = vmatprep.subr.bf16.mxu1 %v7161_v26 }
 0x2d2   : > { %6412 = vmatmul.mubr.f32.gmra.mrb[30].mxu1 %v9575_v53 }
 0x2d3   : > { %6414 = vmatprep.mubr.f32.mxu1 %v9578_v31  ;;  %7164 = vmatpush3.bf16.msra.mxu1 %v7161_v26  ;;  %v7177_v26 = vpack.c.bf16 %v3583_v17, %v3582_v50  ;;  %v3591_v50 = vld [vmem:[#allocation3 + $0x268] sm:$0xff] }
 0x2d4   : > { %7166 = vmatprep.subr.bf16.mxu1 %v7165_v56 }
 0x2d6   : > { %6415 = vmatmul.mubr.f32.gmra.mrb[32].mxu1 %v9581_v41 }
 0x2d7   : > { %7168 = vmatpush3.bf16.msra.mxu1 %v7165_v56  ;;  %6449 = vmatprep.mubr.f32.mxu1 %v9500_v2  ;;  %v7181_v2 = vpack.c.bf16 %v3585_v1, %v3584_v59  ;;  %v3586_v56 = vld [vmem:[#allocation3 + $0x240] sm:$0xff]  ;;  %v3593_v59 = vld [vmem:[#allocation3 + $0x278] sm:$0xff] }
 0x2d8   : > { %7170 = vmatprep.subr.bf16.mxu1 %v7169_v30 }
 0x2da   : > { %6450 = vmatmul.mubr.f32.vlgmr.msra.gmra.mrb[18].mxu1 %v9503_v13  ;;  %v7185_v13 = vpack.c.bf16 %v3587_v3, %v3586_v56  ;;  %v3773_v56 = vld [vmem:[#allocation3 + $0x288] sm:$0xff]  ;;  %v9598_v3 = vld [vmem:[#allocation2 + $0xc0] sm:$0xff] }
 0x2db   : > { %6452 = vmatprep.mubr.f32.mxu1 %v9506_v22  ;;  %7172 = vmatpush3.bf16.msra.mxu1 %v7169_v30  ;;  %v3588_v30 = vld [vmem:[#allocation3 + $0x250] sm:$0xff] }
 0x2dc   : > { %7174 = vmatprep.subr.bf16.mxu1 %v7173_v54  ;;  %v7189_v25 = vpack.c.bf16 %v3589_v61, %v3588_v30  ;;  %v9601_v30 = vld [vmem:[#allocation2 + $0xc8] sm:$0xff]  ;;  %v3774_v61 = vld [vmem:[#allocation3 + $0x290] sm:$0xff] }
 0x2de   : > { %6453 = vmatmul.mubr.f32.gmra.mrb[20].mxu1 %v9509_v7 }
 0x2df   : > { %6455 = vmatprep.mubr.f32.mxu1 %v9512_v19  ;;  %7176 = vmatpush3.bf16.msra.mxu1 %v7173_v54  ;;  %v3590_v54 = vld [vmem:[#allocation3 + $0x260] sm:$0xff] }
 0x2e0   : > { %7178 = vmatprep.subr.bf16.mxu1 %v7177_v26  ;;  %v7193_v17 = vpack.c.bf16 %v3591_v50, %v3590_v54  ;;  %v3775_v54 = vld [vmem:[#allocation3 + $0x298] sm:$0xff] }
 0x2e1   : > { %v3562_v50 = vld [vmem:[#allocation2 + $0x21] sm:$0xff] }
 0x2e2   : > { %6456 = vmatmul.mubr.f32.gmra.mrb[22].mxu1 %v9515_v37 }
 0x2e3   : > { %6458 = vmatprep.mubr.f32.mxu1 %v9518_v46  ;;  %7180 = vmatpush3.bf16.msra.mxu1 %v7177_v26  ;;  %v3592_v26 = vld [vmem:[#allocation3 + $0x270] sm:$0xff] }
 0x2e4   : > { %7182 = vmatprep.subr.bf16.mxu1 %v7181_v2  ;;  %v7197_v1 = vpack.c.bf16 %v3593_v59, %v3592_v26  ;;  %v3776_v26 = vld [vmem:[#allocation3 + $0x2a0] sm:$0xff]  ;;  %v3777_v59 = vld [vmem:[#allocation3 + $0x2a8] sm:$0xff] }
 0x2e6   : > { %6459 = vmatmul.mubr.f32.gmra.mrb[24].mxu1 %v9521_v33 }
 0x2e7   : > { %6461 = vmatprep.mubr.f32.mxu1 %v9524_v8  ;;  %7184 = vmatpush3.bf16.msra.mxu1 %v7181_v2  ;;  %v3772_v2 = vld [vmem:[#allocation3 + $0x280] sm:$0xff] }
 0x2e8   : > { %7186 = vmatprep.subr.bf16.mxu1 %v7185_v13 }
 0x2ea   : > { %6462 = vmatmul.mubr.f32.gmra.mrb[26].mxu1 %v9527_v40 }
 0x2eb   : > { %6464 = vmatprep.mubr.f32.mxu1 %v9530_v51  ;;  %7188 = vmatpush3.bf16.msra.mxu1 %v7185_v13  ;;  %v7201_v13 = vpack.c.bf16 %v3773_v56, %v3772_v2  ;;  %v3778_v2 = vld [vmem:[#allocation3 + $0x2b0] sm:$0xff]  ;;  %v3779_v56 = vld [vmem:[#allocation3 + $0x2b8] sm:$0xff] }
 0x2ec   : > { %7190 = vmatprep.subr.bf16.mxu1 %v7189_v25  ;;  %v7213_v28 = vpack.c.bf16 %v3779_v56, %v3778_v2  ;;  %v4161_v56 = vld [vmem:[#allocation3 + $0x380] sm:$0xff] }
 0x2ee   : > { %6465 = vmatmul.mubr.f32.gmra.mrb[28].mxu1 %v9533_v43 }
 0x2ef   : > { %6467 = vmatprep.mubr.f32.mxu1 %v9536_v14  ;;  %7192 = vmatpush3.bf16.msra.mxu1 %v7189_v25  ;;  %v7205_v25 = vpack.c.bf16 %v3775_v54, %v3774_v61  ;;  %v3978_v61 = vld [vmem:[#allocation3 + $0x358] sm:$0xff] }
 0x2f0   : > { %7194 = vmatprep.subr.bf16.mxu1 %v7193_v17 }
 0x2f2   : > { %6468 = vmatmul.mubr.f32.gmra.mrb[30].mxu1 %v9539_v62 }
 0x2f3   : > { %6470 = vmatprep.mubr.f32.mxu1 %v9598_v3  ;;  %7196 = vmatpush3.bf16.msra.mxu1 %v7193_v17  ;;  %v7209_v17 = vpack.c.bf16 %v3777_v59, %v3776_v26  ;;  %v3981_v59 = vld [vmem:[#allocation3 + $0x370] sm:$0xff] }
 0x2f4   : > { %7198 = vmatprep.subr.bf16.mxu1 %v7197_v1 }
 0x2f6   : > { %6471 = vmatmul.mubr.f32.gmra.mrb[32].mxu1 %v9601_v30 }
 0x2f7   : > { %7200 = vmatpush3.bf16.msra.mxu1 %v7197_v1  ;;  %7737 = vmatprep.mubr.msk.f32.mxu1 %vm9261_vm4, %v9270_v21  ;;  %v3780_v21 = vld [vmem:[#allocation3 + $0x2c0] sm:$0xff]  ;;  %v3781_v1 = vld [vmem:[#allocation3 + $0x2c8] sm:$0xff] }
 0x2f8   : > { %7202 = vmatprep.subr.bf16.mxu1 %v7201_v13  ;;  %v7217_v18 = vpack.c.bf16 %v3781_v1, %v3780_v21  ;;  %v9665_v21 = vld [vmem:[#allocation2 + $0xc2] sm:$0xff] }
 0x2fa   : > { %6506 = vmatmul.mubr.f32.vlgmr.msra.gmra.mrb[18].mxu1 %v3562_v50  ;;  %v3980_v50 = vld [vmem:[#allocation3 + $0x368] sm:$0xff] }
 0x2fb   : > { %7738 = vmatprep.mubr.msk.f32.mxu1 %vm9283_vm7, %v9293_v23  ;;  %7204 = vmatpush3.bf16.msra.mxu1 %v7201_v13  ;;  %v3783_v23 = vld [vmem:[#allocation3 + $0x2d8] sm:$0xff] }
 0x2fc   : > { %7206 = vmatprep.subr.bf16.mxu1 %v7205_v25  ;;  %v3974_v13 = vld [vmem:[#allocation3 + $0x338] sm:$0xff] }
 0x2fe   : > { %7739 = vmatmul.mubr.msk.f32.gmra.mrb[20].mxu1 %vm9283_vm7, %v9290_v52  ;;  %v3782_v52 = vld [vmem:[#allocation3 + $0x2d0] sm:$0xff] }
 0x2ff   : > { %7740 = vmatprep.mubr.msk.f32.mxu1 %vm9304_vm10, %v9314_v11  ;;  %7208 = vmatpush3.bf16.msra.mxu1 %v7205_v25  ;;  %v7221_v60 = vpack.c.bf16 %v3783_v23, %v3782_v52  ;;  %v3785_v11 = vld [vmem:[#allocation3 + $0x2e8] sm:$0xff]  ;;  %v3979_v25 = vld [vmem:[#allocation3 + $0x360] sm:$0xff]  ;;  %v4163_v52 = vld [vmem:[#allocation3 + $0x390] sm:$0xff] }
 0x300   : > { %7210 = vmatprep.subr.bf16.mxu1 %v7209_v17  ;;  %v7257_v26 = vpack.c.bf16 %v3980_v50, %v3979_v25  ;;  %v4164_v23 = vld [vmem:[#allocation3 + $0x398] sm:$0xff]  ;;  %v4363_v25 = vld [vmem:[#allocation3 + $0x440] sm:$0xff]  ;;  %v4364_v50 = vld [vmem:[#allocation3 + $0x448] sm:$0xff] }
 0x302   : > { %7741 = vmatmul.mubr.msk.f32.gmra.mrb[22].mxu1 %vm9304_vm10, %v9310_v5  ;;  %v3784_v5 = vld [vmem:[#allocation3 + $0x2e0] sm:$0xff] }
 0x303   : > { %7742 = vmatprep.mubr.msk.f32.mxu1 %vm9326_vm13, %v9336_v10  ;;  %7212 = vmatpush3.bf16.msra.mxu1 %v7209_v17  ;;  %v7225_v45 = vpack.c.bf16 %v3785_v11, %v3784_v5  ;;  %v3787_v10 = vld [vmem:[#allocation3 + $0x2f8] sm:$0xff]  ;;  %v4165_v5 = vld [vmem:[#allocation3 + $0x3a0] sm:$0xff]  ;;  %v4166_v11 = vld [vmem:[#allocation3 + $0x3a8] sm:$0xff] }
 0x304   : > { %7214 = vmatprep.subr.bf16.mxu1 %v7213_v28  ;;  %v3982_v17 = vld [vmem:[#allocation3 + $0x378] sm:$0xff] }
 0x305   : > { %v7261_v2 = vpack.c.bf16 %v3982_v17, %v3981_v59  ;;  %v7313_v59 = vpack.c.bf16 %v4364_v50, %v4363_v25  ;;  %v4151_v17 = vld [vmem:[#allocation2 + $0x81] sm:$0xff] }
 0x306   : > { %7743 = vmatmul.mubr.msk.f32.gmra.mrb[24].mxu1 %vm9326_vm13, %v9333_v44  ;;  %v3786_v44 = vld [vmem:[#allocation3 + $0x2f0] sm:$0xff] }
 0x307   : > { %7744 = vmatprep.mubr.msk.f32.mxu1 %vm9347_vm1, %v9357_v39  ;;  %7216 = vmatpush3.bf16.msra.mxu1 %v7213_v28  ;;  %v7229_v57 = vpack.c.bf16 %v3787_v10, %v3786_v44  ;;  %v3968_v39 = vld [vmem:[#allocation3 + $0x308] sm:$0xff]  ;;  %v4167_v44 = vld [vmem:[#allocation3 + $0x3b0] sm:$0xff]  ;;  %v4168_v10 = vld [vmem:[#allocation3 + $0x3b8] sm:$0xff] }
 0x308   : > { %7218 = vmatprep.subr.bf16.mxu1 %v7217_v18  ;;  %v4162_v28 = vld [vmem:[#allocation3 + $0x388] sm:$0xff] }
 0x309   : > { %v7265_v1 = vpack.c.bf16 %v4162_v28, %v4161_v56  ;;  %v4366_v56 = vld [vmem:[#allocation3 + $0x458] sm:$0xff]  ;;  %v4152_v28 = vld [vmem:[#allocation2 + $0x91] sm:$0xff] }
 0x30a   : > { %7745 = vmatmul.mubr.msk.f32.gmra.mrb[26].mxu1 %vm9347_vm1, %v9353_v12  ;;  %v3967_v12 = vld [vmem:[#allocation3 + $0x300] sm:$0xff] }
 0x30b   : > { %7746 = vmatprep.mubr.msk.f32.mxu1 %vm9369_vm5, %v9379_v63  ;;  %7220 = vmatpush3.bf16.msra.mxu1 %v7217_v18  ;;  %v7233_v47 = vpack.c.bf16 %v3968_v39, %v3967_v12  ;;  %v3970_v63 = vld [vmem:[#allocation3 + $0x318] sm:$0xff]  ;;  %v4170_v12 = vld [vmem:[#allocation3 + $0x3c8] sm:$0xff] }
 0x30c   : > { %7222 = vmatprep.subr.bf16.mxu1 %v7221_v60  ;;  %v9668_v18 = vld [vmem:[#allocation2 + $0xca] sm:$0xff] }
 0x30d   : > { %v4172_v39 = vld [vmem:[#allocation3 + $0x3d8] sm:$0xff] }
 0x30e   : > { %7747 = vmatmul.mubr.msk.f32.gmra.mrb[28].mxu1 %vm9369_vm5, %v9376_v4  ;;  %v3969_v4 = vld [vmem:[#allocation3 + $0x310] sm:$0xff] }
 0x30f   : > { %7748 = vmatprep.mubr.msk.f32.mxu1 %vm9390_vm9, %v9400_v49  ;;  %7224 = vmatpush3.bf16.msra.mxu1 %v7221_v60  ;;  %v7237_v16 = vpack.c.bf16 %v3970_v63, %v3969_v4  ;;  %v3972_v49 = vld [vmem:[#allocation3 + $0x328] sm:$0xff]  ;;  %v7269_v60 = vpack.c.bf16 %v4164_v23, %v4163_v52  ;;  %v4176_v4 = vld [vmem:[#allocation3 + $0x3f8] sm:$0xff]  ;;  %v4367_v23 = vld [vmem:[#allocation3 + $0x460] sm:$0xff] }
 0x310   : > { %7226 = vmatprep.subr.bf16.mxu1 %v7225_v45  ;;  %v4356_v63 = vld [vmem:[#allocation3 + $0x408] sm:$0xff] }
 0x311   : > { %v4153_v52 = vld [vmem:[#allocation2 + $0x99] sm:$0xff] }
 0x312   : > { %7749 = vmatmul.mubr.msk.f32.gmra.mrb[30].mxu1 %vm9390_vm9, %v9396_v6  ;;  %v3971_v6 = vld [vmem:[#allocation3 + $0x320] sm:$0xff] }
 0x313   : > { %7750 = vmatprep.mubr.msk.f32.mxu1 %vm9414_vm14, %v2682_v42  ;;  %7228 = vmatpush3.bf16.msra.mxu1 %v7225_v45  ;;  %v7241_v0 = vpack.c.bf16 %v3972_v49, %v3971_v6  ;;  %v3973_v42 = vld [vmem:[#allocation3 + $0x330] sm:$0xff]  ;;  %v7273_v45 = vpack.c.bf16 %v4166_v11, %v4165_v5  ;;  %v4358_v49 = vld [vmem:[#allocation3 + $0x418] sm:$0xff] }
 0x314   : > { %7230 = vmatprep.subr.bf16.mxu1 %v7229_v57  ;;  %v7245_v32 = vpack.c.bf16 %v3974_v13, %v3973_v42  ;;  %v4357_v6 = vld [vmem:[#allocation3 + $0x410] sm:$0xff]  ;;  %v4359_v42 = vld [vmem:[#allocation3 + $0x420] sm:$0xff]  ;;  %v4360_v13 = vld [vmem:[#allocation3 + $0x428] sm:$0xff] }
 0x315   : > { %v4154_v5 = vld [vmem:[#allocation2 + $0xa9] sm:$0xff] }
 0x316   : > { %7751 = vmatmul.mubr.msk.f32.gmra.mrb[32].mxu1 %vm9414_vm14, %v2683_v36  ;;  %v3976_v36 = vld [vmem:[#allocation3 + $0x348] sm:$0xff] }
 0x317   : > { %7232 = vmatpush3.bf16.msra.mxu1 %v7229_v57  ;;  %6561 = vmatprep.mubr.f32.mxu1 %v9542_v55  ;;  %v7249_v55 = vpack.c.bf16 %v3976_v36, %v3975_v38  ;;  %v4169_v57 = vld [vmem:[#allocation3 + $0x3c0] sm:$0xff]  ;;  %v4361_v36 = vld [vmem:[#allocation3 + $0x430] sm:$0xff] }
 0x318   : > { %7234 = vmatprep.subr.bf16.mxu1 %v7233_v47  ;;  %v4147_v38 = vld [vmem:[#allocation2 + $0x51] sm:$0xff] }
 0x31a   : > { %6562 = vmatmul.mubr.f32.vlgmr.msra.gmra.mrb[18].mxu1 %v9545_v9  ;;  %v3977_v9 = vld [vmem:[#allocation3 + $0x350] sm:$0xff] }
 0x31b   : > { %6564 = vmatprep.mubr.f32.mxu1 %v9548_v29  ;;  %7236 = vmatpush3.bf16.msra.mxu1 %v7233_v47  ;;  %v7253_v54 = vpack.c.bf16 %v3978_v61, %v3977_v9  ;;  %v4174_v47 = vld [vmem:[#allocation3 + $0x3e8] sm:$0xff]  ;;  %v4148_v9 = vld [vmem:[#allocation2 + $0x61] sm:$0xff] }
 0x31c   : > { %7238 = vmatprep.subr.bf16.mxu1 %v7237_v16 }
 0x31e   : > { %6565 = vmatmul.mubr.f32.gmra.mrb[20].mxu1 %v9551_v35 }
 0x31f   : > { %6567 = vmatprep.mubr.f32.mxu1 %v9554_v24  ;;  %7240 = vmatpush3.bf16.msra.mxu1 %v7237_v16  ;;  %v3964_v16 = vld [vmem:[#allocation2 + $0xd8] sm:$0xff] }
 0x320   : > { %7242 = vmatprep.subr.bf16.mxu1 %v7241_v0 }
 0x322   : > { %6568 = vmatmul.mubr.f32.gmra.mrb[22].mxu1 %v9557_v27 }
 0x323   : > { %6570 = vmatprep.mubr.f32.mxu1 %v9560_v20  ;;  %7244 = vmatpush3.bf16.msra.mxu1 %v7241_v0  ;;  %v4144_v0 = vld [vmem:[#allocation2 + $0x31] sm:$0xff] }
 0x324   : > { %7246 = vmatprep.subr.bf16.mxu1 %v7245_v32 }
 0x326   : > { %6571 = vmatmul.mubr.f32.gmra.mrb[24].mxu1 %v9563_v48 }
 0x327   : > { %6573 = vmatprep.mubr.f32.mxu1 %v9566_v15  ;;  %7248 = vmatpush3.bf16.msra.mxu1 %v7245_v32  ;;  %v4146_v32 = vld [vmem:[#allocation2 + $0x49] sm:$0xff] }
 0x328   : > { %7250 = vmatprep.subr.bf16.mxu1 %v7249_v55 }
 0x32a   : > { %6574 = vmatmul.mubr.f32.gmra.mrb[26].mxu1 %v9569_v58 }
 0x32b   : > { %6576 = vmatprep.mubr.f32.mxu1 %v9572_v34  ;;  %7252 = vmatpush3.bf16.msra.mxu1 %v7249_v55  ;;  %v4362_v55 = vld [vmem:[#allocation3 + $0x438] sm:$0xff] }
 0x32c   : > { %7254 = vmatprep.subr.bf16.mxu1 %v7253_v54  ;;  %v7309_v61 = vpack.c.bf16 %v4362_v55, %v4361_v36 }
 0x32e   : > { %6577 = vmatmul.mubr.f32.gmra.mrb[28].mxu1 %v9575_v53 }
 0x32f   : > { %6579 = vmatprep.mubr.f32.mxu1 %v9578_v31  ;;  %7256 = vmatpush3.bf16.msra.mxu1 %v7253_v54  ;;  %v4149_v54 = vld [vmem:[#allocation2 + $0x69] sm:$0xff] }
 0x330   : > { %7258 = vmatprep.subr.bf16.mxu1 %v7257_v26 }
 0x332   : > { %6580 = vmatmul.mubr.f32.gmra.mrb[30].mxu1 %v9581_v41 }
 0x333   : > { %6582 = vmatprep.mubr.f32.mxu1 %v9665_v21  ;;  %7260 = vmatpush3.bf16.msra.mxu1 %v7257_v26  ;;  %v4150_v26 = vld [vmem:[#allocation2 + $0x79] sm:$0xff] }
 0x334   : > { %7262 = vmatprep.subr.bf16.mxu1 %v7261_v2 }
 0x336   : > { %6583 = vmatmul.mubr.f32.gmra.mrb[32].mxu1 %v9668_v18 }
 0x337   : > { %7264 = vmatpush3.bf16.msra.mxu1 %v7261_v2  ;;  %6617 = vmatprep.mubr.f32.mxu1 %v9506_v22  ;;  %v7277_v22 = vpack.c.bf16 %v4168_v10, %v4167_v44  ;;  %v4365_v2 = vld [vmem:[#allocation3 + $0x450] sm:$0xff]  ;;  %v4370_v10 = vld [vmem:[#allocation3 + $0x478] sm:$0xff] }
 0x338   : > { %7266 = vmatprep.subr.bf16.mxu1 %v7265_v1  ;;  %v4369_v44 = vld [vmem:[#allocation3 + $0x470] sm:$0xff] }
 0x33a   : > { %6618 = vmatmul.mubr.f32.vlgmr.msra.gmra.mrb[18].mxu1 %v9509_v7  ;;  %v7281_v7 = vpack.c.bf16 %v4170_v12, %v4169_v57  ;;  %v7325_v57 = vpack.c.bf16 %v4370_v10, %v4369_v44  ;;  %v4157_v12 = vld [vmem:[#allocation2 + $0xc9] sm:$0xff] }
 0x33b   : > { %6620 = vmatprep.mubr.f32.mxu1 %v9512_v19  ;;  %7268 = vmatpush3.bf16.msra.mxu1 %v7265_v1  ;;  %v4171_v19 = vld [vmem:[#allocation3 + $0x3d0] sm:$0xff]  ;;  %v7317_v1 = vpack.c.bf16 %v4366_v56, %v4365_v2 }
 0x33c   : > { %7270 = vmatprep.subr.bf16.mxu1 %v7269_v60 }
 0x33e   : > { %6621 = vmatmul.mubr.f32.gmra.mrb[20].mxu1 %v9515_v37  ;;  %v7285_v37 = vpack.c.bf16 %v4172_v39, %v4171_v19  ;;  %v4159_v19 = vld [vmem:[#allocation2 + $0xe1] sm:$0xff] }
 0x33f   : > { %6623 = vmatprep.mubr.f32.mxu1 %v9518_v46  ;;  %7272 = vmatpush3.bf16.msra.mxu1 %v7269_v60  ;;  %v4173_v46 = vld [vmem:[#allocation3 + $0x3e0] sm:$0xff]  ;;  %v4368_v60 = vld [vmem:[#allocation3 + $0x468] sm:$0xff] }
 0x340   : > { %7274 = vmatprep.subr.bf16.mxu1 %v7273_v45  ;;  %v7321_v11 = vpack.c.bf16 %v4368_v60, %v4367_v23 }
 0x342   : > { %6624 = vmatmul.mubr.f32.gmra.mrb[22].mxu1 %v9521_v33  ;;  %v7289_v33 = vpack.c.bf16 %v4174_v47, %v4173_v46 }
 0x343   : > { %6626 = vmatprep.mubr.f32.mxu1 %v9524_v8  ;;  %7276 = vmatpush3.bf16.msra.mxu1 %v7273_v45  ;;  %v4175_v8 = vld [vmem:[#allocation3 + $0x3f0] sm:$0xff]  ;;  %v4155_v45 = vld [vmem:[#allocation2 + $0xb1] sm:$0xff] }
 0x344   : > { %7278 = vmatprep.subr.bf16.mxu1 %v7277_v22 }
 0x346   : > { %6627 = vmatmul.mubr.f32.gmra.mrb[24].mxu1 %v9527_v40  ;;  %v7293_v40 = vpack.c.bf16 %v4176_v4, %v4175_v8  ;;  %v5052_v4 = vld [vmem:[%s8045_s7 + $0x68] sm:$0xff] }
 0x347   : > { %6629 = vmatprep.mubr.f32.mxu1 %v9530_v51  ;;  %7280 = vmatpush3.bf16.msra.mxu1 %v7277_v22  ;;  %v4355_v51 = vld [vmem:[#allocation3 + $0x400] sm:$0xff]  ;;  %v4156_v22 = vld [vmem:[#allocation2 + $0xc1] sm:$0xff] }
 0x348   : > { %7282 = vmatprep.subr.bf16.mxu1 %v7281_v7 }
 0x34a   : > { %6630 = vmatmul.mubr.f32.gmra.mrb[26].mxu1 %v9533_v43  ;;  %v7297_v43 = vpack.c.bf16 %v4356_v63, %v4355_v51 }
 0x34b   : > { %6632 = vmatprep.mubr.f32.mxu1 %v9536_v14  ;;  %7284 = vmatpush3.bf16.msra.mxu1 %v7281_v7  ;;  %v3965_v14 = vld [vmem:[#allocation2 + $0xe0] sm:$0xff] }
 0x34c   : > { %7286 = vmatprep.subr.bf16.mxu1 %v7285_v37  ;;  %v4158_v7 = vld [vmem:[#allocation2 + $0xd9] sm:$0xff] }
 0x34e   : > { %6633 = vmatmul.mubr.f32.gmra.mrb[28].mxu1 %v9539_v62  ;;  %v7301_v62 = vpack.c.bf16 %v4358_v49, %v4357_v6  ;;  %v5051_v6 = vld [vmem:[%s8045_s7 + $0x60] sm:$0xff] }
 0x34f   : > { %6635 = vmatprep.mubr.f32.mxu1 %v9598_v3  ;;  %7288 = vmatpush3.bf16.msra.mxu1 %v7285_v37  ;;  %v4145_v3 = vld [vmem:[#allocation2 + $0x39] sm:$0xff] }
 0x350   : > { %7290 = vmatprep.subr.bf16.mxu1 %v7289_v33 }
 0x352   : > { %6636 = vmatmul.mubr.f32.gmra.mrb[30].mxu1 %v9601_v30  ;;  %v7305_v30 = vpack.c.bf16 %v4360_v13, %v4359_v42 }
 0x353   : > { %6638 = vmatprep.mubr.f32.mxu1 %v3964_v16  ;;  %7292 = vmatpush3.bf16.msra.mxu1 %v7289_v33 }
 0x354   : > { %7294 = vmatprep.subr.bf16.mxu1 %v7293_v40 }
 0x356   : > { %6639 = vmatmul.mubr.f32.gmra.mrb[32].mxu1 %v3965_v14 }
 0x357   : > { %7296 = vmatpush3.bf16.msra.mxu1 %v7293_v40  ;;  %6673 = vmatprep.mubr.f32.mxu1 %v4144_v0  ;;  %v5053_v40 = vld [vmem:[%s8045_s7 + $0x70] sm:$0x3] }
 0x358   : > { %7298 = vmatprep.subr.bf16.mxu1 %v7297_v43  ;;  %v4633_v42 = vrot.slane %v5053_v40, 1 }
 0x35a   : > { %6674 = vmatmul.mubr.f32.vlgmr.msra.gmra.mrb[18].mxu1 %v4145_v3  ;;  %v4631_v3 = vrot.slane %v5052_v4, 1 }
 0x35b   : > { %6676 = vmatprep.mubr.f32.mxu1 %v4146_v32  ;;  %7300 = vmatpush3.bf16.msra.mxu1 %v7297_v43 }
 0x35c   : > { %7302 = vmatprep.subr.bf16.mxu1 %v7301_v62  ;;  %v4634_v56 = vsel %vm309_vm0, %v4631_v3, %v4633_v42 }
 0x35e   : > { %6677 = vmatmul.mubr.f32.gmra.mrb[20].mxu1 %v4147_v38 }
 0x35f   : > { %6679 = vmatprep.mubr.f32.mxu1 %v4148_v9  ;;  %7304 = vmatpush3.bf16.msra.mxu1 %v7301_v62  ;;  %v4630_v9 = vrot.slane %v5051_v6, 1 }
 0x360   : > { %7306 = vmatprep.subr.bf16.mxu1 %v7305_v30 }
 0x361   : > { %v4632_v10 = vsel %vm309_vm0, %v4630_v9, %v4631_v3 }
 0x362   : > { %6680 = vmatmul.mubr.f32.gmra.mrb[22].mxu1 %v4149_v54  ;;  %v5056_v54 = vld [vmem:[%s8045_s7 + $0x88] sm:$0x3] }
 0x363   : > { %6682 = vmatprep.mubr.f32.mxu1 %v4150_v26  ;;  %7308 = vmatpush3.bf16.msra.mxu1 %v7305_v30  ;;  %v4638_v60 = vrot.slane %v5056_v54, 1 }
 0x364   : > { %7310 = vmatprep.subr.bf16.mxu1 %v7309_v61 }
 0x366   : > { %6683 = vmatmul.mubr.f32.gmra.mrb[24].mxu1 %v4151_v17 }
 0x367   : > { %6685 = vmatprep.mubr.f32.mxu1 %v4152_v28  ;;  %7312 = vmatpush3.bf16.msra.mxu1 %v7309_v61  ;;  %v5055_v61 = vld [vmem:[%s8045_s7 + $0x80] sm:$0xff] }
 0x368   : > { %7314 = vmatprep.subr.bf16.mxu1 %v7313_v59  ;;  %v4636_v23 = vrot.slane %v5055_v61, 1 }
 0x36a   : > { %6686 = vmatmul.mubr.f32.gmra.mrb[26].mxu1 %v4153_v52 }
 0x36b   : > { %6688 = vmatprep.mubr.f32.mxu1 %v4154_v5  ;;  %7316 = vmatpush3.bf16.msra.mxu1 %v7313_v59  ;;  %v5054_v59 = vld [vmem:[%s8045_s7 + $0x78] sm:$0xff] }
 0x36c   : > { %7318 = vmatprep.subr.bf16.mxu1 %v7317_v1  ;;  %v5058_v5 = vld [vmem:[%s8045_s7 + $0x98] sm:$0xff] }
 0x36e   : > { %6689 = vmatmul.mubr.f32.gmra.mrb[28].mxu1 %v4155_v45 }
 0x36f   : > { %6691 = vmatprep.mubr.f32.mxu1 %v4156_v22  ;;  %7320 = vmatpush3.bf16.msra.mxu1 %v7317_v1  ;;  %v4635_v22 = vrot.slane %v5054_v59, 1 }
 0x370   : > { %7322 = vmatprep.subr.bf16.mxu1 %v7321_v11 }
 0x372   : > { %6692 = vmatmul.mubr.f32.gmra.mrb[30].mxu1 %v4157_v12 }
 0x373   : > { %6694 = vmatprep.mubr.f32.mxu1 %v4158_v7  ;;  %7324 = vmatpush3.bf16.msra.mxu1 %v7321_v11  ;;  %v5059_v11 = vld [vmem:[%s8045_s7 + $0xa0] sm:$0x3] }
 0x374   : > { %7326 = vmatprep.subr.bf16.mxu1 %v7325_v57 }
 0x376   : > { %6695 = vmatmul.mubr.f32.gmra.mrb[32].mxu1 %v4159_v19  ;;  %v5057_v19 = vld [vmem:[%s8045_s7 + $0x90] sm:$0xff] }
 0x377   : > { %7328 = vmatpush3.bf16.msra.mxu1 %v7325_v57  ;;  %6729 = vmatprep.mubr.f32.mxu1 %v9548_v29  ;;  %v4352_v29 = vld [vmem:[#allocation2 + $0xda] sm:$0xff] }
 0x37a   : > { %6730 = vmatmul.mubr.f32.vlgmr.msra.gmra.mrb[18].mxu1 %v9551_v35  ;;  %v4353_v35 = vld [vmem:[#allocation2 + $0xe2] sm:$0xff] }
 0x37b   : > { %6732 = vmatprep.mubr.f32.mxu1 %v9554_v24  ;;  %v5046_v24 = vld [vmem:[%s8045_s7 + $0x38] sm:$0xff] }
 0x37e   : > { %6733 = vmatmul.mubr.f32.gmra.mrb[20].mxu1 %v9557_v27  ;;  %v5047_v27 = vld [vmem:[%s8045_s7 + $0x40] sm:$0x3] }
 0x37f   : > { %6735 = vmatprep.mubr.f32.mxu1 %v9560_v20  ;;  %v5045_v20 = vld [vmem:[%s8045_s7 + $0x30] sm:$0xff] }
 0x382   : > { %6736 = vmatmul.mubr.f32.gmra.mrb[22].mxu1 %v9563_v48  ;;  %v9705_v48 = vld [vmem:[%s9869_s3 + $0x2] ss:$0 sm:$0xff] }
 0x383   : > { %6738 = vmatprep.mubr.f32.mxu1 %v9566_v15  ;;  %v4621_v15 = vrot.slane %v5046_v24, 1 }
 0x386   : > { %6739 = vmatmul.mubr.f32.gmra.mrb[24].mxu1 %v9569_v58  ;;  %v4623_v58 = vrot.slane %v5047_v27, 1  ;;  %v4641_v27 = vrot.slane %v5058_v5, 1 }
 0x387   : > { %6741 = vmatprep.mubr.f32.mxu1 %v9572_v34  ;;  %v4620_v34 = vrot.slane %v5045_v20, 1  ;;  %v4643_v20 = vrot.slane %v5059_v11, 1  ;;  %v5066_v11 = vld [vmem:[%s8045_s7 + $0xd8] sm:$0xff] }
 0x388   : > { %v4624_v46 = vsel %vm309_vm0, %v4621_v15, %v4623_v58  ;;  %v4639_v58 = vsel %vm309_vm0, %v4636_v23, %v4638_v60 }
 0x389   : > { %v4622_v63 = vsel %vm309_vm0, %v4620_v34, %v4621_v15 }
 0x38a   : > { %6742 = vmatmul.mubr.f32.gmra.mrb[26].mxu1 %v9575_v53  ;;  %v5049_v53 = vld [vmem:[%s8045_s7 + $0x50] sm:$0xff] }
 0x38b   : > { %6744 = vmatprep.mubr.f32.mxu1 %v9578_v31  ;;  %v5050_v31 = vld [vmem:[%s8045_s7 + $0x58] sm:$0x3]  ;;  %v4626_v33 = vrot.slane %v5049_v53, 1 }
 0x38c   : > { %v4628_v8 = vrot.slane %v5050_v31, 1 }
 0x38e   : > { %6745 = vmatmul.mubr.f32.gmra.mrb[28].mxu1 %v9581_v41  ;;  %v9713_v41 = vld [vmem:[%s9869_s3 + $0x3] ss:$0 sm:$0xff]  ;;  %v4629_v32 = vsel %vm309_vm0, %v4626_v33, %v4628_v8  ;;  %v5060_v8 = vld [vmem:[%s8045_s7 + $0xa8] sm:$0xff] }
 0x38f   : > { %6747 = vmatprep.mubr.f32.mxu1 %v9665_v21 }
 0x392   : > { %6748 = vmatmul.mubr.f32.gmra.mrb[30].mxu1 %v9668_v18  ;;  %v5048_v18 = vld [vmem:[%s8045_s7 + $0x48] sm:$0xff] }
 0x393   : > { %6750 = vmatprep.mubr.f32.mxu1 %v4352_v29  ;;  %v4625_v16 = vrot.slane %v5048_v18, 1  ;;  %v4640_v18 = vrot.slane %v5057_v19, 1 }
 0x395   : > { %v4627_v55 = vsel %vm309_vm0, %v4625_v16, %v4626_v33  ;;  %v4642_v42 = vsel %vm309_vm0, %v4640_v18, %v4641_v27 }
 0x396   : > { %6751 = vmatmul.mubr.f32.gmra.mrb[32].mxu1 %v4353_v35 }
 0x44d   : > { %v6731_v21 = vpop.f32.mrb[18].mxu1 }
 0x44e   : > { %v4561_v39 = vmul.f32 %v6731_v21, %v9705_v48  ;;  %v4437_v37 = vpop.f32.mrb[19].mxu1  ;;  %v4637_v21 = vsel %vm309_vm0, %v4635_v22, %v4636_v23 }
 0x44f   : > { %v4560_v47 = vmul.f32 %v9705_v48, %v4437_v37  ;;  %v5062_v37 = vld [vmem:[%s8045_s7 + $0xb8] sm:$0x3] }
 0x450   : > { %v4581_v51 = vadd.f32 %v9713_v41, %v4561_v39  ;;  %v5061_v39 = vld [vmem:[%s8045_s7 + $0xb0] sm:$0xff]  ;;  %v4648_v6 = vrot.slane %v5062_v37, 1 }
 0x451   : > { %v4580_v43 = vadd.f32 %v9713_v41, %v4560_v47  ;;  %v6734_v14 = vpop.f32.mrb[20].mxu1 }
 0x452   : > { %v4677_v49 = vadd.f32 %v4624_v46, %v4581_v51  ;;  %v4563_v0 = vmul.f32 %v6734_v14, %v9705_v48  ;;  %v4447_v62 = vpop.f32.mrb[21].mxu1  ;;  %v4644_v51 = vsel %vm309_vm0, %v4641_v27, %v4643_v20  ;;  %v4646_v14 = vrot.slane %v5061_v39, 1 }
 0x453   : > { %v4676_v13 = vadd.f32 %v4622_v63, %v4580_v43  ;;  %v4562_v30 = vmul.f32 %v9705_v48, %v4447_v62  ;;  %v4655_v27 = vrot.slane %v5066_v11, 1 }
 0x454   : > { %v4693_v38 = vmax.f32 %v4677_v49, 0.0  ;;  %v4583_v36 = vadd.f32 %v9713_v41, %v4563_v0  ;;  %v5064_v49 = vld [vmem:[%s8045_s7 + $0xc8] sm:$0xff]  ;;  %v5065_v0 = vld [vmem:[%s8045_s7 + $0xd0] sm:$0x3] }
 0x455   : > { %v4692_v25 = vmax.f32 %v4676_v13, 0.0  ;;  %v4582_v50 = vadd.f32 %v9713_v41, %v4562_v30  ;;  %v6737_v26 = vpop.f32.mrb[22].mxu1  ;;  %v4645_v13 = vrot.slane %v5060_v8, 1  ;;  %v4651_v54 = vrot.slane %v5064_v49, 1 }
 0x456   : > { %4709 = vst [vmem:[%s9736_s10 + $0x8] sm:$0xff] %v4693_v38  ;;  %v4679_v17 = vadd.f32 %v4629_v32, %v4583_v36  ;;  %v4565_v2 = vmul.f32 %v6737_v26, %v9705_v48  ;;  %v4457_v28 = vpop.f32.mrb[23].mxu1  ;;  %v5063_v36 = vld [vmem:[%s8045_s7 + $0xc0] sm:$0xff]  ;;  %v4649_v26 = vsel %vm309_vm0, %v4646_v14, %v4648_v6 }
 0x457   : > { %4708 = vst [vmem:[%s9736_s10] sm:$0xff] %v4692_v25  ;;  %v4678_v1 = vadd.f32 %v4627_v55, %v4582_v50  ;;  %v4564_v52 = vmul.f32 %v9705_v48, %v4457_v28  ;;  %v4653_v25 = vrot.slane %v5065_v0, 1  ;;  %v4650_v28 = vrot.slane %v5063_v36, 1 }
 0x458   : > { %v4695_v45 = vmax.f32 %v4679_v17, 0.0  ;;  %v4585_v44 = vadd.f32 %v9713_v41, %v4565_v2 }
 0x459   : > { %v4694_v57 = vmax.f32 %v4678_v1, 0.0  ;;  %v4584_v12 = vadd.f32 %v9713_v41, %v4564_v52  ;;  %v6740_v7 = vpop.f32.mrb[24].mxu1  ;;  %v5067_v1 = vld [vmem:[%s8045_s7 + $0xe0] sm:$0xff]  ;;  %v5068_v52 = vld [vmem:[%s8045_s7 + $0xe8] sm:$0x3]  ;;  %s4741_s7 = sshll.u32 %s9736_s10, 4  ;;  %s9808_s7 = int_to_ptr.vmem [resolvable:$true] %s4741_s7 }
 0x45a   : > { %4711 = vst [vmem:[%s9736_s10 + $0x18] sm:$0xff] %v4695_v45  ;;  %v4681_v29 = vadd.f32 %v4634_v56, %v4585_v44  ;;  %v4567_v35 = vmul.f32 %v6740_v7, %v9705_v48  ;;  %v4467_v24 = vpop.f32.mrb[25].mxu1  ;;  %v4647_v56 = vsel %vm309_vm0, %v4645_v13, %v4646_v14  ;;  %v4656_v7 = vrot.slane %v5067_v1, 1  ;;  %s7780_s23 = scalar_lea.vmem %s9808_s7, 2048  ;;  %p7787_p2 = scmp.lt.s32.totalorder %s9808_s7, %s7785_s5 }
 0x45b   : > { %4710 = vst [vmem:[%s9736_s10 + $0x10] sm:$0xff] %v4694_v57  ;;  %v4680_v15 = vadd.f32 %v4632_v10, %v4584_v12  ;;  %v4566_v34 = vmul.f32 %v9705_v48, %v4467_v24  ;;  %v4654_v10 = vsel %vm309_vm0, %v4651_v54, %v4653_v25  ;;  %v4658_v19 = vrot.slane %v5068_v52, 1  ;;  %p7781_p8 = scmp.ne.s32.totalorder %s9808_s7, %s7780_s23  ;;  %p7788_p5 = scmp.lt.s32.totalorder %s7786_s6, %s7780_s23 }
 0x45c   : > { %v4697_v53 = vmax.f32 %v4681_v29, 0.0  ;;  %v4587_v31 = vadd.f32 %v9713_v41, %v4567_v35  ;;  %v4652_v24 = vsel %vm309_vm0, %v4650_v28, %v4651_v54 }
 0x45d   : > { %v4696_v46 = vmax.f32 %v4680_v15, 0.0  ;;  %v4586_v47 = vadd.f32 %v9713_v41, %v4566_v34  ;;  %v6743_v33 = vpop.f32.mrb[26].mxu1  ;;  %v4659_v18 = vsel %vm309_vm0, %v4656_v7, %v4658_v19  ;;  %p7782_p12 = pnand %p7781_p8, %p9970_p10  ;;  %p7789_p6 = por %p7788_p5, %p7787_p2 }
 0x45e   : > { %4713 = vst [vmem:[%s9736_s10 + $0x28] sm:$0xff] %v4697_v53  ;;  %v4683_v4 = vadd.f32 %v4639_v58, %v4587_v31  ;;  %v4569_v40 = vmul.f32 %v6743_v33, %v9705_v48  ;;  %v4477_v63 = vpop.f32.mrb[27].mxu1 }
 0x45f   : > { %4712 = vst [vmem:[%s9736_s10 + $0x20] sm:$0xff] %v4696_v46  ;;  %v4682_v16 = vadd.f32 %v4637_v21, %v4586_v47  ;;  %v4568_v43 = vmul.f32 %v9705_v48, %v4477_v63  ;;  %v4657_v47 = vsel %vm309_vm0, %v4655_v27, %v4656_v7  ;;  %p7783_p0 = pneg %p7782_p12 }
 0x460   : > { %v4699_v62 = vmax.f32 %v4683_v4, 0.0  ;;  %v4589_v3 = vadd.f32 %v9713_v41, %v4569_v40 }
 0x461   : > { %v4698_v32 = vmax.f32 %v4682_v16, 0.0  ;;  %v4588_v30 = vadd.f32 %v9713_v41, %v4568_v43  ;;  %v6746_v38 = vpop.f32.mrb[28].mxu1  ;;  %p7790_p7 = pnand %p7789_p6, %p7783_p0 }
 0x462   : > { %4715 = vst [vmem:[%s9736_s10 + $0x38] sm:$0xff] %v4699_v62  ;;  %v4685_v55 = vadd.f32 %v4644_v51, %v4589_v3  ;;  %v4571_v9 = vmul.f32 %v6746_v38, %v9705_v48  ;;  %v4487_v61 = vpop.f32.mrb[29].mxu1 }
 0x463   : > { %4714 = vst [vmem:[%s9736_s10 + $0x30] sm:$0xff] %v4698_v32  ;;  %v4684_v50 = vadd.f32 %v4642_v42, %v4588_v30  ;;  %v4570_v59 = vmul.f32 %v9705_v48, %v4487_v61 }
 0x464   : > { %v4701_v17 = vmax.f32 %v4685_v55, 0.0  ;;  %v4591_v2 = vadd.f32 %v9713_v41, %v4571_v9 }
 0x465   : > { %v4700_v23 = vmax.f32 %v4684_v50, 0.0  ;;  %v4590_v60 = vadd.f32 %v9713_v41, %v4570_v59  ;;  %v6749_v5 = vpop.f32.mrb[30].mxu1 }
 0x466   : > { %4717 = vst [vmem:[%s9736_s10 + $0x48] sm:$0xff] %v4701_v17  ;;  %v4687_v45 = vadd.f32 %v4649_v26, %v4591_v2  ;;  %v4573_v44 = vmul.f32 %v6749_v5, %v9705_v48  ;;  %v4497_v22 = vpop.f32.mrb[31].mxu1 }
 0x467   : > { %4716 = vst [vmem:[%s9736_s10 + $0x40] sm:$0xff] %v4700_v23  ;;  %v4686_v57 = vadd.f32 %v4647_v56, %v4590_v60  ;;  %v4572_v12 = vmul.f32 %v9705_v48, %v4497_v22 }
 0x468   : > { %v4703_v29 = vmax.f32 %v4687_v45, 0.0  ;;  %v4593_v35 = vadd.f32 %v9713_v41, %v4573_v44 }
 0x469   : > { %v4702_v20 = vmax.f32 %v4686_v57, 0.0  ;;  %v4592_v15 = vadd.f32 %v9713_v41, %v4572_v12  ;;  %v6752_v58 = vpop.f32.mrb[32].mxu1 }
 0x46a   : > { %4719 = vst [vmem:[%s9736_s10 + $0x58] sm:$0xff] %v4703_v29  ;;  %v4689_v34 = vadd.f32 %v4654_v10, %v4593_v35  ;;  %v4575_v53 = vmul.f32 %v6752_v58, %v9705_v48  ;;  %v4507_v31 = vpop.f32.mrb[33].mxu1 }
 0x46b   : > { %4718 = vst [vmem:[%s9736_s10 + $0x50] sm:$0xff] %v4702_v20  ;;  %v4688_v21 = vadd.f32 %v4652_v24, %v4592_v15  ;;  %v4574_v39 = vmul.f32 %v9705_v48, %v4507_v31 }
 0x46c   : > { %v4705_v37 = vmax.f32 %v4689_v34, 0.0  ;;  %v4595_v46 = vadd.f32 %v9713_v41, %v4575_v53 }
 0x46d   : > { %v4704_v33 = vmax.f32 %v4688_v21, 0.0  ;;  %v4594_v8 = vadd.f32 %v9713_v41, %v4574_v39 }
 0x46e   : > { %4721 = vst [vmem:[%s9736_s10 + $0x68] sm:$0xff] %v4705_v37  ;;  %v4691_v4 = vadd.f32 %v4659_v18, %v4595_v46 }
 0x46f   : > { %4720 = vst [vmem:[%s9736_s10 + $0x60] sm:$0xff] %v4704_v33  ;;  %v4690_v40 = vadd.f32 %v4657_v47, %v4594_v8 }
 0x470   : > { %v4707_v51 = vmax.f32 %v4691_v4, 0.0 }
 0x471   : > { %v4706_v48 = vmax.f32 %v4690_v40, 0.0 }
 0x472   : > { %4723 = vst [vmem:[%s9736_s10 + $0x78] sm:$0xff] %v4707_v51 }
 0x473   : > { %4722 = vst [vmem:[%s9736_s10 + $0x70] sm:$0xff] %v4706_v48 }
 0x474   : > { %7793 = shalt.err (!%p7790_p7)
}
 0x475   : > { %s7794_s27 = scalar_lea.hbm %s9806_s11, 2048  ;;  %s7798_s8 = scalar_lea.hbm %s9870_s4, 8192 }
 0x476   : > { %p7795_p9 = scmp.ne.s32.totalorder %s9806_s11, %s7794_s27  ;;  %p7799_p1 = scmp.lt.u32.totalorder %s9806_s11, %s9870_s4 }
 0x477   : > { %p7800_p4 = scmp.lt.u32.totalorder %s7798_s8, %s7794_s27  ;;  %p7802_p8 = scmp.lt.u32.totalorder %s7794_s27, %s9806_s11 }
 0x478   : > { %p7796_p11 = pnand %p7795_p9, %p9970_p10 }
 0x479   : > { %p7801_p3 = por %p7800_p4, %p7799_p1 }
 0x47a   : > { %p7797_p13 = pneg %p7796_p11 }
 0x47b   : > { %p7803_p12 = por %p7802_p8, %p7801_p3 }
 0x47d   : > { %p7804_p0 = pnand %p7803_p12, %p7797_p13 }
 0x47f   : > { %7807 = shalt.err (!%p7804_p0)
}
 0x480   : > { %s7885_s14 = smov 128   ;;  %s7886_s12 = smov 8  }
 0x481   : > { %7638 = dma.vmem_to_hbm [thread:$0]  (%p9970_p10), %s9808_s7, 2048, %s9806_s11, %s9814_s24, %s7885_s14, %s7885_s14, %s7886_s12  }
 0x482 PF: > { %p7650_p2 = scmp.ge.s32.totalorder %s7878_s22, 2  ;;  %s4756_s23 = sand.u32 1, %s7850_s15  }
 0x483   : > { %p9971_p5 = scmp.ne.s32.totalorder %s9906_s30, 0  ;;  %s4757_s28 = scalar_lea.sflag [#allocation5], %s4756_s23 }
 0x485   : > { %p7645_p6 = pnand %p7650_p2, %p9971_p5 }
 0x487   : > { %7845 = dma.done.wait (!%p7645_p6), %s4757_s28, 2048  }
 0x488   : > { %7847 = vsyncadd (!%p7645_p6), %s4757_s28, 4294965248  ;;  %s18_s22 = sadd.s32 1, %s7878_s22   ;;  %s9972_s15 = smov %s7854_s16 }
 0x489   : > { %p15_p7 = scmp.ge.s32.totalorder %s18_s22, 6   ;;  %s9973_s16 = smov %s7858_s17 }
 0x48a   : > { %s9974_s17 = smov %s7991_s9  ;;  %s9975_s18 = smov %s7870_s20 }
 0x48b   : > { %s9976_s19 = smov %s7874_s21  ;;  %s9977_s20 = smov %s9980_s25 }
 0x48c   : > { %s9978_s21 = smov %s9984_s26  ;;  %17 = sbr.rel (!%p15_p7) target bundleno = 6 (0x6), region = 97 }
 0x493   :  { %4762 = vsyncpa [#allocation4], 1 }
 0x494   :  { %4764 = vsyncpa [#allocation4 + $0x1], 1 }
 0x495   :  { %4765 = vsyncpa [#allocation5], 1 }
 0x496   :  { %4767 = vsyncpa [#allocation5 + $0x1], 1 }

</bundles_post_ra>
